<compile_context>
chip_gen: v7x
topology: tpu7x:2x2x1
jax: 0.10.0
libtpu: 0.0.40
codegen_flags: <defaults>
</compile_context>

<pallas_src>
import functools

import jax
import jax.numpy as jnp
from jax import lax
from jax.experimental import pallas as pl
from jax.experimental.pallas import tpu as pltpu

_LANE = 128   # channel padding granularity.
              # TODO(synk): consider 256-alignment of Cin/Cout on v6e/v7x
              # (2x256 MXU) for real channel counts; 128 is ideal on v5e.
_EPS = 1e-5


# ----------------------------------------------------------------------------
# in-kernel helpers
# ----------------------------------------------------------------------------
def _repeat2(x, axis):
    """2x nearest repeat along `axis` (static broadcast + reshape)."""
    s = x.shape
    y = jnp.broadcast_to(jnp.expand_dims(x, axis + 1),
                         s[:axis + 1] + (2,) + s[axis + 1:])
    return y.reshape(s[:axis] + (2 * s[axis],) + s[axis + 1:])


def _cbn_relu_rows(xt, xm, xb, a, b, r):
    """Cond-BN (precomputed per-sample scale/shift) + ReLU on the main rows plus
    the 1-row top/bottom halo; halo rows are zero-masked at the image border."""
    f32 = jnp.float32
    not_first = (r > 0).astype(f32)
    not_last = (r < pl.num_programs(1) - 1).astype(f32)
    act = lambda v: jnp.maximum(v.astype(f32) * a + b, 0.0)
    return act(xt) * not_first, act(xm), act(xb) * not_last


def _conv3x3_taps(win, w_ref, cb_ref, tr, wo):
    """3x3 conv of a (tr+2, wo, Cin) activation window as 9 accumulated K=Cin
    MXU matmuls (per the review: no im2col materialization).  Zero column
    padding is added here.  Returns f32 (tr*wo, Cout) including the conv bias.

    The dx=1,2 slices are sublane shifts handled on the (otherwise idle) XLU.
    """
    rows, _, cin = win.shape
    zcol = jnp.zeros((rows, 1, cin), win.dtype)
    winp = jnp.concatenate([zcol, win, zcol], axis=1).astype(jnp.bfloat16)
    acc = None
    for dy in range(3):
        for dx in range(3):
            tap = winp[dy:dy + tr, dx:dx + wo, :].reshape(tr * wo, cin)
            d = jnp.dot(tap, w_ref[dy, dx], preferred_element_type=jnp.float32)
            acc = d if acc is None else acc + d
    return acc + cb_ref[...].astype(jnp.float32)


# ----------------------------------------------------------------------------
# Pallas kernels
# ----------------------------------------------------------------------------
def _bn1_relu_up_conv1_kernel(xt_ref, xm_ref, xb_ref, a_ref, b_ref, w_ref, cb_ref,
                              h_ref, s1_ref, s2_ref, *, upsample):
    """cond-BN1 + ReLU (+ in-kernel 2x nearest upsample) + conv1 for one
    output-row tile, plus per-tile sum / sum-of-squares of conv1's output
    (bn2's batch stats -> no extra HBM pass over the intermediate)."""
    r = pl.program_id(1)
    _, tr, wo, cout = h_ref.shape
    a = a_ref[...].astype(jnp.float32)                       # (1, 1, Cin)
    b = b_ref[...].astype(jnp.float32)

    act_t, act_m, act_b = _cbn_relu_rows(xt_ref[0], xm_ref[0], xb_ref[0], a, b, r)
    if upsample:
        act_m = _repeat2(act_m, 0)                           # row half of up2
    win = jnp.concatenate([act_t, act_m, act_b], axis=0)     # (tr+2, Win, Cin)
    if upsample:
        win = _repeat2(win, 1)                               # column half of up2

    acc = _conv3x3_taps(win, w_ref, cb_ref, tr, wo)          # f32 (tr*wo, Cout)
    h_ref[...] = acc.reshape(1, tr, wo, cout).astype(h_ref.dtype)
    # per-tile partial sums for bn2's batch statistics (reduced in XLA).
    s1_ref[...] = jnp.sum(acc, axis=0).reshape(1, 1, 1, cout)
    s2_ref[...] = jnp.sum(acc * acc, axis=0).reshape(1, 1, 1, cout)


def _bn2_relu_conv2_sc_kernel(ht_ref, hm_ref, hb_ref, a_ref, b_ref, w_ref, cb_ref,
                              x_ref, *rest, upsample, learnable_sc):
    """cond-BN2 + ReLU + conv2 with the shortcut (1x1 conv_sc or identity) and
    the residual add fused into the epilogue; one output-row tile per step."""
    if learnable_sc:
        wsc_ref, bsc_ref, o_ref = rest
    else:
        (o_ref,) = rest
    r = pl.program_id(1)
    _, tr, wo, cout = o_ref.shape
    a = a_ref[...].astype(jnp.float32)
    b = b_ref[...].astype(jnp.float32)

    act_t, act_m, act_b = _cbn_relu_rows(ht_ref[0], hm_ref[0], hb_ref[0], a, b, r)
    win = jnp.concatenate([act_t, act_m, act_b], axis=0)     # (tr+2, wo, Cout)
    conv = _conv3x3_taps(win, w_ref, cb_ref, tr, wo).reshape(tr, wo, cout)

    if learnable_sc:
        # conv_sc(up2(x)) == up2(conv_sc(x)): the 1x1 matmul runs at input
        # resolution; rows/cols are duplicated afterwards.
        trs, w_in, cin = x_ref.shape[1], x_ref.shape[2], x_ref.shape[3]
        xs = x_ref[0].astype(jnp.bfloat16).reshape(trs * w_in, cin)
        sc = jnp.dot(xs, wsc_ref[...], preferred_element_type=jnp.float32)
        sc = (sc + bsc_ref[...].astype(jnp.float32)).reshape(trs, w_in, cout)
        if upsample:
            sc = _repeat2(_repeat2(sc, 0), 1)
    else:
        sc = x_ref[0].astype(jnp.float32)                    # identity skip (f32)

    o_ref[...] = (conv + sc).reshape(1, tr, wo, cout).astype(o_ref.dtype)


# ----------------------------------------------------------------------------
# Parameter setup (deterministic, spectral norm applied in glue)
# ----------------------------------------------------------------------------
def _spectral_sigma(w_mat, iters=50):
    v = jnp.ones((w_mat.shape[1],), jnp.float32)
    v = v / jnp.linalg.norm(v)
    u = w_mat @ v
    for _ in range(iters):
        u = w_mat @ v
        u = u / (jnp.linalg.norm(u) + 1e-12)
        v = w_mat.T @ u
        v = v / (jnp.linalg.norm(v) + 1e-12)
    return jnp.dot(u, w_mat @ v)


def _sn_conv(w_hwio):
    cout = w_hwio.shape[-1]
    w_mat = jnp.transpose(w_hwio, (3, 2, 0, 1)).reshape(cout, -1)
    return w_hwio / _spectral_sigma(w_mat)


def _sn_linear(w_oi):
    return w_oi / _spectral_sigma(w_oi)


def init_gblock_params(key, in_ch, out_ch, emb, upsample):
    ks = jax.random.split(key, 7)
    s = 0.02
    params = {
        "conv1_w": _sn_conv(s * jax.random.normal(ks[0], (3, 3, in_ch, out_ch), jnp.float32)),
        "conv1_b": 0.01 * jnp.ones((1, out_ch), jnp.float32),
        "conv2_w": _sn_conv(s * jax.random.normal(ks[1], (3, 3, out_ch, out_ch), jnp.float32)),
        "conv2_b": -0.01 * jnp.ones((1, out_ch), jnp.float32),
        "bn1_gain_w": _sn_linear(s * jax.random.normal(ks[2], (in_ch, emb), jnp.float32)),
        "bn1_bias_w": _sn_linear(s * jax.random.normal(ks[3], (in_ch, emb), jnp.float32)),
        "bn2_gain_w": _sn_linear(s * jax.random.normal(ks[4], (out_ch, emb), jnp.float32)),
        "bn2_bias_w": _sn_linear(s * jax.random.normal(ks[5], (out_ch, emb), jnp.float32)),
    }
    learnable_sc = (in_ch != out_ch) or upsample
    if learnable_sc:
        params["conv_sc_w"] = _sn_conv(
            s * jax.random.normal(ks[6], (1, 1, in_ch, out_ch), jnp.float32)
        ).reshape(in_ch, out_ch)
        params["conv_sc_b"] = 0.005 * jnp.ones((1, out_ch), jnp.float32)
    return params, learnable_sc


# ----------------------------------------------------------------------------
# Generation-aware tiling
# ----------------------------------------------------------------------------
def _round_up(v, m):
    return (v + m - 1) // m * m


def _vmem_limit_bytes():
    """VMEM limit with headroom: 96 MiB on v5e/v6e (128 MiB), 48 MiB on v7x."""
    cap = 64 * 1024 * 1024                       # conservative fallback (v7x)
    try:
        cap = int(pltpu.get_tpu_info().vmem_capacity_bytes)
    except Exception:
        pass
    return int(min(max(cap * 3 // 4, 32 * 1024 * 1024), 120 * 1024 * 1024))


def _pick_tile_rows(w_in, ho, wo, cin_p, cout_p, upsample, budget_bytes):
    """Largest output-row tile whose per-grid-step VMEM footprint fits budget."""
    bf, f4 = 2, 4
    # grid-invariant operands (double-buffered by the default pipeline today).
    weights = 2 * bf * (9 * cin_p * cout_p + 9 * cout_p * cout_p
                        + cin_p * cout_p + 4 * cout_p)
    step = 2 if upsample else 1
    cands = [t for t in range(step, ho + 1, step) if ho % t == 0]
    best = cands[0]
    for t in cands:
        t_in = t // step
        x_tile = 2 * bf * (t_in + 2) * w_in * cin_p          # streamed x (main+halo)
        h1_tile = 2 * bf * t * wo * cout_p                   # streamed h1 / out tile
        window = bf * (t + 2) * (wo + 2) * max(cin_p, cout_p)
        acc = f4 * t * wo * cout_p
        need = weights + x_tile + 2 * h1_tile + window + 2 * acc
        if need <= budget_bytes:
            best = t
    return best


# ----------------------------------------------------------------------------
# Forward pass
# ----------------------------------------------------------------------------
@functools.partial(jax.jit, static_argnames=("upsample", "learnable_sc"))
def gblock_forward(params, x_nchw, y, *, upsample, learnable_sc):
    assert learnable_sc or not upsample
    f32, bf16 = jnp.float32, jnp.bfloat16
    x = jnp.transpose(x_nchw, (0, 2, 3, 1)).astype(f32)       # NCHW -> NHWC
    n, h, w, cin = x.shape
    cout = params["conv1_w"].shape[-1]
    cin_p, cout_p = _round_up(cin, _LANE), _round_up(cout, _LANE)
    ho, wo = (2 * h, 2 * w) if upsample else (h, w)

    vmem_limit = _vmem_limit_bytes()
    tr = _pick_tile_rows(w, ho, wo, cin_p, cout_p, upsample,
                         int(vmem_limit * 0.7))
    rt = ho // tr
    tr_in = tr // 2 if upsample else tr

    # ---- tiny XLA glue: lane padding, bn1 batch stats, per-sample affines ----
    xp = jnp.pad(x, ((0, 0), (0, 0), (0, 0), (0, cin_p - cin)))
    x_bf = xp.astype(bf16)             # streamed by the kernels; no 2x col dup

    w1 = jnp.pad(params["conv1_w"],
                 ((0, 0), (0, 0), (0, cin_p - cin), (0, cout_p - cout))).astype(bf16)
    w2 = jnp.pad(params["conv2_w"],
                 ((0, 0), (0, 0), (0, cout_p - cout), (0, cout_p - cout))).astype(bf16)
    cb1 = jnp.pad(params["conv1_b"], ((0, 0), (0, cout_p - cout)))
    cb2 = jnp.pad(params["conv2_b"], ((0, 0), (0, cout_p - cout)))

    # bn1 training-mode batch stats: cheap XLA reduce over x.
    mean1 = jnp.mean(xp, axis=(0, 1, 2))
    var1 = jnp.mean(jnp.square(xp - mean1), axis=(0, 1, 2))
    inv1 = lax.rsqrt(var1 + _EPS)
    g1 = jnp.pad(y @ params["bn1_gain_w"].T, ((0, 0), (0, cin_p - cin)))
    bb1 = jnp.pad(y @ params["bn1_bias_w"].T, ((0, 0), (0, cin_p - cin)))
    a1 = inv1[None, :] * (1.0 + g1)
    b1 = bb1 - mean1[None, :] * a1
    a1, b1 = a1.reshape(n, 1, cin_p), b1.reshape(n, 1, cin_p)

    cparams = pltpu.CompilerParams(
        dimension_semantics=("parallel", "parallel"),   # no cross-tile state
        vmem_limit_bytes=vmem_limit)

    row4 = lambda i, r: (i, r, 0, 0)
    per_n3 = lambda i, r: (i, 0, 0)
    const2 = lambda i, r: (0, 0)
    const4 = lambda i, r: (0, 0, 0, 0)
    top_in = lambda i, r: (i, jnp.maximum(r * tr_in - 1, 0), 0, 0)
    bot_in = lambda i, r: (i, jnp.minimum(r * tr_in + tr_in, h - 1), 0, 0)
    top_out = lambda i, r: (i, jnp.maximum(r * tr - 1, 0), 0, 0)
    bot_out = lambda i, r: (i, jnp.minimum(r * tr + tr, ho - 1), 0, 0)

    # ---- kernel 1: bn1 + ReLU (+up2) + conv1, plus per-tile bn2-stat sums ----
    flops1 = 2 * n * ho * wo * 9 * cin_p * cout_p
    bytes1 = 2 * n * h * w * cin_p * 2 + n * ho * wo * cout_p * 2 + w1.size * 2
    h1, s1, s2 = pl.pallas_call(
        functools.partial(_bn1_relu_up_conv1_kernel, upsample=upsample),
        grid=(n, rt),
        in_specs=[
            pl.BlockSpec((1, 1, w, cin_p), top_in),          # top halo row
            pl.BlockSpec((1, tr_in, w, cin_p), row4),        # main rows
            pl.BlockSpec((1, 1, w, cin_p), bot_in),          # bottom halo row
            pl.BlockSpec((1, 1, cin_p), per_n3),             # a1
            pl.BlockSpec((1, 1, cin_p), per_n3),             # b1
            pl.BlockSpec((3, 3, cin_p, cout_p), const4),     # conv1 weights
            pl.BlockSpec((1, cout_p), const2),               # conv1 bias
        ],
        out_specs=(
            pl.BlockSpec((1, tr, wo, cout_p), row4),
            pl.BlockSpec((1, 1, 1, cout_p), row4),
            pl.BlockSpec((1, 1, 1, cout_p), row4),
        ),
        out_shape=(
            jax.ShapeDtypeStruct((n, ho, wo, cout_p), bf16),     # h1 (bf16)
            jax.ShapeDtypeStruct((n, rt, 1, cout_p), f32),       # per-tile sum
            jax.ShapeDtypeStruct((n, rt, 1, cout_p), f32),       # per-tile sum^2
        ),
        compiler_params=cparams,
        cost_estimate=pl.CostEstimate(flops=flops1, transcendentals=0,
                                      bytes_accessed=bytes1),
    )(x_bf, x_bf, x_bf, a1, b1, w1, cb1)

    # bn2 batch stats from kernel-1 per-tile partial sums (f32).
    # NOTE: one-pass E[x^2]-E[x]^2 in f32; fine at these sizes / tolerances.
    cnt = float(n * ho * wo)
    mean2 = jnp.sum(s1, axis=(0, 1, 2)) / cnt
    var2 = jnp.maximum(jnp.sum(s2, axis=(0, 1, 2)) / cnt - mean2 * mean2, 0.0)
    inv2 = lax.rsqrt(var2 + _EPS)
    g2 = jnp.pad(y @ params["bn2_gain_w"].T, ((0, 0), (0, cout_p - cout)))
    bb2 = jnp.pad(y @ params["bn2_bias_w"].T, ((0, 0), (0, cout_p - cout)))
    a2 = inv2[None, :] * (1.0 + g2)
    b2 = bb2 - mean2[None, :] * a2
    a2, b2 = a2.reshape(n, 1, cout_p), b2.reshape(n, 1, cout_p)

    # ---- kernel 2: bn2 + ReLU + conv2 + fused shortcut + residual add --------
    trs = tr_in if upsample else tr
    x_sc = x_bf if learnable_sc else xp          # identity skip stays f32
    ins = [h1, h1, h1, a2, b2, w2, cb2, x_sc]
    in_specs = [
        pl.BlockSpec((1, 1, wo, cout_p), top_out),
        pl.BlockSpec((1, tr, wo, cout_p), row4),
        pl.BlockSpec((1, 1, wo, cout_p), bot_out),
        pl.BlockSpec((1, 1, cout_p), per_n3),
        pl.BlockSpec((1, 1, cout_p), per_n3),
        pl.BlockSpec((3, 3, cout_p, cout_p), const4),
        pl.BlockSpec((1, cout_p), const2),
        pl.BlockSpec((1, trs, w, cin_p), row4),              # row-tiled x stream
    ]
    flops2 = 2 * n * ho * wo * 9 * cout_p * cout_p
    bytes2 = (2 * h1.size * 2 + n * h * w * cin_p * 2
              + n * ho * wo * cout_p * 2 + w2.size * 2)
    if learnable_sc:
        wsc = jnp.pad(params["conv_sc_w"],
                      ((0, cin_p - cin), (0, cout_p - cout))).astype(bf16)
        bsc = jnp.pad(params["conv_sc_b"], ((0, 0), (0, cout_p - cout)))
        ins += [wsc, bsc]
        in_specs += [pl.BlockSpec((cin_p, cout_p), const2),
                     pl.BlockSpec((1, cout_p), const2)]
        flops2 += 2 * n * h * w * cin_p * cout_p
    out = pl.pallas_call(
        functools.partial(_bn2_relu_conv2_sc_kernel, upsample=upsample,
                          learnable_sc=learnable_sc),
        grid=(n, rt),
        in_specs=in_specs,
        out_specs=pl.BlockSpec((1, tr, wo, cout_p), row4),
        out_shape=jax.ShapeDtypeStruct((n, ho, wo, cout_p), bf16),
        compiler_params=cparams,
        cost_estimate=pl.CostEstimate(flops=flops2, transcendentals=0,
                                      bytes_accessed=bytes2),
    )(*ins)

    # TODO(synk): consumers that accept padded NHWC bf16 can skip this pass.
    out = out[..., :cout].astype(f32)
    return jnp.transpose(out, (0, 3, 1, 2))                  # NHWC -> NCHW


# ----------------------------------------------------------------------------
# Pure-JAX reference (correctness check only)
# ----------------------------------------------------------------------------
def gblock_reference(params, x_nchw, y, *, upsample, learnable_sc):
    x = jnp.transpose(x_nchw, (0, 2, 3, 1)).astype(jnp.float32)

    def cbn(hh, gain_w, bias_w):
        gain = y @ gain_w.T
        bias = y @ bias_w.T
        mean = jnp.mean(hh, axis=(0, 1, 2))
        var = jnp.mean(jnp.square(hh - mean), axis=(0, 1, 2))
        xhat = (hh - mean) / jnp.sqrt(var + _EPS)
        return xhat * (1.0 + gain)[:, None, None, :] + bias[:, None, None, :]

    def conv(hh, wgt, b):
        o = lax.conv_general_dilated(hh, wgt, (1, 1), "SAME",
                                     dimension_numbers=("NHWC", "HWIO", "NHWC"))
        return o + b.reshape(1, 1, 1, -1)

    def up2(hh):
        return jnp.repeat(jnp.repeat(hh, 2, axis=1), 2, axis=2)

    h = jax.nn.relu(cbn(x, params["bn1_gain_w"], params["bn1_bias_w"]))
    if upsample:
        h = up2(h)
        x = up2(x)
    h = conv(h, params["conv1_w"], params["conv1_b"])
    h = jax.nn.relu(cbn(h, params["bn2_gain_w"], params["bn2_bias_w"]))
    h = conv(h, params["conv2_w"], params["conv2_b"])
    if learnable_sc:
        x = jnp.einsum("nhwc,cd->nhwd", x, params["conv_sc_w"]) \
            + params["conv_sc_b"].reshape(1, 1, 1, -1)
    return jnp.transpose(h + x, (0, 3, 1, 2))


# ----------------------------------------------------------------------------
# Demo
# ----------------------------------------------------------------------------
if __name__ == "__main__":
    key = jax.random.PRNGKey(0)
    k_x, k_y, k_p1, k_p2 = jax.random.split(key, 4)

    N, EMB = 2, 16
    y = jax.random.normal(k_y, (N, EMB), jnp.float32)

    # config 1: in_ch != out_ch, upsample=True  -> learnable 1x1 shortcut
    in_ch, out_ch, H = 4, 8, 8
    x = jax.random.normal(k_x, (N, in_ch, H, H), jnp.float32)
    params, lsc = init_gblock_params(k_p1, in_ch, out_ch, EMB, upsample=True)
    out = gblock_forward(params, x, y, upsample=True, learnable_sc=lsc)
    jax.block_until_ready(out)
    ref = gblock_reference(params, x, y, upsample=True, learnable_sc=lsc)
    assert out.shape == (N, out_ch, 2 * H, 2 * H)
    # bf16 matmul operands / bf16 inter-stage + output -> loose tolerance vs f32 ref
    assert bool(jnp.allclose(out, ref, atol=5e-2, rtol=5e-2))

    # config 2: in_ch == out_ch, upsample=False -> identity shortcut
    params2, lsc2 = init_gblock_params(k_p2, out_ch, out_ch, EMB, upsample=False)
    x2 = jax.random.normal(k_x, (N, out_ch, H, H), jnp.float32)
    out2 = gblock_forward(params2, x2, y, upsample=False, learnable_sc=lsc2)
    jax.block_until_ready(out2)
    ref2 = gblock_reference(params2, x2, y, upsample=False, learnable_sc=lsc2)
    assert out2.shape == (N, out_ch, H, H)
    assert bool(jnp.allclose(out2, ref2, atol=5e-2, rtol=5e-2))

    print("KERNEL_OK")
</pallas_src>

<mosaic_0001>
module attributes {stable_mosaic.version = 11 : i64} {
  func.func @_bn1_relu_up_conv1_kernel(%arg0: i32, %arg1: i32, %arg2: memref<1x1x8x128xbf16, #tpu.memory_space<vmem>>, %arg3: memref<1x8x8x128xbf16, #tpu.memory_space<vmem>>, %arg4: memref<1x1x8x128xbf16, #tpu.memory_space<vmem>>, %arg5: memref<1x1x128xf32, #tpu.memory_space<vmem>>, %arg6: memref<1x1x128xf32, #tpu.memory_space<vmem>>, %arg7: memref<3x3x128x128xbf16, #tpu.memory_space<vmem>>, %arg8: memref<1x128xf32, #tpu.memory_space<vmem>>, %arg9: memref<1x16x16x128xbf16, #tpu.memory_space<vmem>>, %arg10: memref<1x1x1x128xf32, #tpu.memory_space<vmem>>, %arg11: memref<1x1x1x128xf32, #tpu.memory_space<vmem>>) attributes {dimension_semantics = [#tpu.dimension_semantics<parallel>, #tpu.dimension_semantics<parallel>], iteration_bounds = array<i64: 2, 1>, scalar_prefetch = 0 : i64, scratch_operands = 0 : i64, tpu.core_type = #tpu.core_type<tc>, window_params = [{transform_indices = @transform_0, window_bounds = array<i64: 1, 1, 8, 128>}, {transform_indices = @transform_1, window_bounds = array<i64: 1, 8, 8, 128>}, {transform_indices = @transform_2, window_bounds = array<i64: 1, 1, 8, 128>}, {transform_indices = @transform_3, window_bounds = array<i64: 1, 1, 128>}, {transform_indices = @transform_4, window_bounds = array<i64: 1, 1, 128>}, {pipeline_mode = #tpu.pipeline_mode<synchronous>, transform_indices = @transform_5, window_bounds = array<i64: 3, 3, 128, 128>}, {pipeline_mode = #tpu.pipeline_mode<synchronous>, transform_indices = @transform_6, window_bounds = array<i64: 1, 128>}, {transform_indices = @transform_7, window_bounds = array<i64: 1, 16, 16, 128>}, {transform_indices = @transform_8, window_bounds = array<i64: 1, 1, 1, 128>}, {transform_indices = @transform_9, window_bounds = array<i64: 1, 1, 1, 128>}]} {
    %c0 = arith.constant 0 : index
    %c0_0 = arith.constant 0 : index
    %c0_1 = arith.constant 0 : index
    %0 = vector.load %arg5[%c0, %c0_0, %c0_1] : memref<1x1x128xf32, #tpu.memory_space<vmem>>, vector<1x1x128xf32>
    %c0_2 = arith.constant 0 : index
    %c0_3 = arith.constant 0 : index
    %c0_4 = arith.constant 0 : index
    %1 = vector.load %arg6[%c0_2, %c0_3, %c0_4] : memref<1x1x128xf32, #tpu.memory_space<vmem>>, vector<1x1x128xf32>
    %c0_5 = arith.constant 0 : index
    %c0_6 = arith.constant 0 : index
    %c0_7 = arith.constant 0 : index
    %c0_8 = arith.constant 0 : index
    %2 = vector.load %arg2[%c0_5, %c0_6, %c0_7, %c0_8] : memref<1x1x8x128xbf16, #tpu.memory_space<vmem>>, vector<1x1x8x128xbf16>
    %3 = vector.shape_cast %2 : vector<1x1x8x128xbf16> to vector<1x8x128xbf16>
    %c0_9 = arith.constant 0 : index
    %c0_10 = arith.constant 0 : index
    %c0_11 = arith.constant 0 : index
    %c0_12 = arith.constant 0 : index
    %4 = vector.load %arg3[%c0_9, %c0_10, %c0_11, %c0_12] : memref<1x8x8x128xbf16, #tpu.memory_space<vmem>>, vector<1x8x8x128xbf16>
    %5 = vector.shape_cast %4 : vector<1x8x8x128xbf16> to vector<8x8x128xbf16>
    %c0_13 = arith.constant 0 : index
    %c0_14 = arith.constant 0 : index
    %c0_15 = arith.constant 0 : index
    %c0_16 = arith.constant 0 : index
    %6 = vector.load %arg4[%c0_13, %c0_14, %c0_15, %c0_16] : memref<1x1x8x128xbf16, #tpu.memory_space<vmem>>, vector<1x1x8x128xbf16>
    %7 = vector.shape_cast %6 : vector<1x1x8x128xbf16> to vector<1x8x128xbf16>
    %c0_i32 = arith.constant 0 : i32
    %8 = arith.cmpi sgt, %arg1, %c0_i32 : i32
    %9 = arith.extui %8 : i1 to i32
    %10 = arith.sitofp %9 : i32 to f32
    %c0_i32_17 = arith.constant 0 : i32
    %11 = arith.cmpi slt, %arg1, %c0_i32_17 : i32
    %12 = arith.extui %11 : i1 to i32
    %13 = arith.sitofp %12 : i32 to f32
    %14 = arith.extf %3 : vector<1x8x128xbf16> to vector<1x8x128xf32>
    %15 = vector.broadcast %0 : vector<1x1x128xf32> to vector<1x8x128xf32>
    %16 = arith.mulf %14, %15 : vector<1x8x128xf32>
    %17 = vector.broadcast %1 : vector<1x1x128xf32> to vector<1x8x128xf32>
    %18 = arith.addf %16, %17 : vector<1x8x128xf32>
    %cst = arith.constant 0.000000e+00 : f32
    %19 = vector.broadcast %cst : f32 to vector<1x8x128xf32>
    %20 = arith.maximumf %18, %19 : vector<1x8x128xf32>
    %21 = vector.broadcast %10 : f32 to vector<1x8x128xf32>
    %22 = arith.mulf %20, %21 : vector<1x8x128xf32>
    %23 = arith.extf %5 : vector<8x8x128xbf16> to vector<8x8x128xf32>
    %24 = vector.broadcast %0 : vector<1x1x128xf32> to vector<8x8x128xf32>
    %25 = arith.mulf %23, %24 : vector<8x8x128xf32>
    %26 = vector.broadcast %1 : vector<1x1x128xf32> to vector<8x8x128xf32>
    %27 = arith.addf %25, %26 : vector<8x8x128xf32>
    %cst_18 = arith.constant 0.000000e+00 : f32
    %28 = vector.broadcast %cst_18 : f32 to vector<8x8x128xf32>
    %29 = arith.maximumf %27, %28 : vector<8x8x128xf32>
    %30 = arith.extf %7 : vector<1x8x128xbf16> to vector<1x8x128xf32>
    %31 = vector.broadcast %0 : vector<1x1x128xf32> to vector<1x8x128xf32>
    %32 = arith.mulf %30, %31 : vector<1x8x128xf32>
    %33 = vector.broadcast %1 : vector<1x1x128xf32> to vector<1x8x128xf32>
    %34 = arith.addf %32, %33 : vector<1x8x128xf32>
    %cst_19 = arith.constant 0.000000e+00 : f32
    %35 = vector.broadcast %cst_19 : f32 to vector<1x8x128xf32>
    %36 = arith.maximumf %34, %35 : vector<1x8x128xf32>
    %37 = vector.broadcast %13 : f32 to vector<1x8x128xf32>
    %38 = arith.mulf %36, %37 : vector<1x8x128xf32>
    %39 = vector.shape_cast %29 : vector<8x8x128xf32> to vector<8x1x8x128xf32>
    %40 = vector.shape_cast %39 : vector<8x1x8x128xf32> to vector<8x1x8x128xf32>
    %41 = vector.broadcast %40 : vector<8x1x8x128xf32> to vector<8x2x8x128xf32>
    %42 = vector.shape_cast %41 : vector<8x2x8x128xf32> to vector<16x8x128xf32>
    %43 = tpu.concatenate %22, %42, %38 in 0 : vector<1x8x128xf32>, vector<16x8x128xf32>, vector<1x8x128xf32> -> vector<18x8x128xf32>
    %44 = vector.shape_cast %43 : vector<18x8x128xf32> to vector<18x8x1x128xf32>
    %45 = vector.shape_cast %44 : vector<18x8x1x128xf32> to vector<18x8x1x128xf32>
    %46 = vector.broadcast %45 : vector<18x8x1x128xf32> to vector<18x8x2x128xf32>
    %47 = vector.shape_cast %46 : vector<18x8x2x128xf32> to vector<18x16x128xf32>
    %cst_20 = arith.constant 0.000000e+00 : f32
    %48 = vector.broadcast %cst_20 : f32 to vector<18x1x128xf32>
    %49 = tpu.concatenate %48, %47, %48 in 1 : vector<18x1x128xf32>, vector<18x16x128xf32>, vector<18x1x128xf32> -> vector<18x18x128xf32>
    %50 = arith.truncf %49 : vector<18x18x128xf32> to vector<18x18x128xbf16>
    %51 = vector.extract_strided_slice %50 {offsets = [0, 0, 0], sizes = [16, 16, 128], strides = [1, 1, 1]} : vector<18x18x128xbf16> to vector<16x16x128xbf16>
    %52 = vector.shape_cast %51 : vector<16x16x128xbf16> to vector<256x128xbf16>
    %c0_21 = arith.constant 0 : index
    %c0_22 = arith.constant 0 : index
    %c0_23 = arith.constant 0 : index
    %c0_24 = arith.constant 0 : index
    %53 = vector.load %arg7[%c0_21, %c0_22, %c0_23, %c0_24] : memref<3x3x128x128xbf16, #tpu.memory_space<vmem>>, vector<1x1x128x128xbf16>
    %54 = vector.shape_cast %53 : vector<1x1x128x128xbf16> to vector<128x128xbf16>
    %cst_25 = arith.constant dense<0.000000e+00> : vector<256x128xf32>
    %55 = tpu.matmul %52, %54, %cst_25 {dimension_numbers = #tpu.dot_dimension_numbers<[1], [0], [0], [1], [0, 0, 1, 1], [], []>} : vector<256x128xbf16>, vector<128x128xbf16>, vector<256x128xf32> -> vector<256x128xf32>
    %56 = vector.extract_strided_slice %50 {offsets = [0, 1, 0], sizes = [16, 16, 128], strides = [1, 1, 1]} : vector<18x18x128xbf16> to vector<16x16x128xbf16>
    %57 = vector.shape_cast %56 : vector<16x16x128xbf16> to vector<256x128xbf16>
    %c0_26 = arith.constant 0 : index
    %c1 = arith.constant 1 : index
    %c0_27 = arith.constant 0 : index
    %c0_28 = arith.constant 0 : index
    %58 = vector.load %arg7[%c0_26, %c1, %c0_27, %c0_28] : memref<3x3x128x128xbf16, #tpu.memory_space<vmem>>, vector<1x1x128x128xbf16>
    %59 = vector.shape_cast %58 : vector<1x1x128x128xbf16> to vector<128x128xbf16>
    %cst_29 = arith.constant dense<0.000000e+00> : vector<256x128xf32>
    %60 = tpu.matmul %57, %59, %cst_29 {dimension_numbers = #tpu.dot_dimension_numbers<[1], [0], [0], [1], [0, 0, 1, 1], [], []>} : vector<256x128xbf16>, vector<128x128xbf16>, vector<256x128xf32> -> vector<256x128xf32>
    %61 = arith.addf %55, %60 : vector<256x128xf32>
    %62 = vector.extract_strided_slice %50 {offsets = [0, 2, 0], sizes = [16, 16, 128], strides = [1, 1, 1]} : vector<18x18x128xbf16> to vector<16x16x128xbf16>
    %63 = vector.shape_cast %62 : vector<16x16x128xbf16> to vector<256x128xbf16>
    %c0_30 = arith.constant 0 : index
    %c2 = arith.constant 2 : index
    %c0_31 = arith.constant 0 : index
    %c0_32 = arith.constant 0 : index
    %64 = vector.load %arg7[%c0_30, %c2, %c0_31, %c0_32] : memref<3x3x128x128xbf16, #tpu.memory_space<vmem>>, vector<1x1x128x128xbf16>
    %65 = vector.shape_cast %64 : vector<1x1x128x128xbf16> to vector<128x128xbf16>
    %cst_33 = arith.constant dense<0.000000e+00> : vector<256x128xf32>
    %66 = tpu.matmul %63, %65, %cst_33 {dimension_numbers = #tpu.dot_dimension_numbers<[1], [0], [0], [1], [0, 0, 1, 1], [], []>} : vector<256x128xbf16>, vector<128x128xbf16>, vector<256x128xf32> -> vector<256x128xf32>
    %67 = arith.addf %61, %66 : vector<256x128xf32>
    %68 = vector.extract_strided_slice %50 {offsets = [1, 0, 0], sizes = [16, 16, 128], strides = [1, 1, 1]} : vector<18x18x128xbf16> to vector<16x16x128xbf16>
    %69 = vector.shape_cast %68 : vector<16x16x128xbf16> to vector<256x128xbf16>
    %c1_34 = arith.constant 1 : index
    %c0_35 = arith.constant 0 : index
    %c0_36 = arith.constant 0 : index
    %c0_37 = arith.constant 0 : index
    %70 = vector.load %arg7[%c1_34, %c0_35, %c0_36, %c0_37] : memref<3x3x128x128xbf16, #tpu.memory_space<vmem>>, vector<1x1x128x128xbf16>
    %71 = vector.shape_cast %70 : vector<1x1x128x128xbf16> to vector<128x128xbf16>
    %cst_38 = arith.constant dense<0.000000e+00> : vector<256x128xf32>
    %72 = tpu.matmul %69, %71, %cst_38 {dimension_numbers = #tpu.dot_dimension_numbers<[1], [0], [0], [1], [0, 0, 1, 1], [], []>} : vector<256x128xbf16>, vector<128x128xbf16>, vector<256x128xf32> -> vector<256x128xf32>
    %73 = arith.addf %67, %72 : vector<256x128xf32>
    %74 = vector.extract_strided_slice %50 {offsets = [1, 1, 0], sizes = [16, 16, 128], strides = [1, 1, 1]} : vector<18x18x128xbf16> to vector<16x16x128xbf16>
    %75 = vector.shape_cast %74 : vector<16x16x128xbf16> to vector<256x128xbf16>
    %c1_39 = arith.constant 1 : index
    %c1_40 = arith.constant 1 : index
    %c0_41 = arith.constant 0 : index
    %c0_42 = arith.constant 0 : index
    %76 = vector.load %arg7[%c1_39, %c1_40, %c0_41, %c0_42] : memref<3x3x128x128xbf16, #tpu.memory_space<vmem>>, vector<1x1x128x128xbf16>
    %77 = vector.shape_cast %76 : vector<1x1x128x128xbf16> to vector<128x128xbf16>
    %cst_43 = arith.constant dense<0.000000e+00> : vector<256x128xf32>
    %78 = tpu.matmul %75, %77, %cst_43 {dimension_numbers = #tpu.dot_dimension_numbers<[1], [0], [0], [1], [0, 0, 1, 1], [], []>} : vector<256x128xbf16>, vector<128x128xbf16>, vector<256x128xf32> -> vector<256x128xf32>
    %79 = arith.addf %73, %78 : vector<256x128xf32>
    %80 = vector.extract_strided_slice %50 {offsets = [1, 2, 0], sizes = [16, 16, 128], strides = [1, 1, 1]} : vector<18x18x128xbf16> to vector<16x16x128xbf16>
    %81 = vector.shape_cast %80 : vector<16x16x128xbf16> to vector<256x128xbf16>
    %c1_44 = arith.constant 1 : index
    %c2_45 = arith.constant 2 : index
    %c0_46 = arith.constant 0 : index
    %c0_47 = arith.constant 0 : index
    %82 = vector.load %arg7[%c1_44, %c2_45, %c0_46, %c0_47] : memref<3x3x128x128xbf16, #tpu.memory_space<vmem>>, vector<1x1x128x128xbf16>
    %83 = vector.shape_cast %82 : vector<1x1x128x128xbf16> to vector<128x128xbf16>
    %cst_48 = arith.constant dense<0.000000e+00> : vector<256x128xf32>
    %84 = tpu.matmul %81, %83, %cst_48 {dimension_numbers = #tpu.dot_dimension_numbers<[1], [0], [0], [1], [0, 0, 1, 1], [], []>} : vector<256x128xbf16>, vector<128x128xbf16>, vector<256x128xf32> -> vector<256x128xf32>
    %85 = arith.addf %79, %84 : vector<256x128xf32>
    %86 = vector.extract_strided_slice %50 {offsets = [2, 0, 0], sizes = [16, 16, 128], strides = [1, 1, 1]} : vector<18x18x128xbf16> to vector<16x16x128xbf16>
    %87 = vector.shape_cast %86 : vector<16x16x128xbf16> to vector<256x128xbf16>
    %c2_49 = arith.constant 2 : index
    %c0_50 = arith.constant 0 : index
    %c0_51 = arith.constant 0 : index
    %c0_52 = arith.constant 0 : index
    %88 = vector.load %arg7[%c2_49, %c0_50, %c0_51, %c0_52] : memref<3x3x128x128xbf16, #tpu.memory_space<vmem>>, vector<1x1x128x128xbf16>
    %89 = vector.shape_cast %88 : vector<1x1x128x128xbf16> to vector<128x128xbf16>
    %cst_53 = arith.constant dense<0.000000e+00> : vector<256x128xf32>
    %90 = tpu.matmul %87, %89, %cst_53 {dimension_numbers = #tpu.dot_dimension_numbers<[1], [0], [0], [1], [0, 0, 1, 1], [], []>} : vector<256x128xbf16>, vector<128x128xbf16>, vector<256x128xf32> -> vector<256x128xf32>
    %91 = arith.addf %85, %90 : vector<256x128xf32>
    %92 = vector.extract_strided_slice %50 {offsets = [2, 1, 0], sizes = [16, 16, 128], strides = [1, 1, 1]} : vector<18x18x128xbf16> to vector<16x16x128xbf16>
    %93 = vector.shape_cast %92 : vector<16x16x128xbf16> to vector<256x128xbf16>
    %c2_54 = arith.constant 2 : index
    %c1_55 = arith.constant 1 : index
    %c0_56 = arith.constant 0 : index
    %c0_57 = arith.constant 0 : index
    %94 = vector.load %arg7[%c2_54, %c1_55, %c0_56, %c0_57] : memref<3x3x128x128xbf16, #tpu.memory_space<vmem>>, vector<1x1x128x128xbf16>
    %95 = vector.shape_cast %94 : vector<1x1x128x128xbf16> to vector<128x128xbf16>
    %cst_58 = arith.constant dense<0.000000e+00> : vector<256x128xf32>
    %96 = tpu.matmul %93, %95, %cst_58 {dimension_numbers = #tpu.dot_dimension_numbers<[1], [0], [0], [1], [0, 0, 1, 1], [], []>} : vector<256x128xbf16>, vector<128x128xbf16>, vector<256x128xf32> -> vector<256x128xf32>
    %97 = arith.addf %91, %96 : vector<256x128xf32>
    %98 = vector.extract_strided_slice %50 {offsets = [2, 2, 0], sizes = [16, 16, 128], strides = [1, 1, 1]} : vector<18x18x128xbf16> to vector<16x16x128xbf16>
    %99 = vector.shape_cast %98 : vector<16x16x128xbf16> to vector<256x128xbf16>
    %c2_59 = arith.constant 2 : index
    %c2_60 = arith.constant 2 : index
    %c0_61 = arith.constant 0 : index
    %c0_62 = arith.constant 0 : index
    %100 = vector.load %arg7[%c2_59, %c2_60, %c0_61, %c0_62] : memref<3x3x128x128xbf16, #tpu.memory_space<vmem>>, vector<1x1x128x128xbf16>
    %101 = vector.shape_cast %100 : vector<1x1x128x128xbf16> to vector<128x128xbf16>
    %cst_63 = arith.constant dense<0.000000e+00> : vector<256x128xf32>
    %102 = tpu.matmul %99, %101, %cst_63 {dimension_numbers = #tpu.dot_dimension_numbers<[1], [0], [0], [1], [0, 0, 1, 1], [], []>} : vector<256x128xbf16>, vector<128x128xbf16>, vector<256x128xf32> -> vector<256x128xf32>
    %103 = arith.addf %97, %102 : vector<256x128xf32>
    %c0_64 = arith.constant 0 : index
    %c0_65 = arith.constant 0 : index
    %104 = vector.load %arg8[%c0_64, %c0_65] : memref<1x128xf32, #tpu.memory_space<vmem>>, vector<1x128xf32>
    %105 = vector.broadcast %104 : vector<1x128xf32> to vector<256x128xf32>
    %106 = arith.addf %103, %105 : vector<256x128xf32>
    %107 = vector.shape_cast %106 : vector<256x128xf32> to vector<1x16x16x128xf32>
    %108 = arith.truncf %107 : vector<1x16x16x128xf32> to vector<1x16x16x128xbf16>
    %c0_66 = arith.constant 0 : index
    %c0_67 = arith.constant 0 : index
    %c0_68 = arith.constant 0 : index
    %c0_69 = arith.constant 0 : index
    %109 = vector.load %arg9[%c0_66, %c0_67, %c0_68, %c0_69] : memref<1x16x16x128xbf16, #tpu.memory_space<vmem>>, vector<1x16x16x128xbf16>
    tpu.vector_store %arg9[%c0_66, %c0_67, %c0_68, %c0_69], %108 {strides = array<i32>} : memref<1x16x16x128xbf16, #tpu.memory_space<vmem>>, vector<1x16x16x128xbf16>,
    %cst_70 = arith.constant dense<0.000000e+00> : vector<128xf32>
    %110 = vector.multi_reduction <add>, %106, %cst_70 [0] : vector<256x128xf32> to vector<128xf32>
    %111 = vector.shape_cast %110 : vector<128xf32> to vector<1x1x1x128xf32>
    %c0_71 = arith.constant 0 : index
    %c0_72 = arith.constant 0 : index
    %c0_73 = arith.constant 0 : index
    %c0_74 = arith.constant 0 : index
    %112 = vector.load %arg10[%c0_71, %c0_72, %c0_73, %c0_74] : memref<1x1x1x128xf32, #tpu.memory_space<vmem>>, vector<1x1x1x128xf32>
    tpu.vector_store %arg10[%c0_71, %c0_72, %c0_73, %c0_74], %111 {strides = array<i32>} : memref<1x1x1x128xf32, #tpu.memory_space<vmem>>, vector<1x1x1x128xf32>,
    %113 = arith.mulf %106, %106 : vector<256x128xf32>
    %cst_75 = arith.constant dense<0.000000e+00> : vector<128xf32>
    %114 = vector.multi_reduction <add>, %113, %cst_75 [0] : vector<256x128xf32> to vector<128xf32>
    %115 = vector.shape_cast %114 : vector<128xf32> to vector<1x1x1x128xf32>
    %c0_76 = arith.constant 0 : index
    %c0_77 = arith.constant 0 : index
    %c0_78 = arith.constant 0 : index
    %c0_79 = arith.constant 0 : index
    %116 = vector.load %arg11[%c0_76, %c0_77, %c0_78, %c0_79] : memref<1x1x1x128xf32, #tpu.memory_space<vmem>>, vector<1x1x1x128xf32>
    tpu.vector_store %arg11[%c0_76, %c0_77, %c0_78, %c0_79], %115 {strides = array<i32>} : memref<1x1x1x128xf32, #tpu.memory_space<vmem>>, vector<1x1x1x128xf32>,
    return
  }
  func.func @transform_0(%arg0: i32, %arg1: i32) -> (i32, i32, i32, i32) {
    %c8_i32 = arith.constant 8 : i32
    %0 = arith.muli %arg1, %c8_i32 : i32
    %c1_i32 = arith.constant 1 : i32
    %1 = arith.subi %0, %c1_i32 : i32
    %c0_i32 = arith.constant 0 : i32
    %2 = arith.maxsi %1, %c0_i32 : i32
    %c0_i32_0 = arith.constant 0 : i32
    %c0_i32_1 = arith.constant 0 : i32
    %c0_i32_2 = arith.constant 0 : i32
    return %arg0, %2, %c0_i32_0, %c0_i32_1 : i32, i32, i32, i32
  }
  func.func @transform_1(%arg0: i32, %arg1: i32) -> (i32, i32, i32, i32) {
    %c0_i32 = arith.constant 0 : i32
    %c0_i32_0 = arith.constant 0 : i32
    %c0_i32_1 = arith.constant 0 : i32
    return %arg0, %arg1, %c0_i32, %c0_i32_0 : i32, i32, i32, i32
  }
  func.func @transform_2(%arg0: i32, %arg1: i32) -> (i32, i32, i32, i32) {
    %c8_i32 = arith.constant 8 : i32
    %0 = arith.muli %arg1, %c8_i32 : i32
    %c8_i32_0 = arith.constant 8 : i32
    %1 = arith.addi %0, %c8_i32_0 : i32
    %c7_i32 = arith.constant 7 : i32
    %2 = arith.minsi %1, %c7_i32 : i32
    %c0_i32 = arith.constant 0 : i32
    %c0_i32_1 = arith.constant 0 : i32
    %c0_i32_2 = arith.constant 0 : i32
    return %arg0, %2, %c0_i32, %c0_i32_1 : i32, i32, i32, i32
  }
  func.func @transform_3(%arg0: i32, %arg1: i32) -> (i32, i32, i32) {
    %c0_i32 = arith.constant 0 : i32
    %c0_i32_0 = arith.constant 0 : i32
    %c0_i32_1 = arith.constant 0 : i32
    return %arg0, %c0_i32, %c0_i32_0 : i32, i32, i32
  }
  func.func @transform_4(%arg0: i32, %arg1: i32) -> (i32, i32, i32) {
    %c0_i32 = arith.constant 0 : i32
    %c0_i32_0 = arith.constant 0 : i32
    %c0_i32_1 = arith.constant 0 : i32
    return %arg0, %c0_i32, %c0_i32_0 : i32, i32, i32
  }
  func.func @transform_5(%arg0: i32, %arg1: i32) -> (i32, i32, i32, i32) {
    %c0_i32 = arith.constant 0 : i32
    %c0_i32_0 = arith.constant 0 : i32
    %c0_i32_1 = arith.constant 0 : i32
    %c0_i32_2 = arith.constant 0 : i32
    %c0_i32_3 = arith.constant 0 : i32
    return %c0_i32, %c0_i32_0, %c0_i32_1, %c0_i32_2 : i32, i32, i32, i32
  }
  func.func @transform_6(%arg0: i32, %arg1: i32) -> (i32, i32) {
    %c0_i32 = arith.constant 0 : i32
    %c0_i32_0 = arith.constant 0 : i32
    %c0_i32_1 = arith.constant 0 : i32
    return %c0_i32, %c0_i32_0 : i32, i32
  }
  func.func @transform_7(%arg0: i32, %arg1: i32) -> (i32, i32, i32, i32) {
    %c0_i32 = arith.constant 0 : i32
    %c0_i32_0 = arith.constant 0 : i32
    %c0_i32_1 = arith.constant 0 : i32
    return %arg0, %arg1, %c0_i32, %c0_i32_0 : i32, i32, i32, i32
  }
  func.func @transform_8(%arg0: i32, %arg1: i32) -> (i32, i32, i32, i32) {
    %c0_i32 = arith.constant 0 : i32
    %c0_i32_0 = arith.constant 0 : i32
    %c0_i32_1 = arith.constant 0 : i32
    return %arg0, %arg1, %c0_i32, %c0_i32_0 : i32, i32, i32, i32
  }
  func.func @transform_9(%arg0: i32, %arg1: i32) -> (i32, i32, i32, i32) {
    %c0_i32 = arith.constant 0 : i32
    %c0_i32_0 = arith.constant 0 : i32
    %c0_i32_1 = arith.constant 0 : i32
    return %arg0, %arg1, %c0_i32, %c0_i32_0 : i32, i32, i32, i32
  }
}

module attributes {stable_mosaic.version = 11 : i64} {
  func.func @_bn2_relu_conv2_sc_kernel(%arg0: i32, %arg1: i32, %arg2: memref<1x1x16x128xbf16, #tpu.memory_space<vmem>>, %arg3: memref<1x16x16x128xbf16, #tpu.memory_space<vmem>>, %arg4: memref<1x1x16x128xbf16, #tpu.memory_space<vmem>>, %arg5: memref<1x1x128xf32, #tpu.memory_space<vmem>>, %arg6: memref<1x1x128xf32, #tpu.memory_space<vmem>>, %arg7: memref<3x3x128x128xbf16, #tpu.memory_space<vmem>>, %arg8: memref<1x128xf32, #tpu.memory_space<vmem>>, %arg9: memref<1x8x8x128xbf16, #tpu.memory_space<vmem>>, %arg10: memref<128x128xbf16, #tpu.memory_space<vmem>>, %arg11: memref<1x128xf32, #tpu.memory_space<vmem>>, %arg12: memref<1x16x16x128xbf16, #tpu.memory_space<vmem>>) attributes {dimension_semantics = [#tpu.dimension_semantics<parallel>, #tpu.dimension_semantics<parallel>], iteration_bounds = array<i64: 2, 1>, scalar_prefetch = 0 : i64, scratch_operands = 0 : i64, tpu.core_type = #tpu.core_type<tc>, window_params = [{transform_indices = @transform_0, window_bounds = array<i64: 1, 1, 16, 128>}, {transform_indices = @transform_1, window_bounds = array<i64: 1, 16, 16, 128>}, {transform_indices = @transform_2, window_bounds = array<i64: 1, 1, 16, 128>}, {transform_indices = @transform_3, window_bounds = array<i64: 1, 1, 128>}, {transform_indices = @transform_4, window_bounds = array<i64: 1, 1, 128>}, {pipeline_mode = #tpu.pipeline_mode<synchronous>, transform_indices = @transform_5, window_bounds = array<i64: 3, 3, 128, 128>}, {pipeline_mode = #tpu.pipeline_mode<synchronous>, transform_indices = @transform_6, window_bounds = array<i64: 1, 128>}, {transform_indices = @transform_7, window_bounds = array<i64: 1, 8, 8, 128>}, {pipeline_mode = #tpu.pipeline_mode<synchronous>, transform_indices = @transform_8, window_bounds = array<i64: 128, 128>}, {pipeline_mode = #tpu.pipeline_mode<synchronous>, transform_indices = @transform_9, window_bounds = array<i64: 1, 128>}, {transform_indices = @transform_10, window_bounds = array<i64: 1, 16, 16, 128>}]} {
    %c0 = arith.constant 0 : index
    %c0_0 = arith.constant 0 : index
    %c0_1 = arith.constant 0 : index
    %0 = vector.load %arg5[%c0, %c0_0, %c0_1] : memref<1x1x128xf32, #tpu.memory_space<vmem>>, vector<1x1x128xf32>
    %c0_2 = arith.constant 0 : index
    %c0_3 = arith.constant 0 : index
    %c0_4 = arith.constant 0 : index
    %1 = vector.load %arg6[%c0_2, %c0_3, %c0_4] : memref<1x1x128xf32, #tpu.memory_space<vmem>>, vector<1x1x128xf32>
    %c0_5 = arith.constant 0 : index
    %c0_6 = arith.constant 0 : index
    %c0_7 = arith.constant 0 : index
    %c0_8 = arith.constant 0 : index
    %2 = vector.load %arg2[%c0_5, %c0_6, %c0_7, %c0_8] : memref<1x1x16x128xbf16, #tpu.memory_space<vmem>>, vector<1x1x16x128xbf16>
    %3 = vector.shape_cast %2 : vector<1x1x16x128xbf16> to vector<1x16x128xbf16>
    %c0_9 = arith.constant 0 : index
    %c0_10 = arith.constant 0 : index
    %c0_11 = arith.constant 0 : index
    %c0_12 = arith.constant 0 : index
    %4 = vector.load %arg3[%c0_9, %c0_10, %c0_11, %c0_12] : memref<1x16x16x128xbf16, #tpu.memory_space<vmem>>, vector<1x16x16x128xbf16>
    %5 = vector.shape_cast %4 : vector<1x16x16x128xbf16> to vector<16x16x128xbf16>
    %c0_13 = arith.constant 0 : index
    %c0_14 = arith.constant 0 : index
    %c0_15 = arith.constant 0 : index
    %c0_16 = arith.constant 0 : index
    %6 = vector.load %arg4[%c0_13, %c0_14, %c0_15, %c0_16] : memref<1x1x16x128xbf16, #tpu.memory_space<vmem>>, vector<1x1x16x128xbf16>
    %7 = vector.shape_cast %6 : vector<1x1x16x128xbf16> to vector<1x16x128xbf16>
    %c0_i32 = arith.constant 0 : i32
    %8 = arith.cmpi sgt, %arg1, %c0_i32 : i32
    %9 = arith.extui %8 : i1 to i32
    %10 = arith.sitofp %9 : i32 to f32
    %c0_i32_17 = arith.constant 0 : i32
    %11 = arith.cmpi slt, %arg1, %c0_i32_17 : i32
    %12 = arith.extui %11 : i1 to i32
    %13 = arith.sitofp %12 : i32 to f32
    %14 = arith.extf %3 : vector<1x16x128xbf16> to vector<1x16x128xf32>
    %15 = vector.broadcast %0 : vector<1x1x128xf32> to vector<1x16x128xf32>
    %16 = arith.mulf %14, %15 : vector<1x16x128xf32>
    %17 = vector.broadcast %1 : vector<1x1x128xf32> to vector<1x16x128xf32>
    %18 = arith.addf %16, %17 : vector<1x16x128xf32>
    %cst = arith.constant 0.000000e+00 : f32
    %19 = vector.broadcast %cst : f32 to vector<1x16x128xf32>
    %20 = arith.maximumf %18, %19 : vector<1x16x128xf32>
    %21 = vector.broadcast %10 : f32 to vector<1x16x128xf32>
    %22 = arith.mulf %20, %21 : vector<1x16x128xf32>
    %23 = arith.extf %5 : vector<16x16x128xbf16> to vector<16x16x128xf32>
    %24 = vector.broadcast %0 : vector<1x1x128xf32> to vector<16x16x128xf32>
    %25 = arith.mulf %23, %24 : vector<16x16x128xf32>
    %26 = vector.broadcast %1 : vector<1x1x128xf32> to vector<16x16x128xf32>
    %27 = arith.addf %25, %26 : vector<16x16x128xf32>
    %cst_18 = arith.constant 0.000000e+00 : f32
    %28 = vector.broadcast %cst_18 : f32 to vector<16x16x128xf32>
    %29 = arith.maximumf %27, %28 : vector<16x16x128xf32>
    %30 = arith.extf %7 : vector<1x16x128xbf16> to vector<1x16x128xf32>
    %31 = vector.broadcast %0 : vector<1x1x128xf32> to vector<1x16x128xf32>
    %32 = arith.mulf %30, %31 : vector<1x16x128xf32>
    %33 = vector.broadcast %1 : vector<1x1x128xf32> to vector<1x16x128xf32>
    %34 = arith.addf %32, %33 : vector<1x16x128xf32>
    %cst_19 = arith.constant 0.000000e+00 : f32
    %35 = vector.broadcast %cst_19 : f32 to vector<1x16x128xf32>
    %36 = arith.maximumf %34, %35 : vector<1x16x128xf32>
    %37 = vector.broadcast %13 : f32 to vector<1x16x128xf32>
    %38 = arith.mulf %36, %37 : vector<1x16x128xf32>
    %39 = tpu.concatenate %22, %29, %38 in 0 : vector<1x16x128xf32>, vector<16x16x128xf32>, vector<1x16x128xf32> -> vector<18x16x128xf32>
    %cst_20 = arith.constant 0.000000e+00 : f32
    %40 = vector.broadcast %cst_20 : f32 to vector<18x1x128xf32>
    %41 = tpu.concatenate %40, %39, %40 in 1 : vector<18x1x128xf32>, vector<18x16x128xf32>, vector<18x1x128xf32> -> vector<18x18x128xf32>
    %42 = arith.truncf %41 : vector<18x18x128xf32> to vector<18x18x128xbf16>
    %43 = vector.extract_strided_slice %42 {offsets = [0, 0, 0], sizes = [16, 16, 128], strides = [1, 1, 1]} : vector<18x18x128xbf16> to vector<16x16x128xbf16>
    %44 = vector.shape_cast %43 : vector<16x16x128xbf16> to vector<256x128xbf16>
    %c0_21 = arith.constant 0 : index
    %c0_22 = arith.constant 0 : index
    %c0_23 = arith.constant 0 : index
    %c0_24 = arith.constant 0 : index
    %45 = vector.load %arg7[%c0_21, %c0_22, %c0_23, %c0_24] : memref<3x3x128x128xbf16, #tpu.memory_space<vmem>>, vector<1x1x128x128xbf16>
    %46 = vector.shape_cast %45 : vector<1x1x128x128xbf16> to vector<128x128xbf16>
    %cst_25 = arith.constant dense<0.000000e+00> : vector<256x128xf32>
    %47 = tpu.matmul %44, %46, %cst_25 {dimension_numbers = #tpu.dot_dimension_numbers<[1], [0], [0], [1], [0, 0, 1, 1], [], []>} : vector<256x128xbf16>, vector<128x128xbf16>, vector<256x128xf32> -> vector<256x128xf32>
    %48 = vector.extract_strided_slice %42 {offsets = [0, 1, 0], sizes = [16, 16, 128], strides = [1, 1, 1]} : vector<18x18x128xbf16> to vector<16x16x128xbf16>
    %49 = vector.shape_cast %48 : vector<16x16x128xbf16> to vector<256x128xbf16>
    %c0_26 = arith.constant 0 : index
    %c1 = arith.constant 1 : index
    %c0_27 = arith.constant 0 : index
    %c0_28 = arith.constant 0 : index
    %50 = vector.load %arg7[%c0_26, %c1, %c0_27, %c0_28] : memref<3x3x128x128xbf16, #tpu.memory_space<vmem>>, vector<1x1x128x128xbf16>
    %51 = vector.shape_cast %50 : vector<1x1x128x128xbf16> to vector<128x128xbf16>
    %cst_29 = arith.constant dense<0.000000e+00> : vector<256x128xf32>
    %52 = tpu.matmul %49, %51, %cst_29 {dimension_numbers = #tpu.dot_dimension_numbers<[1], [0], [0], [1], [0, 0, 1, 1], [], []>} : vector<256x128xbf16>, vector<128x128xbf16>, vector<256x128xf32> -> vector<256x128xf32>
    %53 = arith.addf %47, %52 : vector<256x128xf32>
    %54 = vector.extract_strided_slice %42 {offsets = [0, 2, 0], sizes = [16, 16, 128], strides = [1, 1, 1]} : vector<18x18x128xbf16> to vector<16x16x128xbf16>
    %55 = vector.shape_cast %54 : vector<16x16x128xbf16> to vector<256x128xbf16>
    %c0_30 = arith.constant 0 : index
    %c2 = arith.constant 2 : index
    %c0_31 = arith.constant 0 : index
    %c0_32 = arith.constant 0 : index
    %56 = vector.load %arg7[%c0_30, %c2, %c0_31, %c0_32] : memref<3x3x128x128xbf16, #tpu.memory_space<vmem>>, vector<1x1x128x128xbf16>
    %57 = vector.shape_cast %56 : vector<1x1x128x128xbf16> to vector<128x128xbf16>
    %cst_33 = arith.constant dense<0.000000e+00> : vector<256x128xf32>
    %58 = tpu.matmul %55, %57, %cst_33 {dimension_numbers = #tpu.dot_dimension_numbers<[1], [0], [0], [1], [0, 0, 1, 1], [], []>} : vector<256x128xbf16>, vector<128x128xbf16>, vector<256x128xf32> -> vector<256x128xf32>
    %59 = arith.addf %53, %58 : vector<256x128xf32>
    %60 = vector.extract_strided_slice %42 {offsets = [1, 0, 0], sizes = [16, 16, 128], strides = [1, 1, 1]} : vector<18x18x128xbf16> to vector<16x16x128xbf16>
    %61 = vector.shape_cast %60 : vector<16x16x128xbf16> to vector<256x128xbf16>
    %c1_34 = arith.constant 1 : index
    %c0_35 = arith.constant 0 : index
    %c0_36 = arith.constant 0 : index
    %c0_37 = arith.constant 0 : index
    %62 = vector.load %arg7[%c1_34, %c0_35, %c0_36, %c0_37] : memref<3x3x128x128xbf16, #tpu.memory_space<vmem>>, vector<1x1x128x128xbf16>
    %63 = vector.shape_cast %62 : vector<1x1x128x128xbf16> to vector<128x128xbf16>
    %cst_38 = arith.constant dense<0.000000e+00> : vector<256x128xf32>
    %64 = tpu.matmul %61, %63, %cst_38 {dimension_numbers = #tpu.dot_dimension_numbers<[1], [0], [0], [1], [0, 0, 1, 1], [], []>} : vector<256x128xbf16>, vector<128x128xbf16>, vector<256x128xf32> -> vector<256x128xf32>
    %65 = arith.addf %59, %64 : vector<256x128xf32>
    %66 = vector.extract_strided_slice %42 {offsets = [1, 1, 0], sizes = [16, 16, 128], strides = [1, 1, 1]} : vector<18x18x128xbf16> to vector<16x16x128xbf16>
    %67 = vector.shape_cast %66 : vector<16x16x128xbf16> to vector<256x128xbf16>
    %c1_39 = arith.constant 1 : index
    %c1_40 = arith.constant 1 : index
    %c0_41 = arith.constant 0 : index
    %c0_42 = arith.constant 0 : index
    %68 = vector.load %arg7[%c1_39, %c1_40, %c0_41, %c0_42] : memref<3x3x128x128xbf16, #tpu.memory_space<vmem>>, vector<1x1x128x128xbf16>
    %69 = vector.shape_cast %68 : vector<1x1x128x128xbf16> to vector<128x128xbf16>
    %cst_43 = arith.constant dense<0.000000e+00> : vector<256x128xf32>
    %70 = tpu.matmul %67, %69, %cst_43 {dimension_numbers = #tpu.dot_dimension_numbers<[1], [0], [0], [1], [0, 0, 1, 1], [], []>} : vector<256x128xbf16>, vector<128x128xbf16>, vector<256x128xf32> -> vector<256x128xf32>
    %71 = arith.addf %65, %70 : vector<256x128xf32>
    %72 = vector.extract_strided_slice %42 {offsets = [1, 2, 0], sizes = [16, 16, 128], strides = [1, 1, 1]} : vector<18x18x128xbf16> to vector<16x16x128xbf16>
    %73 = vector.shape_cast %72 : vector<16x16x128xbf16> to vector<256x128xbf16>
    %c1_44 = arith.constant 1 : index
    %c2_45 = arith.constant 2 : index
    %c0_46 = arith.constant 0 : index
    %c0_47 = arith.constant 0 : index
    %74 = vector.load %arg7[%c1_44, %c2_45, %c0_46, %c0_47] : memref<3x3x128x128xbf16, #tpu.memory_space<vmem>>, vector<1x1x128x128xbf16>
    %75 = vector.shape_cast %74 : vector<1x1x128x128xbf16> to vector<128x128xbf16>
    %cst_48 = arith.constant dense<0.000000e+00> : vector<256x128xf32>
    %76 = tpu.matmul %73, %75, %cst_48 {dimension_numbers = #tpu.dot_dimension_numbers<[1], [0], [0], [1], [0, 0, 1, 1], [], []>} : vector<256x128xbf16>, vector<128x128xbf16>, vector<256x128xf32> -> vector<256x128xf32>
    %77 = arith.addf %71, %76 : vector<256x128xf32>
    %78 = vector.extract_strided_slice %42 {offsets = [2, 0, 0], sizes = [16, 16, 128], strides = [1, 1, 1]} : vector<18x18x128xbf16> to vector<16x16x128xbf16>
    %79 = vector.shape_cast %78 : vector<16x16x128xbf16> to vector<256x128xbf16>
    %c2_49 = arith.constant 2 : index
    %c0_50 = arith.constant 0 : index
    %c0_51 = arith.constant 0 : index
    %c0_52 = arith.constant 0 : index
    %80 = vector.load %arg7[%c2_49, %c0_50, %c0_51, %c0_52] : memref<3x3x128x128xbf16, #tpu.memory_space<vmem>>, vector<1x1x128x128xbf16>
    %81 = vector.shape_cast %80 : vector<1x1x128x128xbf16> to vector<128x128xbf16>
    %cst_53 = arith.constant dense<0.000000e+00> : vector<256x128xf32>
    %82 = tpu.matmul %79, %81, %cst_53 {dimension_numbers = #tpu.dot_dimension_numbers<[1], [0], [0], [1], [0, 0, 1, 1], [], []>} : vector<256x128xbf16>, vector<128x128xbf16>, vector<256x128xf32> -> vector<256x128xf32>
    %83 = arith.addf %77, %82 : vector<256x128xf32>
    %84 = vector.extract_strided_slice %42 {offsets = [2, 1, 0], sizes = [16, 16, 128], strides = [1, 1, 1]} : vector<18x18x128xbf16> to vector<16x16x128xbf16>
    %85 = vector.shape_cast %84 : vector<16x16x128xbf16> to vector<256x128xbf16>
    %c2_54 = arith.constant 2 : index
    %c1_55 = arith.constant 1 : index
    %c0_56 = arith.constant 0 : index
    %c0_57 = arith.constant 0 : index
    %86 = vector.load %arg7[%c2_54, %c1_55, %c0_56, %c0_57] : memref<3x3x128x128xbf16, #tpu.memory_space<vmem>>, vector<1x1x128x128xbf16>
    %87 = vector.shape_cast %86 : vector<1x1x128x128xbf16> to vector<128x128xbf16>
    %cst_58 = arith.constant dense<0.000000e+00> : vector<256x128xf32>
    %88 = tpu.matmul %85, %87, %cst_58 {dimension_numbers = #tpu.dot_dimension_numbers<[1], [0], [0], [1], [0, 0, 1, 1], [], []>} : vector<256x128xbf16>, vector<128x128xbf16>, vector<256x128xf32> -> vector<256x128xf32>
    %89 = arith.addf %83, %88 : vector<256x128xf32>
    %90 = vector.extract_strided_slice %42 {offsets = [2, 2, 0], sizes = [16, 16, 128], strides = [1, 1, 1]} : vector<18x18x128xbf16> to vector<16x16x128xbf16>
    %91 = vector.shape_cast %90 : vector<16x16x128xbf16> to vector<256x128xbf16>
    %c2_59 = arith.constant 2 : index
    %c2_60 = arith.constant 2 : index
    %c0_61 = arith.constant 0 : index
    %c0_62 = arith.constant 0 : index
    %92 = vector.load %arg7[%c2_59, %c2_60, %c0_61, %c0_62] : memref<3x3x128x128xbf16, #tpu.memory_space<vmem>>, vector<1x1x128x128xbf16>
    %93 = vector.shape_cast %92 : vector<1x1x128x128xbf16> to vector<128x128xbf16>
    %cst_63 = arith.constant dense<0.000000e+00> : vector<256x128xf32>
    %94 = tpu.matmul %91, %93, %cst_63 {dimension_numbers = #tpu.dot_dimension_numbers<[1], [0], [0], [1], [0, 0, 1, 1], [], []>} : vector<256x128xbf16>, vector<128x128xbf16>, vector<256x128xf32> -> vector<256x128xf32>
    %95 = arith.addf %89, %94 : vector<256x128xf32>
    %c0_64 = arith.constant 0 : index
    %c0_65 = arith.constant 0 : index
    %96 = vector.load %arg8[%c0_64, %c0_65] : memref<1x128xf32, #tpu.memory_space<vmem>>, vector<1x128xf32>
    %97 = vector.broadcast %96 : vector<1x128xf32> to vector<256x128xf32>
    %98 = arith.addf %95, %97 : vector<256x128xf32>
    %99 = vector.shape_cast %98 : vector<256x128xf32> to vector<16x16x128xf32>
    %c0_66 = arith.constant 0 : index
    %c0_67 = arith.constant 0 : index
    %c0_68 = arith.constant 0 : index
    %c0_69 = arith.constant 0 : index
    %100 = vector.load %arg9[%c0_66, %c0_67, %c0_68, %c0_69] : memref<1x8x8x128xbf16, #tpu.memory_space<vmem>>, vector<1x8x8x128xbf16>
    %101 = vector.shape_cast %100 : vector<1x8x8x128xbf16> to vector<8x8x128xbf16>
    %102 = vector.shape_cast %101 : vector<8x8x128xbf16> to vector<64x128xbf16>
    %c0_70 = arith.constant 0 : index
    %c0_71 = arith.constant 0 : index
    %103 = vector.load %arg10[%c0_70, %c0_71] : memref<128x128xbf16, #tpu.memory_space<vmem>>, vector<128x128xbf16>
    %cst_72 = arith.constant dense<0.000000e+00> : vector<64x128xf32>
    %104 = tpu.matmul %102, %103, %cst_72 {dimension_numbers = #tpu.dot_dimension_numbers<[1], [0], [0], [1], [0, 0, 1, 1], [], []>} : vector<64x128xbf16>, vector<128x128xbf16>, vector<64x128xf32> -> vector<64x128xf32>
    %c0_73 = arith.constant 0 : index
    %c0_74 = arith.constant 0 : index
    %105 = vector.load %arg11[%c0_73, %c0_74] : memref<1x128xf32, #tpu.memory_space<vmem>>, vector<1x128xf32>
    %106 = vector.broadcast %105 : vector<1x128xf32> to vector<64x128xf32>
    %107 = arith.addf %104, %106 : vector<64x128xf32>
    %108 = vector.shape_cast %107 : vector<64x128xf32> to vector<8x8x128xf32>
    %109 = vector.shape_cast %108 : vector<8x8x128xf32> to vector<8x1x8x128xf32>
    %110 = vector.shape_cast %109 : vector<8x1x8x128xf32> to vector<8x1x8x128xf32>
    %111 = vector.broadcast %110 : vector<8x1x8x128xf32> to vector<8x2x8x128xf32>
    %112 = vector.shape_cast %111 : vector<8x2x8x128xf32> to vector<16x8x128xf32>
    %113 = vector.shape_cast %112 : vector<16x8x128xf32> to vector<16x8x1x128xf32>
    %114 = vector.shape_cast %113 : vector<16x8x1x128xf32> to vector<16x8x1x128xf32>
    %115 = vector.broadcast %114 : vector<16x8x1x128xf32> to vector<16x8x2x128xf32>
    %116 = vector.shape_cast %115 : vector<16x8x2x128xf32> to vector<16x16x128xf32>
    %117 = arith.addf %99, %116 : vector<16x16x128xf32>
    %118 = vector.shape_cast %117 : vector<16x16x128xf32> to vector<1x16x16x128xf32>
    %119 = arith.truncf %118 : vector<1x16x16x128xf32> to vector<1x16x16x128xbf16>
    %c0_75 = arith.constant 0 : index
    %c0_76 = arith.constant 0 : index
    %c0_77 = arith.constant 0 : index
    %c0_78 = arith.constant 0 : index
    %120 = vector.load %arg12[%c0_75, %c0_76, %c0_77, %c0_78] : memref<1x16x16x128xbf16, #tpu.memory_space<vmem>>, vector<1x16x16x128xbf16>
    tpu.vector_store %arg12[%c0_75, %c0_76, %c0_77, %c0_78], %119 {strides = array<i32>} : memref<1x16x16x128xbf16, #tpu.memory_space<vmem>>, vector<1x16x16x128xbf16>,
    return
  }
  func.func @transform_0(%arg0: i32, %arg1: i32) -> (i32, i32, i32, i32) {
    %c16_i32 = arith.constant 16 : i32
    %0 = arith.muli %arg1, %c16_i32 : i32
    %c1_i32 = arith.constant 1 : i32
    %1 = arith.subi %0, %c1_i32 : i32
    %c0_i32 = arith.constant 0 : i32
    %2 = arith.maxsi %1, %c0_i32 : i32
    %c0_i32_0 = arith.constant 0 : i32
    %c0_i32_1 = arith.constant 0 : i32
    %c0_i32_2 = arith.constant 0 : i32
    return %arg0, %2, %c0_i32_0, %c0_i32_1 : i32, i32, i32, i32
  }
  func.func @transform_1(%arg0: i32, %arg1: i32) -> (i32, i32, i32, i32) {
    %c0_i32 = arith.constant 0 : i32
    %c0_i32_0 = arith.constant 0 : i32
    %c0_i32_1 = arith.constant 0 : i32
    return %arg0, %arg1, %c0_i32, %c0_i32_0 : i32, i32, i32, i32
  }
  func.func @transform_2(%arg0: i32, %arg1: i32) -> (i32, i32, i32, i32) {
    %c16_i32 = arith.constant 16 : i32
    %0 = arith.muli %arg1, %c16_i32 : i32
    %c16_i32_0 = arith.constant 16 : i32
    %1 = arith.addi %0, %c16_i32_0 : i32
    %c15_i32 = arith.constant 15 : i32
    %2 = arith.minsi %1, %c15_i32 : i32
    %c0_i32 = arith.constant 0 : i32
    %c0_i32_1 = arith.constant 0 : i32
    %c0_i32_2 = arith.constant 0 : i32
    return %arg0, %2, %c0_i32, %c0_i32_1 : i32, i32, i32, i32
  }
  func.func @transform_3(%arg0: i32, %arg1: i32) -> (i32, i32, i32) {
    %c0_i32 = arith.constant 0 : i32
    %c0_i32_0 = arith.constant 0 : i32
    %c0_i32_1 = arith.constant 0 : i32
    return %arg0, %c0_i32, %c0_i32_0 : i32, i32, i32
  }
  func.func @transform_4(%arg0: i32, %arg1: i32) -> (i32, i32, i32) {
    %c0_i32 = arith.constant 0 : i32
    %c0_i32_0 = arith.constant 0 : i32
    %c0_i32_1 = arith.constant 0 : i32
    return %arg0, %c0_i32, %c0_i32_0 : i32, i32, i32
  }
  func.func @transform_5(%arg0: i32, %arg1: i32) -> (i32, i32, i32, i32) {
    %c0_i32 = arith.constant 0 : i32
    %c0_i32_0 = arith.constant 0 : i32
    %c0_i32_1 = arith.constant 0 : i32
    %c0_i32_2 = arith.constant 0 : i32
    %c0_i32_3 = arith.constant 0 : i32
    return %c0_i32, %c0_i32_0, %c0_i32_1, %c0_i32_2 : i32, i32, i32, i32
  }
  func.func @transform_6(%arg0: i32, %arg1: i32) -> (i32, i32) {
    %c0_i32 = arith.constant 0 : i32
    %c0_i32_0 = arith.constant 0 : i32
    %c0_i32_1 = arith.constant 0 : i32
    return %c0_i32, %c0_i32_0 : i32, i32
  }
  func.func @transform_7(%arg0: i32, %arg1: i32) -> (i32, i32, i32, i32) {
    %c0_i32 = arith.constant 0 : i32
    %c0_i32_0 = arith.constant 0 : i32
    %c0_i32_1 = arith.constant 0 : i32
    return %arg0, %arg1, %c0_i32, %c0_i32_0 : i32, i32, i32, i32
  }
  func.func @transform_8(%arg0: i32, %arg1: i32) -> (i32, i32) {
    %c0_i32 = arith.constant 0 : i32
    %c0_i32_0 = arith.constant 0 : i32
    %c0_i32_1 = arith.constant 0 : i32
    return %c0_i32, %c0_i32_0 : i32, i32
  }
  func.func @transform_9(%arg0: i32, %arg1: i32) -> (i32, i32) {
    %c0_i32 = arith.constant 0 : i32
    %c0_i32_0 = arith.constant 0 : i32
    %c0_i32_1 = arith.constant 0 : i32
    return %c0_i32, %c0_i32_0 : i32, i32
  }
  func.func @transform_10(%arg0: i32, %arg1: i32) -> (i32, i32, i32, i32) {
    %c0_i32 = arith.constant 0 : i32
    %c0_i32_0 = arith.constant 0 : i32
    %c0_i32_1 = arith.constant 0 : i32
    return %arg0, %arg1, %c0_i32, %c0_i32_0 : i32, i32, i32, i32
  }
}

</mosaic_0001>

<bundles_post_ra>
// kernel: gblock_forward.2
= control target key start
LH: loop header
LB: loop body
LE: loop exit
PB: predicated region body
PF: predicated region fallthrough
CT: control target
= control target key end

     0   :  { %s6562_s30 = smov 0   ;;  %s6564_s10 = smov 0   ;;  %s7734_s0 = inlined_call_operand.vmem [shape: bf16[2,8,8,128], index: 0, kind: input, shape index: {}, may-alias: {0,1,2}]   ;;  %s7735_s1 = inlined_call_operand.vmem [shape: bf16[2,8,8,128], index: 1, kind: input, shape index: {}, may-alias: {0,1,2}]   ;;  %s7736_s2 = inlined_call_operand.vmem [shape: bf16[2,8,8,128], index: 2, kind: input, shape index: {}, may-alias: {0,1,2}]   ;;  %s7737_s3 = inlined_call_operand.vmem [shape: f32[2,1,128], index: 3, kind: input, shape index: {}]   ;;  %s7738_s4 = inlined_call_operand.vmem [shape: f32[2,1,128], index: 4, kind: input, shape index: {}]   ;;  %s7739_s5 = inlined_call_operand.vmem [shape: bf16[3,3,128,128], index: 5, kind: input, shape index: {}]   ;;  %s7740_s6 = inlined_call_operand.vmem [shape: f32[1,128], index: 6, kind: input, shape index: {}]   ;;  %s7741_s7 = inlined_call_operand.vmem [shape: bf16[2,16,16,128], index: 7, kind: output, shape index: {0}]   ;;  %s7742_s8 = inlined_call_operand.vmem [shape: f32[2,1,1,128], index: 8, kind: output, shape index: {1}]   ;;  %s7743_s9 = inlined_call_operand.vmem [shape: f32[2,1,1,128], index: 9, kind: output, shape index: {2}]  }
   0x1   :  { %s6566_s11 = smov 0  }
   0x2 LB: > { %s32_s12 = sadd.s32 1, %s6503_s10  ;;  %p4866_p0 = scmp.ge.s32.totalorder %s6507_s11, 1  ;;  %s6507_s11 = sphi %s6566_s11, %s20_s11   ;;  %s6503_s10 = sphi %s6564_s10, %s7747_s10   ;;  %s6499_s30 = sphi %s6562_s30, %s7746_s30  }
   0x3   : > { %p34_p1 = scmp.ge.s32.totalorder %s32_s12, 2  ;;  %p395_p2 = scmp.lt.s32.totalorder %s6507_s11, 3 }
   0x5   : > { %s7749_s12 = smov (%p34_p1, %s32_s12), 0  ;;  %p396_p3 = pnand %p4866_p0, %p395_p2 }
   0x6   : > { %v6403_v0 = vld [vmem:[%s7739_s5 + $0x100] sm:$0xff] (!%p396_p3)   ;;  %v6405_v2 = vld [vmem:[%s7739_s5 + $0x108] sm:$0xff] (!%p396_p3)   ;;  %p486_p4 = scmp.lt.s32.totalorder (!%p396_p3), %s6499_s30, 1  ;;  %v6407_v4 = vld [vmem:[%s7739_s5 + $0x110] sm:$0xff] (!%p396_p3)   ;;  %v642_v10 = vlaneseq (!%p396_p3)  ;;  %v6509_v18 = vmov (!%p396_p3), 1966171168  }
   0x7   : > { %399 = sbr.rel (%p396_p3) target bundleno = 619 (0x26b), region = 48  ;;  %v6404_v1 = vld [vmem:[%s7739_s5 + $0x40] sm:$0xff] (!%p396_p3)   ;;  %5864 = vmatprep.subr.bf16.mxu0 (!%p396_p3), %v6403_v0  ;;  %v6406_v3 = vld [vmem:[%s7739_s5 + $0x48] sm:$0xff] (!%p396_p3)   ;;  %v6408_v5 = vld [vmem:[%s7739_s5 + $0x50] sm:$0xff] (!%p396_p3)   ;;  %v640_v19 = vunpack.c.l.s4 (!%p396_p3), %v6509_v18  ;;  %v6510_v21 = vmov (!%p396_p3), 1983009808  }
   0x8   : > { %5672 = vmatprep.subr.bf16.mxu1 (!%p396_p3), %v6404_v1  ;;  %5865 = vmatpush3.bf16.msra.mxu0 (!%p396_p3), %v6403_v0  ;;  %v6409_v6 = vld [vmem:[%s7739_s5 + $0x118] sm:$0xff] (!%p396_p3)   ;;  %v6411_v8 = vld [vmem:[%s7739_s5 + $0x120] sm:$0xff] (!%p396_p3)   ;;  %v6413_v11 = vld [vmem:[%s7739_s5 + $0x128] sm:$0xff] (!%p396_p3)   ;;  %v643_v20 = vshrl.u32 (!%p396_p3), %v642_v10, 7  ;;  %v1451_v22 = vunpack.c.l.s4 (!%p396_p3), %v6510_v21  ;;  %vm1788_vm0 = vcmask (!%p396_p3), 1040384   ;;  %vm2476_vm2 = vcmask (!%p396_p3), 1046528  }
   0x9   : > { %5673 = vmatpush3.bf16.msra.mxu1 (!%p396_p3), %v6404_v1  ;;  %5866 = vmatprep.subr.bf16.mxu0 (!%p396_p3), %v6405_v2  ;;  %v6410_v7 = vld [vmem:[%s7739_s5 + $0x58] sm:$0xff] (!%p396_p3)   ;;  %v6412_v9 = vld [vmem:[%s7739_s5 + $0x60] sm:$0xff] (!%p396_p3)   ;;  %v6414_v12 = vld [vmem:[%s7739_s5 + $0x68] sm:$0xff] (!%p396_p3)   ;;  %v641_v27 = vunpack.c.0.s8 (!%p396_p3), %v640_v19  ;;  %vm1905_vm1 = vsmask.f32 (!%p396_p3), 7424  ;;  %vm6511_vm4 = vmmov (!%p396_p3), 1  }
   0xa   : > { %5674 = vmatprep.subr.bf16.mxu1 (!%p396_p3), %v6406_v3  ;;  %v6415_v26 = vld [vmem:[%s7739_s5 + $0x130] sm:$0xff] (!%p396_p3)   ;;  %v1452_v33 = vunpack.c.0.s8 (!%p396_p3), %v1451_v22  ;;  %v6417_v37 = vld [vmem:[%s7739_s5 + $0x138] sm:$0xff] (!%p396_p3)   ;;  %v6677_v45 = vsub.s32 (!%p396_p3), 0, %v643_v20  ;;  %v6690_v53 = vld [vmem:[%s7739_s5 + $0x140] sm:$0xff] (!%p396_p3)  }
   0xb   : > { %v6416_v29 = vld [vmem:[%s7739_s5 + $0x70] sm:$0xff] (!%p396_p3)   ;;  %v6660_v32 = vsub.s32 (!%p396_p3), %v641_v27, %v643_v20  ;;  %v6418_v40 = vld [vmem:[%s7739_s5 + $0x78] sm:$0xff] (!%p396_p3)   ;;  %v6706_v62 = vld [vmem:[%s7739_s5] sm:$0xff] (!%p396_p3)  }
   0xc   : > { %5867 = vmatpush3.bf16.msra.mxu0 (!%p396_p3), %v6405_v2  ;;  %v6679_v46 = vsub.s32 (!%p396_p3), %v1452_v33, %v643_v20  ;;  %vm4909_vm3 = vmneg (!%p396_p3), %vm1788_vm0 }
   0xd   : > { %5675 = vmatpush3.bf16.msra.mxu1 (!%p396_p3), %v6406_v3  ;;  %5868 = vmatprep.subr.bf16.mxu0 (!%p396_p3), %v6407_v4  ;;  %vm7250_vm5 = vmpackc.low (!%p396_p3), %vm6511_vm4, %vm4909_vm3 }
   0xe   : > { %s7751_s30 = smov (!%p486_p4, %s6499_s30), 1  ;;  %5676 = vmatprep.subr.bf16.mxu1 %v6408_v5 }
   0xf   : > { %s6607_s29 = sshll.u32 %s7751_s30, 5  ;;  %s6625_s22 = scalar_lea.vmem %s7737_s3, %s7751_s30 }
  0x10   : > { %5869 = vmatpush3.bf16.msra.mxu0 %v6407_v4  ;;  %s6619_s19 = scalar_lea.vmem %s7735_s1, %s6607_s29  ;;  %s6634_s27 = scalar_lea.vmem %s7738_s4, %s7751_s30  ;;  %v6640_v13 = vld [vmem:[%s6625_s22] ss:$0 sm:$0xff] }
  0x11   : > { %5677 = vmatpush3.bf16.msra.mxu1 %v6408_v5  ;;  %5870 = vmatprep.subr.bf16.mxu0 %v6409_v6  ;;  %v5342_v14 = vld [vmem:[%s6619_s19] sm:$0xff]   ;;  %s493_s16 = scalar_lea.vmem %s7734_s0, %s6607_s29  ;;  %v6668_v39 = vld [vmem:[%s6619_s19 + $0x8] sm:$0xff]   ;;  %s5307_s21 = sadd.s32 28, %s6607_s29 }
  0x12   : > { %5678 = vmatprep.subr.bf16.mxu1 %v6410_v7  ;;  %v5343_v15 = vunpack.c.l.bf16 %v5342_v14  ;;  %v5344_v16 = vunpack.c.h.bf16 %v5342_v14  ;;  %v6648_v17 = vld [vmem:[%s6634_s27] ss:$0 sm:$0xff]  ;;  %v5347_v48 = vunpack.c.l.bf16 %v6668_v39  ;;  %v5348_v10 = vunpack.c.h.bf16 %v6668_v39  ;;  %v6423_v39 = vld [vmem:[%s7739_s5 + $0x8] sm:$0xff]   ;;  %s519_s25 = scalar_lea.vmem %s7736_s2, %s5307_s21  ;;  %s5308_s17 = sshll.u32 %s7751_s30, 7 }
  0x13   : > { %v556_v24 = vld [vmem:[%s493_s16] sm:$0xf]  ;;  %s7652_s21 = scalar_lea.vmem %s7741_s7, %s5308_s17  ;;  %s552_s28 = scalar_lea.vmem %s7743_s9, %s7751_s30 }
  0x14   : > { %5871 = vmatpush3.bf16.msra.mxu0 %v6409_v6  ;;  %v598_v23 = vmul.f32 %v5343_v15, %v6640_v13  ;;  %v599_v25 = vmul.f32 %v5344_v16, %v6640_v13  ;;  %v572_v28 = vunpack.c.l.bf16 %v556_v24  ;;  %v6699_v57 = vmul.f32 %v5347_v48, %v6640_v13 }
  0x15   : > { %5679 = vmatpush3.bf16.msra.mxu1 %v6410_v7  ;;  %5872 = vmatprep.subr.bf16.mxu0 %v6411_v8 }
  0x16   : > { %5680 = vmatprep.subr.bf16.mxu1 %v6412_v9  ;;  %v606_v30 = vadd.f32 %v6648_v17, %v598_v23  ;;  %v607_v31 = vadd.f32 %v6648_v17, %v599_v25  ;;  %v579_v34 = vmul.f32 %v6640_v13, %v572_v28 }
  0x18   : > { %5873 = vmatpush3.bf16.msra.mxu0 %v6411_v8  ;;  %v614_v35 = vmax.f32 %v606_v30, 0.0  ;;  %v615_v36 = vmax.f32 %v607_v31, 0.0  ;;  %v586_v38 = vadd.f32 %v6648_v17, %v579_v34 }
  0x19   : > { %5681 = vmatpush3.bf16.msra.mxu1 %v6412_v9  ;;  %5874 = vmatprep.subr.bf16.mxu0 %v6413_v11 }
  0x1a   : > { %5682 = vmatprep.subr.bf16.mxu1 %v6414_v12  ;;  %v687_v41 = vcombine.high %v614_v35, %v614_v35  ;;  %v694_v42 = vrot.slane %v614_v35, %v6660_v32  ;;  %v736_v43 = vcombine.high %v615_v36, %v615_v36  ;;  %v6675_v44 = vrot.slane %v615_v36, %v6660_v32 }
  0x1b   : > { %v587_v47 = vmax.f32 %v586_v38, 0.0 }
  0x1c   : > { %5875 = vmatpush3.bf16.msra.mxu0 %v6413_v11  ;;  %v701_v49 = vrot.slane %v687_v41, %v6660_v32  ;;  %v702_v50 = vcombine.high %v694_v42, %v694_v42  ;;  %v710_v51 = vrot.slane %v694_v42, %v6660_v32  ;;  %v6685_v52 = vrot.slane %v736_v43, %v6660_v32 }
  0x1d   : > { %5683 = vmatpush3.bf16.msra.mxu1 %v6414_v12  ;;  %5876 = vmatprep.subr.bf16.mxu0 %v6415_v26  ;;  %v589_v54 = vmul.f32 0.0, %v587_v47  ;;  %v751_v55 = vcombine.high %v6675_v44, %v6675_v44  ;;  %v6696_v56 = vrot.slane %v6675_v44, %v6660_v32 }
  0x1e   : > { %5684 = vmatprep.subr.bf16.mxu1 %v6416_v29  ;;  %v703_v58 = vcombine.high %v701_v49, %v701_v49  ;;  %v717_v59 = vrot.slane %v701_v49, %v6660_v32  ;;  %v724_v60 = vrot.slane %v702_v50, %v6660_v32  ;;  %v732_v61 = vcombine.high %v710_v51, %v710_v51 }
  0x1f   : > { %v1163_v63 = vrot.slane %v710_v51, %v6677_v45  ;;  %v638_v0 = vcombine.high %v589_v54, %v589_v54  ;;  %v645_v1 = vrot.slane %v589_v54, %v6660_v32  ;;  %v752_v2 = vcombine.high %v6685_v52, %v6685_v52 }
  0x20   : > { %5877 = vmatpush3.bf16.msra.mxu0 %v6415_v26  ;;  %v731_v3 = vrot.slane %v703_v58, %v6660_v32  ;;  %v733_v4 = vcombine.high %v717_v59, %v717_v59  ;;  %v734_v5 = vcombine.high %v724_v60, %v724_v60  ;;  %v1167_v6 = vrot.slane %v724_v60, %v6677_v45 }
  0x21   : > { %5685 = vmatpush3.bf16.msra.mxu1 %v6416_v29  ;;  %5878 = vmatprep.subr.bf16.mxu0 %v6417_v37  ;;  %v1171_v7 = vrot.slane %v732_v61, %v6677_v45  ;;  %v1179_v8 = vrot.slane %v717_v59, %v6677_v45  ;;  %v652_v9 = vrot.slane %v638_v0, %v6660_v32 }
  0x22   : > { %5686 = vmatprep.subr.bf16.mxu1 %v6418_v40  ;;  %v735_v11 = vcombine.high %v731_v3, %v731_v3  ;;  %v1175_v12 = vrot.slane %v734_v5, %v6677_v45  ;;  %v1183_v14 = vrot.slane %v731_v3, %v6677_v45  ;;  %v1187_v15 = vrot.slane %v733_v4, %v6677_v45 }
  0x23   : > { %v1482_v16 = vcombine.low %v1163_v63, %v1167_v6  ;;  %v653_v18 = vcombine.high %v645_v1, %v645_v1  ;;  %v654_v19 = vcombine.high %v652_v9, %v652_v9  ;;  %v661_v20 = vrot.slane %v645_v1, %v6660_v32 }
  0x24   : > { %5879 = vmatpush3.bf16.msra.mxu0 %v6417_v37  ;;  %v1191_v21 = vrot.slane %v735_v11, %v6677_v45  ;;  %v1483_v22 = vcombine.low %v1171_v7, %v1175_v12  ;;  %v1499_v23 = vcombine.low %v1179_v8, %v1183_v14  ;;  %v668_v24 = vrot.slane %v652_v9, %v6660_v32 }
  0x25   : > { %5687 = vmatpush3.bf16.msra.mxu1 %v6418_v40  ;;  %5912 = vmatprep.subr.bf16.mxu0 %v6690_v53  ;;  %v1490_v25 = vrot.slane %v1482_v16, %v6679_v46  ;;  %v675_v26 = vrot.slane %v653_v18, %v6660_v32  ;;  %v682_v27 = vrot.slane %v654_v19, %v6660_v32 }
  0x26   : > { %5720 = vmatprep.subr.bf16.mxu1 %v6706_v62  ;;  %v683_v28 = vcombine.high %v661_v20, %v661_v20  ;;  %v1497_v29 = vrot.slane %v1483_v22, %v6679_v46  ;;  %v1500_v30 = vcombine.low %v1187_v15, %v1191_v21  ;;  %v1507_v31 = vrot.slane %v1499_v23, %v6679_v46 }
  0x27   : > { %v684_v33 = vcombine.high %v668_v24, %v668_v24  ;;  %v685_v34 = vcombine.high %v675_v26, %v675_v26  ;;  %v686_v35 = vcombine.high %v682_v27, %v682_v27  ;;  %v1131_v36 = vrot.slane %v661_v20, %v6677_v45 }
  0x28   : > { %v1135_v37 = vrot.slane %v675_v26, %v6677_v45  ;;  %v1498_v38 = vcombine.low %v1490_v25, %v1497_v29  ;;  %v1514_v40 = vrot.slane %v1500_v30, %v6679_v46  ;;  %v1139_v41 = vrot.slane %v683_v28, %v6677_v45 }
  0x29   : > { %v1147_v42 = vrot.slane %v668_v24, %v6677_v45  ;;  %v1143_v43 = vrot.slane %v685_v34, %v6677_v45  ;;  %v1151_v47 = vrot.slane %v682_v27, %v6677_v45  ;;  %v1155_v48 = vrot.slane %v684_v33, %v6677_v45 }
  0x2a   : > { %v1159_v49 = vrot.slane %v686_v35, %v6677_v45  ;;  %v1515_v50 = vcombine.low %v1507_v31, %v1514_v40  ;;  %v6740_v51 = vrot.slane %v1498_v38, 7  ;;  %v1448_v54 = vcombine.low %v1131_v36, %v1135_v37 }
  0x2b   : > { %v766_v58 = vrot.slane %v6685_v52, %v6660_v32  ;;  %v1449_v59 = vcombine.low %v1139_v41, %v1143_v43  ;;  %v1465_v60 = vcombine.low %v1147_v42, %v1151_v47  ;;  %v773_v63 = vrot.slane %v751_v55, %v6660_v32 }
  0x2c   : > { %v1466_v61 = vcombine.low %v1155_v48, %v1159_v49  ;;  %v1793_v0 = vrot.slane %v1515_v50, 7  ;;  %v1850_v1 = vsel %vm1788_vm0, 0.0, %v6740_v51  ;;  %v1456_v3 = vrot.slane %v1448_v54, %v6679_v46 }
  0x2d   : > { %v780_v4 = vrot.slane %v752_v2, %v6660_v32  ;;  %v1463_v5 = vrot.slane %v1449_v59, %v6679_v46  ;;  %v1473_v52 = vrot.slane %v1465_v60, %v6679_v46  ;;  %v781_v7 = vcombine.high %v6696_v56, %v6696_v56 }
  0x2e   : > { %v1480_v6 = vrot.slane %v1466_v61, %v6679_v46  ;;  %v6759_v44 = vsel %vm1788_vm0, %v6740_v51, %v1793_v0  ;;  %v1860_v55 = vsel %vm1788_vm0, %v1793_v0, 0.0  ;;  %v782_v8 = vcombine.high %v766_v58, %v766_v58 }
  0x2f   : > { %v783_v9 = vcombine.high %v773_v63, %v773_v63  ;;  %v6763_v11 = vpack.c.bf16 %v6759_v44, %v1850_v1  ;;  %v6765_v2 = vpack.c.bf16 %v1860_v55, %v1860_v55  ;;  %v1464_v12 = vcombine.low %v1456_v3, %v1463_v5  ;;  %v6422_v55 = vld [vmem:[%s7739_s5 + $0x150] sm:$0xff]  }
  0x30   : > { %v1481_v14 = vcombine.low %v1473_v52, %v1480_v6  ;;  %v784_v15 = vcombine.high %v780_v4, %v780_v4  ;;  %v1195_v16 = vrot.slane %v6696_v56, %v6677_v45  ;;  %v1199_v18 = vrot.slane %v773_v63, %v6677_v45 }
  0x31   : > { %v1203_v19 = vrot.slane %v781_v7, %v6677_v45  ;;  %v1919_v20 = vshrl.u32 %v6763_v11, 16  ;;  %v1921_v21 = vshll.u32 %v6763_v11, 16  ;;  %v1926_v22 = vshll.u32 %v6765_v2, 16 }
  0x32   : > { %v6774_v23 = vrot.slane %v1464_v12, 7  ;;  %v1790_v24 = vrot.slane %v1481_v14, 7  ;;  %v1207_v25 = vrot.slane %v783_v9, %v6677_v45  ;;  %v1211_v26 = vrot.slane %v766_v58, %v6677_v45  ;;  %v6421_v58 = vld [vmem:[%s7739_s5 + $0x148] sm:$0xff]  }
  0x33   : > { %v1215_v27 = vrot.slane %v780_v4, %v6677_v45  ;;  %v1923_v56 = vrot.slane %v1921_v21, 1  ;;  %v1928_v28 = vrot.slane %v1926_v22, 1  ;;  %v1219_v30 = vrot.slane %v782_v8, %v6677_v45 }
  0x34   : > { %v1849_v29 = vsel %vm1788_vm0, 0.0, %v6774_v23  ;;  %v6784_v31 = vsel %vm1788_vm0, %v6774_v23, %v1790_v24  ;;  %v1859_v33 = vsel %vm1788_vm0, %v1790_v24, 0.0  ;;  %v1223_v34 = vrot.slane %v784_v15, %v6677_v45  ;;  %v6424_v15 = vld [vmem:[%s7739_s5 + $0x158] sm:$0xff]  }
  0x35   : > { %v1516_v35 = vcombine.low %v1195_v16, %v1199_v18  ;;  %v1924_v36 = vor.u32 %v1923_v56, %v1919_v20  ;;  %v6789_v37 = vpack.c.bf16 %v6784_v31, %v1849_v29  ;;  %v6791_v38 = vpack.c.bf16 %v1859_v33, %v1859_v33  ;;  %v6836_v20 = vld [vmem:[%s6619_s19 + $0x10] sm:$0xff]  }
  0x36   : > { %v1517_v40 = vcombine.low %v1203_v19, %v1207_v25  ;;  %v1533_v42 = vcombine.low %v1211_v26, %v1215_v27  ;;  %v1534_v43 = vcombine.low %v1219_v30, %v1223_v34  ;;  %v608_v47 = vadd.f32 %v6648_v17, %v6699_v57 }
  0x37   : > { %v1524_v41 = vrot.slane %v1516_v35, %v6679_v46  ;;  %v6797_v48 = vsel %vm1905_vm1, %v1924_v36, %v1928_v28  ;;  %v1907_v49 = vshrl.u32 %v6789_v37, 16  ;;  %v1909_v50 = vshll.u32 %v6789_v37, 16 }
  0x38   : > { %v1914_v54 = vshll.u32 %v6791_v38, 16  ;;  %5880 = vmatprep.mubr.bf16.mxu0 %v6797_v48  ;;  %v1531_v59 = vrot.slane %v1517_v40, %v6679_v46  ;;  %v1541_v60 = vrot.slane %v1533_v42, %v6679_v46  ;;  %v1548_v57 = vrot.slane %v1534_v43, %v6679_v46 }
  0x39   : > { %v616_v61 = vmax.f32 %v608_v47, 0.0  ;;  %5881 = vmatmul.mubr.bf16.vlgmr.msra.gmra.mrb[0].mxu0 %v6797_v48  ;;  %v1911_v63 = vrot.slane %v1909_v50, 1  ;;  %v601_v1 = vmul.f32 %v5348_v10, %v6640_v13  ;;  %v2480_v3 = vrot.slane %v6763_v11, 1 }
  0x3a   : > { %v1916_v0 = vrot.slane %v1914_v54, 1  ;;  %5913 = vmatpush3.bf16.msra.mxu0 %v6690_v53  ;;  %v1532_v4 = vcombine.low %v1524_v41, %v1531_v59  ;;  %v1549_v5 = vcombine.low %v1541_v60, %v1548_v57  ;;  %v2481_v53 = vrot.slane %v6765_v2, 1 }
  0x3b   : > { %v785_v52 = vcombine.high %v616_v61, %v616_v61  ;;  %v792_v6 = vrot.slane %v616_v61, %v6660_v32  ;;  %v1912_v7 = vor.u32 %v1911_v63, %v1907_v49  ;;  %5914 = vmatprep.subr.bf16.mxu0 %v6421_v58  ;;  %v609_v10 = vadd.f32 %v6648_v17, %v601_v1  ;;  %v6427_v1 = vld [vmem:[%s7739_s5 + $0x168] sm:$0xff]  }
  0x3c   : > { %v6824_v8 = vrot.slane %v1532_v4, 7  ;;  %v1796_v9 = vrot.slane %v1549_v5, 7  ;;  %v6833_v19 = vsel %vm2476_vm2, %v2480_v3, %v2481_v53  ;;  %v5351_v30 = vunpack.c.l.bf16 %v6836_v20  ;;  %v6879_v5 = vld [vmem:[%s6619_s19 + $0x18] sm:$0xff]  }
  0x3d   : > { %v799_v11 = vrot.slane %v785_v52, %v6660_v32  ;;  %v800_v12 = vcombine.high %v792_v6, %v792_v6  ;;  %v1917_v14 = vsel %vm1905_vm1, %v1912_v7, %v1916_v0  ;;  %v808_v16 = vrot.slane %v792_v6, %v6660_v32 }
  0x3e   : > { %v617_v18 = vmax.f32 %v609_v10, 0.0  ;;  %5688 = vmatprep.mubr.bf16.mxu1 %v1917_v14  ;;  %5915 = vmatpush3.bf16.msra.mxu0 %v6421_v58  ;;  %v6840_v2 = vsel %vm1788_vm0, %v6824_v8, %v1796_v9  ;;  %v1851_v21 = vsel %vm1788_vm0, 0.0, %v6824_v8  ;;  %v1861_v22 = vsel %vm1788_vm0, %v1796_v9, 0.0  ;;  %v6425_v58 = vld [vmem:[%s7739_s5 + $0x160] sm:$0xff]  }
  0x3f   : > { %v801_v24 = vcombine.high %v799_v11, %v799_v11  ;;  %5689 = vmatmul.mubr.bf16.vlgmr.msra.gmra.mrb[0].mxu1 %v6797_v48  ;;  %v6847_v25 = vpack.c.bf16 %v6840_v2, %v1851_v21  ;;  %v6849_v26 = vpack.c.bf16 %v1861_v22, %v1861_v22  ;;  %5916 = vmatprep.subr.bf16.mxu0 %v6422_v55  ;;  %v5352_v22 = vunpack.c.h.bf16 %v6836_v20 }
  0x40   : > { %v815_v27 = vrot.slane %v799_v11, %v6660_v32  ;;  %5721 = vmatpush3.bf16.msra.mxu1 %v6706_v62  ;;  %5692 = vmatprep.mubr.bf16.mxu1 %v6797_v48  ;;  %v822_v56 = vrot.slane %v800_v12, %v6660_v32  ;;  %v830_v29 = vcombine.high %v808_v16, %v808_v16  ;;  %v6426_v62 = vld [vmem:[%s7739_s5 + $0x10] sm:$0xff]  }
  0x41   : > { %v829_v28 = vrot.slane %v801_v24, %v6660_v32  ;;  %v1931_v33 = vshrl.u32 %v6847_v25, 16  ;;  %v1933_v34 = vshll.u32 %v6847_v25, 16  ;;  %v1938_v35 = vshll.u32 %v6849_v26, 16  ;;  %5722 = vmatprep.subr.bf16.mxu1 %v6423_v39 }
  0x42   : > { %v831_v36 = vcombine.high %v815_v27, %v815_v27  ;;  %5917 = vmatpush3.bf16.msra.mxu0 %v6422_v55  ;;  %v832_v40 = vcombine.high %v822_v56, %v822_v56  ;;  %v1227_v42 = vrot.slane %v808_v16, %v6677_v45  ;;  %v1231_v43 = vrot.slane %v822_v56, %v6677_v45 }
  0x43   : > { %v833_v41 = vcombine.high %v829_v28, %v829_v28  ;;  %v1935_v47 = vrot.slane %v1933_v34, 1  ;;  %v1940_v49 = vrot.slane %v1938_v35, 1  ;;  %5918 = vmatprep.subr.bf16.mxu0 %v6424_v15  ;;  %v1235_v50 = vrot.slane %v830_v29, %v6677_v45  ;;  %v6428_v35 = vld [vmem:[%s7739_s5 + $0x170] sm:$0xff]  }
  0x44   : > { %v1243_v54 = vrot.slane %v815_v27, %v6677_v45  ;;  %5723 = vmatpush3.bf16.msra.mxu1 %v6423_v39  ;;  %v1239_v59 = vrot.slane %v832_v40, %v6677_v45  ;;  %v1247_v60 = vrot.slane %v829_v28, %v6677_v45  ;;  %v1251_v57 = vrot.slane %v831_v36, %v6677_v45 }
  0x45   : > { %v1255_v61 = vrot.slane %v833_v41, %v6677_v45  ;;  %v1936_v63 = vor.u32 %v1935_v47, %v1931_v33  ;;  %v1550_v0 = vcombine.low %v1227_v42, %v1231_v43  ;;  %5724 = vmatprep.subr.bf16.mxu1 %v6426_v62  ;;  %v834_v3 = vcombine.high %v617_v18, %v617_v18  ;;  %v6431_v41 = vld [vmem:[%s7739_s5 + $0x20] sm:$0xff]  }
  0x46   : > { %v841_v4 = vrot.slane %v617_v18, %v6660_v32  ;;  %5919 = vmatpush3.bf16.msra.mxu0 %v6424_v15  ;;  %v1551_v52 = vcombine.low %v1235_v50, %v1239_v59  ;;  %v1567_v6 = vcombine.low %v1243_v54, %v1247_v60  ;;  %v602_v55 = vmul.f32 %v5351_v30, %v6640_v13  ;;  %v6429_v15 = vld [vmem:[%s7739_s5 + $0x18] sm:$0xff]  }
  0x47   : > { %v1568_v7 = vcombine.low %v1251_v57, %v1255_v61  ;;  %v6883_v39 = vsel %vm1905_vm1, %v1936_v63, %v1940_v49  ;;  %v1558_v10 = vrot.slane %v1550_v0, %v6679_v46  ;;  %5920 = vmatprep.subr.bf16.mxu0 %v6425_v58  ;;  %v848_v53 = vrot.slane %v834_v3, %v6660_v32  ;;  %v6430_v0 = vld [vmem:[%s7739_s5 + $0x178] sm:$0xff]  }
  0x48   : > { %v849_v9 = vcombine.high %v841_v4, %v841_v4  ;;  %5884 = vmatprep.mubr.bf16.mxu0 %v6883_v39  ;;  %5693 = vmatmul.mubr.bf16.gmra.mrb[4].mxu1 %v6883_v39  ;;  %v1565_v11 = vrot.slane %v1551_v52, %v6679_v46  ;;  %v1575_v12 = vrot.slane %v1567_v6, %v6679_v46  ;;  %v5355_v28 = vunpack.c.l.bf16 %v6879_v5 }
  0x49   : > { %v1582_v14 = vrot.slane %v1568_v7, %v6679_v46  ;;  %5885 = vmatmul.mubr.bf16.gmra.mrb[4].mxu0 %v6883_v39  ;;  %5696 = vmatprep.mubr.bf16.mxu1 %v6883_v39  ;;  %v850_v16 = vcombine.high %v848_v53, %v848_v53  ;;  %v857_v18 = vrot.slane %v841_v4, %v6660_v32 }
  0x4a   : > { %v864_v21 = vrot.slane %v848_v53, %v6660_v32  ;;  %v1566_v24 = vcombine.low %v1558_v10, %v1565_v11  ;;  %5921 = vmatpush3.bf16.msra.mxu0 %v6425_v58  ;;  %5725 = vmatpush3.bf16.msra.mxu1 %v6426_v62  ;;  %v871_v56 = vrot.slane %v849_v9, %v6660_v32 }
  0x4b   : > { %v1583_v27 = vcombine.low %v1575_v12, %v1582_v14  ;;  %5922 = vmatprep.subr.bf16.mxu0 %v6427_v1  ;;  %v878_v29 = vrot.slane %v850_v16, %v6660_v32  ;;  %v879_v30 = vcombine.high %v857_v18, %v857_v18  ;;  %v1259_v34 = vrot.slane %v857_v18, %v6677_v45 }
  0x4c   : > { %v880_v33 = vcombine.high %v864_v21, %v864_v21  ;;  %v6907_v20 = vrot.slane %v1566_v24, 7  ;;  %v881_v40 = vcombine.high %v871_v56, %v871_v56  ;;  %v1263_v62 = vrot.slane %v871_v56, %v6677_v45  ;;  %5726 = vmatprep.subr.bf16.mxu1 %v6429_v15 }
  0x4d   : > { %v1799_v36 = vrot.slane %v1583_v27, 7  ;;  %v882_v42 = vcombine.high %v878_v29, %v878_v29  ;;  %v1267_v43 = vrot.slane %v879_v30, %v6677_v45  ;;  %v1275_v47 = vrot.slane %v864_v21, %v6677_v45  ;;  %v6948_v21 = vld [vmem:[%s7739_s5 + $0x180] sm:$0xff]   ;;  %v6435_v27 = vld [vmem:[%s7739_s5 + $0x30] sm:$0xff]  }
  0x4e   : > { %v1279_v49 = vrot.slane %v878_v29, %v6677_v45  ;;  %v1852_v54 = vsel %vm1788_vm0, 0.0, %v6907_v20  ;;  %5923 = vmatpush3.bf16.msra.mxu0 %v6427_v1  ;;  %v1271_v59 = vrot.slane %v881_v40, %v6677_v45  ;;  %5727 = vmatpush3.bf16.msra.mxu1 %v6429_v15  ;;  %v1283_v61 = vrot.slane %v880_v33, %v6677_v45  ;;  %v6433_v1 = vld [vmem:[%s7739_s5 + $0x28] sm:$0xff]  }
  0x4f   : > { %v6918_v50 = vsel %vm1788_vm0, %v6907_v20, %v1799_v36  ;;  %v1862_v58 = vsel %vm1788_vm0, %v1799_v36, 0.0  ;;  %v1287_v63 = vrot.slane %v882_v42, %v6677_v45  ;;  %5924 = vmatprep.subr.bf16.mxu0 %v6428_v35  ;;  %v1584_v3 = vcombine.low %v1259_v34, %v1263_v62  ;;  %5728 = vmatprep.subr.bf16.mxu1 %v6431_v41 }
  0x50   : > { %v6925_v60 = vpack.c.bf16 %v6918_v50, %v1852_v54  ;;  %v6927_v57 = vpack.c.bf16 %v1862_v58, %v1862_v58  ;;  %v1585_v4 = vcombine.low %v1267_v43, %v1271_v59  ;;  %v1601_v52 = vcombine.low %v1275_v47, %v1279_v49  ;;  %v6437_v58 = vld [vmem:[%s7739_s5 + $0x38] sm:$0xff]  }
  0x51   : > { %v610_v6 = vadd.f32 %v6648_v17, %v602_v55  ;;  %v1602_v9 = vcombine.low %v1283_v61, %v1287_v63  ;;  %v1592_v11 = vrot.slane %v1584_v3, %v6679_v46  ;;  %v2483_v24 = vrot.slane %v6847_v25, 1 }
  0x52   : > { %v1943_v7 = vshrl.u32 %v6925_v60, 16  ;;  %v1945_v10 = vshll.u32 %v6925_v60, 16  ;;  %v1950_v53 = vshll.u32 %v6927_v57, 16  ;;  %v1599_v12 = vrot.slane %v1585_v4, %v6679_v46  ;;  %5925 = vmatpush3.bf16.msra.mxu0 %v6428_v35  ;;  %5729 = vmatpush3.bf16.msra.mxu1 %v6431_v41 }
  0x53   : > { %v1609_v14 = vrot.slane %v1601_v52, %v6679_v46  ;;  %v618_v15 = vmax.f32 %v610_v6, 0.0  ;;  %v1616_v55 = vrot.slane %v1602_v9, %v6679_v46  ;;  %5926 = vmatprep.subr.bf16.mxu0 %v6430_v0  ;;  %5730 = vmatprep.subr.bf16.mxu1 %v6433_v1  ;;  %v603_v33 = vmul.f32 %v5352_v22, %v6640_v13 }
  0x54   : > { %v1947_v16 = vrot.slane %v1945_v10, 1  ;;  %v1952_v18 = vrot.slane %v1950_v53, 1  ;;  %v1600_v56 = vcombine.low %v1592_v11, %v1599_v12  ;;  %v2484_v36 = vrot.slane %v6849_v26, 1 }
  0x55   : > { %v883_v29 = vcombine.high %v618_v15, %v618_v15  ;;  %v890_v30 = vrot.slane %v618_v15, %v6660_v32  ;;  %v1617_v35 = vcombine.low %v1609_v14, %v1616_v55  ;;  %v2486_v40 = vrot.slane %v6925_v60, 1  ;;  %v6997_v14 = vld [vmem:[%s7739_s5 + $0x80] sm:$0xff]  }
  0x56   : > { %v1948_v34 = vor.u32 %v1947_v16, %v1943_v7  ;;  %v6958_v62 = vrot.slane %v1600_v56, 7  ;;  %5927 = vmatpush3.bf16.msra.mxu0 %v6430_v0  ;;  %5731 = vmatpush3.bf16.msra.mxu1 %v6433_v1  ;;  %v611_v22 = vadd.f32 %v6648_v17, %v603_v33  ;;  %v2487_v54 = vrot.slane %v6927_v57, 1 }
  0x57   : > { %v897_v41 = vrot.slane %v883_v29, %v6660_v32  ;;  %v898_v42 = vcombine.high %v890_v30, %v890_v30  ;;  %v906_v43 = vrot.slane %v890_v30, %v6660_v32  ;;  %v1802_v49 = vrot.slane %v1617_v35, 7  ;;  %5960 = vmatprep.subr.bf16.mxu0 %v6948_v21  ;;  %5732 = vmatprep.subr.bf16.mxu1 %v6435_v27 }
  0x58   : > { %v6963_v47 = vsel %vm1905_vm1, %v1948_v34, %v1952_v18  ;;  %v1853_v59 = vsel %vm1788_vm0, 0.0, %v6958_v62 }
  0x59   : > { %5888 = vmatprep.mubr.bf16.mxu0 %v6963_v47  ;;  %5697 = vmatmul.mubr.bf16.gmra.mrb[8].mxu1 %v6963_v47  ;;  %v899_v61 = vcombine.high %v897_v41, %v897_v41  ;;  %v913_v63 = vrot.slane %v897_v41, %v6660_v32  ;;  %v920_v0 = vrot.slane %v898_v42, %v6660_v32  ;;  %v1863_v1 = vsel %vm1788_vm0, %v1802_v49, 0.0 }
  0x5a   : > { %5889 = vmatmul.mubr.bf16.gmra.mrb[8].mxu0 %v6963_v47  ;;  %v6980_v57 = vsel %vm1788_vm0, %v6958_v62, %v1802_v49  ;;  %5700 = vmatprep.mubr.bf16.mxu1 %v6963_v47  ;;  %v928_v3 = vcombine.high %v906_v43, %v906_v43  ;;  %v1291_v4 = vrot.slane %v906_v43, %v6677_v45  ;;  %v619_v41 = vmax.f32 %v611_v22, 0.0 }
  0x5b   : > { %v6986_v52 = vpack.c.bf16 %v6980_v57, %v1853_v59  ;;  %v6988_v6 = vpack.c.bf16 %v1863_v1, %v1863_v1  ;;  %v927_v7 = vrot.slane %v899_v61, %v6660_v32  ;;  %v929_v10 = vcombine.high %v913_v63, %v913_v63  ;;  %5733 = vmatpush3.bf16.msra.mxu1 %v6435_v27 }
  0x5c   : > { %v930_v53 = vcombine.high %v920_v0, %v920_v0  ;;  %v1295_v9 = vrot.slane %v920_v0, %v6677_v45  ;;  %v1299_v11 = vrot.slane %v928_v3, %v6677_v45  ;;  %v1307_v12 = vrot.slane %v913_v63, %v6677_v45  ;;  %5734 = vmatprep.subr.bf16.mxu1 %v6437_v58 }
  0x5d   : > { %v1955_v15 = vshrl.u32 %v6986_v52, 16  ;;  %v1957_v16 = vshll.u32 %v6986_v52, 16  ;;  %v1962_v18 = vshll.u32 %v6988_v6, 16  ;;  %v931_v55 = vcombine.high %v927_v7, %v927_v7 }
  0x5e   : > { %v1303_v27 = vrot.slane %v930_v53, %v6677_v45  ;;  %v1311_v56 = vrot.slane %v927_v7, %v6677_v45  ;;  %v1315_v29 = vrot.slane %v929_v10, %v6677_v45  ;;  %v1618_v30 = vcombine.low %v1291_v4, %v1295_v9 }
  0x5f   : > { %v1959_v33 = vrot.slane %v1957_v16, 1  ;;  %v1964_v34 = vrot.slane %v1962_v18, 1  ;;  %v1319_v35 = vrot.slane %v931_v55, %v6677_v45  ;;  %5735 = vmatpush3.bf16.msra.mxu1 %v6437_v58  ;;  %v604_v59 = vmul.f32 %v5355_v28, %v6640_v13 }
  0x60   : > { %v1619_v42 = vcombine.low %v1299_v11, %v1303_v27  ;;  %v1626_v43 = vrot.slane %v1618_v30, %v6679_v46  ;;  %v1635_v49 = vcombine.low %v1307_v12, %v1311_v56  ;;  %5768 = vmatprep.subr.bf16.mxu1 %v6997_v14  ;;  %v932_v0 = vcombine.high %v619_v41, %v619_v41 }
  0x61   : > { %v1960_v61 = vor.u32 %v1959_v33, %v1955_v15  ;;  %v1636_v63 = vcombine.low %v1315_v29, %v1319_v35  ;;  %v939_v1 = vrot.slane %v619_v41, %v6660_v32  ;;  %v7019_v58 = vsel %vm2476_vm2, %v2483_v24, %v2484_v36 }
  0x62   : > { %v1633_v3 = vrot.slane %v1619_v42, %v6679_v46  ;;  %v1643_v22 = vrot.slane %v1635_v49, %v6679_v46  ;;  %v612_v13 = vadd.f32 %v6648_v17, %v604_v59  ;;  %v946_v7 = vrot.slane %v932_v0, %v6660_v32 }
  0x63   : > { %v7023_v28 = vsel %vm1905_vm1, %v1960_v61, %v1964_v34  ;;  %v1650_v4 = vrot.slane %v1636_v63, %v6679_v46  ;;  %v947_v10 = vcombine.high %v939_v1, %v939_v1  ;;  %v955_v25 = vrot.slane %v939_v1, %v6660_v32  ;;  %v6434_v61 = vld [vmem:[%s7739_s5 + $0x188] sm:$0xff]  }
  0x64   : > { %5892 = vmatprep.mubr.bf16.mxu0 %v7023_v28  ;;  %5701 = vmatmul.mubr.bf16.gmra.mrb[12].mxu1 %v7023_v28  ;;  %v1634_v26 = vcombine.low %v1626_v43, %v1633_v3  ;;  %v7033_v24 = vsel %vm2476_vm2, %v2486_v40, %v2487_v54  ;;  %v5356_v17 = vunpack.c.h.bf16 %v6879_v5  ;;  %v948_v53 = vcombine.high %v946_v7, %v946_v7 }
  0x65   : > { %5893 = vmatmul.mubr.bf16.gmra.mrb[12].mxu0 %v7023_v28  ;;  %5704 = vmatprep.mubr.bf16.mxu1 %v7023_v28  ;;  %v1651_v36 = vcombine.low %v1643_v22, %v1650_v4  ;;  %v962_v9 = vrot.slane %v946_v7, %v6660_v32  ;;  %v620_v11 = vmax.f32 %v612_v13, 0.0  ;;  %v969_v60 = vrot.slane %v947_v10, %v6660_v32 }
  0x66   : > { %5928 = vmatprep.mubr.bf16.mxu0 %v6833_v19  ;;  %v7040_v12 = vrot.slane %v1634_v26, 7  ;;  %v977_v15 = vcombine.high %v955_v25, %v955_v25  ;;  %v1323_v40 = vrot.slane %v955_v25, %v6677_v45  ;;  %v976_v16 = vrot.slane %v948_v53, %v6660_v32 }
  0x67   : > { %v1805_v54 = vrot.slane %v1651_v36, 7  ;;  %v978_v18 = vcombine.high %v962_v9, %v962_v9  ;;  %v1339_v55 = vrot.slane %v962_v9, %v6677_v45  ;;  %v979_v56 = vcombine.high %v969_v60, %v969_v60 }
  0x68   : > { %v1854_v27 = vsel %vm1788_vm0, 0.0, %v7040_v12  ;;  %v1327_v29 = vrot.slane %v969_v60, %v6677_v45  ;;  %v1331_v30 = vrot.slane %v977_v15, %v6677_v45  ;;  %v980_v35 = vcombine.high %v976_v16, %v976_v16 }
  0x69   : > { %v7052_v33 = vsel %vm1788_vm0, %v7040_v12, %v1805_v54  ;;  %v1864_v34 = vsel %vm1788_vm0, %v1805_v54, 0.0  ;;  %v1343_v41 = vrot.slane %v976_v16, %v6677_v45  ;;  %v1335_v49 = vrot.slane %v979_v56, %v6677_v45  ;;  %v6436_v54 = vld [vmem:[%s7739_s5 + $0x190] sm:$0xff]  }
  0x6a   : > { %v7057_v42 = vpack.c.bf16 %v7052_v33, %v1854_v27  ;;  %v7059_v43 = vpack.c.bf16 %v1864_v34, %v1864_v34  ;;  %v1347_v59 = vrot.slane %v978_v18, %v6677_v45  ;;  %v1351_v63 = vrot.slane %v980_v35, %v6677_v45 }
  0x6b   : > { %v1652_v0 = vcombine.low %v1323_v40, %v1327_v29  ;;  %v1669_v1 = vcombine.low %v1339_v55, %v1343_v41  ;;  %v981_v3 = vcombine.high %v620_v11, %v620_v11  ;;  %v1653_v7 = vcombine.low %v1331_v30, %v1335_v49 }
  0x6c   : > { %v1967_v22 = vshrl.u32 %v7057_v42, 16  ;;  %v1969_v13 = vshll.u32 %v7057_v42, 16  ;;  %v1974_v4 = vshll.u32 %v7059_v43, 16  ;;  %v1670_v26 = vcombine.low %v1347_v59, %v1351_v63 }
  0x6d   : > { %5929 = vmatmul.mubr.bf16.vlgmr.msra.gmra.mrb[0].mxu0 %v6833_v19  ;;  %v1660_v10 = vrot.slane %v1652_v0, %v6679_v46  ;;  %v1677_v25 = vrot.slane %v1669_v1, %v6679_v46  ;;  %v988_v36 = vrot.slane %v620_v11, %v6660_v32  ;;  %v1667_v60 = vrot.slane %v1653_v7, %v6679_v46  ;;  %v6438_v7 = vld [vmem:[%s7739_s5 + $0x198] sm:$0xff]  }
  0x6e   : > { %v1971_v53 = vrot.slane %v1969_v13, 1  ;;  %v1976_v9 = vrot.slane %v1974_v4, 1  ;;  %5961 = vmatpush3.bf16.msra.mxu0 %v6948_v21  ;;  %5932 = vmatprep.mubr.bf16.mxu0 %v7019_v58  ;;  %v995_v15 = vrot.slane %v981_v3, %v6660_v32  ;;  %v1684_v40 = vrot.slane %v1670_v26, %v6679_v46 }
  0x6f   : > { %5962 = vmatprep.subr.bf16.mxu0 %v6434_v61  ;;  %v996_v16 = vcombine.high %v988_v36, %v988_v36  ;;  %v1004_v11 = vrot.slane %v988_v36, %v6660_v32  ;;  %v2489_v18 = vrot.slane %v6986_v52, 1  ;;  %v1668_v21 = vcombine.low %v1660_v10, %v1667_v60 }
  0x70   : > { %v1972_v55 = vor.u32 %v1971_v53, %v1967_v22  ;;  %v997_v27 = vcombine.high %v995_v15, %v995_v15  ;;  %v1011_v56 = vrot.slane %v995_v15, %v6660_v32  ;;  %v1685_v29 = vcombine.low %v1677_v25, %v1684_v40 }
  0x71   : > { %v1018_v30 = vrot.slane %v996_v16, %v6660_v32  ;;  %v1026_v34 = vcombine.high %v1004_v11, %v1004_v11  ;;  %v1355_v35 = vrot.slane %v1004_v11, %v6677_v45  ;;  %v7090_v49 = vrot.slane %v1668_v21, 7 }
  0x72   : > { %v7088_v41 = vsel %vm1905_vm1, %v1972_v55, %v1976_v9  ;;  %5963 = vmatpush3.bf16.msra.mxu0 %v6434_v61  ;;  %v1025_v59 = vrot.slane %v997_v27, %v6660_v32  ;;  %v1027_v52 = vcombine.high %v1011_v56, %v1011_v56  ;;  %v1808_v63 = vrot.slane %v1685_v29, 7  ;;  %v7121_v55 = vld [vmem:[%s6625_s22] ss:$0 sm:$0xff] }
  0x73   : > { %5705 = vmatmul.mubr.bf16.gmra.mrb[16].mxu1 %v7088_v41  ;;  %5964 = vmatprep.subr.bf16.mxu0 %v6436_v54  ;;  %v1028_v0 = vcombine.high %v1018_v30, %v1018_v30  ;;  %v1359_v1 = vrot.slane %v1018_v30, %v6677_v45  ;;  %v1363_v3 = vrot.slane %v1026_v34, %v6677_v45  ;;  %v1855_v22 = vsel %vm1788_vm0, 0.0, %v7090_v49 }
  0x74   : > { %5708 = vmatprep.mubr.bf16.mxu1 %v7088_v41  ;;  %v1029_v13 = vcombine.high %v1025_v59, %v1025_v59  ;;  %v1371_v61 = vrot.slane %v1011_v56, %v6677_v45  ;;  %v1375_v4 = vrot.slane %v1025_v59, %v6677_v45  ;;  %v7107_v10 = vsel %vm1788_vm0, %v7090_v49, %v1808_v63 }
  0x75   : > { %5933 = vmatmul.mubr.bf16.gmra.mrb[4].mxu0 %v7019_v58  ;;  %v1865_v26 = vsel %vm1788_vm0, %v1808_v63, 0.0  ;;  %v1367_v25 = vrot.slane %v1028_v0, %v6677_v45  ;;  %v1379_v36 = vrot.slane %v1027_v52, %v6677_v45  ;;  %v7113_v53 = vpack.c.bf16 %v7107_v10, %v1855_v22 }
  0x76   : > { %v7115_v9 = vpack.c.bf16 %v1865_v26, %v1865_v26  ;;  %5936 = vmatprep.mubr.bf16.mxu0 %v7033_v24  ;;  %v1383_v60 = vrot.slane %v1029_v13, %v6677_v45  ;;  %v1686_v15 = vcombine.low %v1355_v35, %v1359_v1  ;;  %v1703_v16 = vcombine.low %v1371_v61, %v1375_v4  ;;  %v7136_v35 = vld [vmem:[%s6634_s27] ss:$0 sm:$0xff]  ;;  %v6442_v4 = vld [vmem:[%s7739_s5 + $0x1a8] sm:$0xff]  }
  0x77   : > { %v1687_v40 = vcombine.low %v1363_v3, %v1367_v25  ;;  %5965 = vmatpush3.bf16.msra.mxu0 %v6436_v54  ;;  %v2490_v11 = vrot.slane %v6988_v6, 1  ;;  %v605_v21 = vmul.f32 %v7121_v55, %v5356_v17  ;;  %v1979_v27 = vshrl.u32 %v7113_v53, 16  ;;  %v6440_v54 = vld [vmem:[%s7739_s5 + $0x1a0] sm:$0xff]  }
  0x78   : > { %v1981_v56 = vshll.u32 %v7113_v53, 16  ;;  %v1986_v29 = vshll.u32 %v7115_v9, 16  ;;  %v1694_v30 = vrot.slane %v1686_v15, %v6679_v46  ;;  %5966 = vmatprep.subr.bf16.mxu0 %v6438_v7  ;;  %v1704_v34 = vcombine.low %v1379_v36, %v1383_v60 }
  0x79   : > { %v1701_v6 = vrot.slane %v1687_v40, %v6679_v46  ;;  %v1711_v5 = vrot.slane %v1703_v16, %v6679_v46  ;;  %v613_v17 = vadd.f32 %v7136_v35, %v605_v21  ;;  %v2492_v63 = vrot.slane %v7057_v42, 1 }
  0x7a   : > { %v1983_v59 = vrot.slane %v1981_v56, 1  ;;  %v1988_v52 = vrot.slane %v1986_v29, 1  ;;  %v2493_v0 = vrot.slane %v7059_v43, 1  ;;  %v1718_v3 = vrot.slane %v1704_v34, %v6679_v46 }
  0x7b   : > { %v1702_v1 = vcombine.low %v1694_v30, %v1701_v6  ;;  %v7143_v22 = vsel %vm2476_vm2, %v2489_v18, %v2490_v11  ;;  %v621_v13 = vmax.f32 %v613_v17, 0.0  ;;  %5967 = vmatpush3.bf16.msra.mxu0 %v6438_v7  ;;  %v7161_v7 = vpack.c.bf16 %v6840_v2, %v6824_v8  ;;  %v6444_v2 = vld [vmem:[%s7739_s5 + $0x1b0] sm:$0xff]  }
  0x7c   : > { %v1984_v61 = vor.u32 %v1983_v59, %v1979_v27  ;;  %5968 = vmatprep.subr.bf16.mxu0 %v6440_v54  ;;  %v1719_v26 = vcombine.low %v1711_v5, %v1718_v3  ;;  %v7157_v18 = vsel %vm2476_vm2, %v2492_v63, %v2493_v0  ;;  %v7165_v60 = vpack.c.bf16 %v6918_v50, %v6907_v20  ;;  %v6446_v63 = vld [vmem:[%s7739_s5 + $0x1b8] sm:$0xff]  }
  0x7d   : > { %5937 = vmatmul.mubr.bf16.gmra.mrb[8].mxu0 %v7033_v24  ;;  %v7149_v42 = vrot.slane %v1702_v1, 7  ;;  %v1030_v43 = vcombine.high %v621_v13, %v621_v13  ;;  %v1037_v25 = vrot.slane %v621_v13, %v6660_v32  ;;  %v2495_v8 = vrot.slane %v7113_v53, 1 }
  0x7e   : > { %v7153_v36 = vsel %vm1905_vm1, %v1984_v61, %v1988_v52  ;;  %5940 = vmatprep.mubr.bf16.mxu0 %v7143_v22  ;;  %v1811_v15 = vrot.slane %v1719_v26, 7  ;;  %v7179_v20 = vpack.c.bf16 %v6980_v57, %v6958_v62  ;;  %v7183_v50 = vpack.c.bf16 %v7052_v33, %v7040_v12 }
  0x7f   : > { %5709 = vmatmul.mubr.bf16.gmra.mrb[20].mxu1 %v7153_v36  ;;  %v1856_v40 = vsel %vm1788_vm0, 0.0, %v7149_v42  ;;  %v1044_v16 = vrot.slane %v1030_v43, %v6660_v32  ;;  %v1045_v11 = vcombine.high %v1037_v25, %v1037_v25  ;;  %5969 = vmatpush3.bf16.msra.mxu0 %v6440_v54  ;;  %v1053_v21 = vrot.slane %v1037_v25, %v6660_v32 }
  0x80   : > { %5712 = vmatprep.mubr.bf16.mxu1 %v7153_v36  ;;  %5970 = vmatprep.subr.bf16.mxu0 %v6442_v4  ;;  %v1812_v27 = vsel %vm1788_vm0, %v7149_v42, %v1811_v15  ;;  %v1866_v56 = vsel %vm1788_vm0, %v1811_v15, 0.0 }
  0x81   : > { %v1046_v29 = vcombine.high %v1044_v16, %v1044_v16  ;;  %v1060_v53 = vrot.slane %v1044_v16, %v6660_v32  ;;  %v7189_v30 = vpack.c.bf16 %v1812_v27, %v1856_v40  ;;  %v1884_v54 = vpack.c.bf16 %v1866_v56, %v1866_v56  ;;  %v7212_v56 = vld [vmem:[%s7739_s5 + $0x1c0] sm:$0xff]  }
  0x82   : > { %v1067_v6 = vrot.slane %v1045_v11, %v6660_v32  ;;  %v1075_v34 = vcombine.high %v1053_v21, %v1053_v21  ;;  %v1387_v12 = vrot.slane %v1053_v21, %v6677_v45  ;;  %v2496_v16 = vrot.slane %v7115_v9, 1 }
  0x83   : > { %v1074_v62 = vrot.slane %v1046_v29, %v6660_v32  ;;  %v1076_v57 = vcombine.high %v1060_v53, %v1060_v53  ;;  %v1403_v33 = vrot.slane %v1060_v53, %v6677_v45  ;;  %5971 = vmatpush3.bf16.msra.mxu0 %v6442_v4  ;;  %v1991_v5 = vshrl.u32 %v7189_v30, 16 }
  0x84   : > { %v1993_v17 = vshll.u32 %v7189_v30, 16  ;;  %v1998_v59 = vshll.u32 %v1884_v54, 16  ;;  %v1077_v52 = vcombine.high %v1067_v6, %v1067_v6  ;;  %5972 = vmatprep.subr.bf16.mxu0 %v6444_v2  ;;  %v1391_v1 = vrot.slane %v1067_v6, %v6677_v45 }
  0x85   : > { %5941 = vmatmul.mubr.bf16.gmra.mrb[12].mxu0 %v7143_v22  ;;  %v1078_v0 = vcombine.high %v1074_v62, %v1074_v62  ;;  %v1395_v3 = vrot.slane %v1075_v34, %v6677_v45  ;;  %v1407_v13 = vrot.slane %v1074_v62, %v6677_v45  ;;  %v1411_v43 = vrot.slane %v1076_v57, %v6677_v45 }
  0x86   : > { %v1995_v61 = vrot.slane %v1993_v17, 1  ;;  %v2000_v4 = vrot.slane %v1998_v59, 1  ;;  %v1399_v26 = vrot.slane %v1077_v52, %v6677_v45  ;;  %5944 = vmatprep.mubr.bf16.mxu0 %v7157_v18  ;;  %v1720_v15 = vcombine.low %v1387_v12, %v1391_v1 }
  0x87   : > { %v1415_v25 = vrot.slane %v1078_v0, %v6677_v45  ;;  %v1737_v40 = vcombine.low %v1403_v33, %v1407_v13  ;;  %5973 = vmatpush3.bf16.msra.mxu0 %v6444_v2  ;;  %v7216_v29 = vpack.c.bf16 %v7107_v10, %v7090_v49  ;;  %v7221_v9 = vpack.c.bf16 %v1812_v27, %v7149_v42 }
  0x88   : > { %v1996_v11 = vor.u32 %v1995_v61, %v1991_v5  ;;  %v1721_v21 = vcombine.low %v1395_v3, %v1399_v26  ;;  %5974 = vmatprep.subr.bf16.mxu0 %v6446_v63  ;;  %v1728_v53 = vrot.slane %v1720_v15, %v6679_v46  ;;  %v7230_v49 = vsel %vm2476_vm2, %v2495_v8, %v2496_v16 }
  0x89   : > { %v1738_v6 = vcombine.low %v1411_v43, %v1415_v25  ;;  %v1745_v34 = vrot.slane %v1737_v40, %v6679_v46  ;;  %v2498_v33 = vrot.slane %v7189_v30, 1  ;;  %v2499_v5 = vrot.slane %v1884_v54, 1 }
  0x8a   : > { %v7224_v2 = vsel %vm1905_vm1, %v1996_v11, %v2000_v4  ;;  %v1735_v62 = vrot.slane %v1721_v21, %v6679_v46  ;;  %v4911_v25 = vpack.c.bf16 %v6784_v31, %v6774_v23  ;;  %v7271_v23 = vpack.c.bf16 %v6759_v44, %v6740_v51  ;;  %v565_v31 = vld [vmem:[%s519_s25] sm:$0xf]  ;;  %v6441_v11 = vld [vmem:[%s7739_s5 + $0x88] sm:$0xff]   ;;  %v6443_v51 = vld [vmem:[%s7739_s5 + $0x90] sm:$0xff]   ;;  %s546_s25 = scalar_lea.vmem %s7742_s8, %s7751_s30 }
  0x8b   : > { %5713 = vmatmul.mubr.bf16.gmra.mrb[24].mxu1 %v7224_v2  ;;  %v1752_v57 = vrot.slane %v1738_v6, %v6679_v46  ;;  %5975 = vmatpush3.bf16.msra.mxu0 %v6446_v63  ;;  %v7243_v1 = vsel %vm2476_vm2, %v2498_v33, %v2499_v5  ;;  %v622_v21 = vunpack.c.l.bf16 %v565_v31  ;;  %v6450_v6 = vld [vmem:[%s7739_s5 + $0x1c8] sm:$0xff]  }
  0x8c   : > { %5716 = vmatprep.mubr.bf16.mxu1 %v7224_v2  ;;  %v1736_v10 = vcombine.low %v1728_v53, %v1735_v62  ;;  %6008 = vmatprep.subr.bf16.mxu0 %v7212_v56  ;;  %v6449_v62 = vld [vmem:[%s7739_s5 + $0xa8] sm:$0xff]  }
  0x8d   : > { %v1753_v42 = vcombine.low %v1745_v34, %v1752_v57  ;;  %5945 = vmatmul.mubr.bf16.gmra.mrb[16].mxu0 %v7157_v18  ;;  %v623_v44 = vmul.f32 %v7121_v55, %v622_v21  ;;  %v6447_v55 = vld [vmem:[%s7739_s5 + $0xa0] sm:$0xff]   ;;  %v6452_v34 = vld [vmem:[%s7739_s5 + $0x1d0] sm:$0xff]  }
  0x8e   : > { %v1813_v27 = vrot.slane %v1736_v10, 7  ;;  %5948 = vmatprep.mubr.bf16.mxu0 %v7230_v49  ;;  %v6451_v10 = vld [vmem:[%s7739_s5 + $0xb0] sm:$0xff]  }
  0x8f   : > { %v1814_v12 = vrot.slane %v1753_v42, 7  ;;  %v624_v53 = vadd.f32 %v7136_v35, %v623_v44 }
  0x90   : > { %v1857_v17 = vsel %vm1788_vm0, 0.0, %v1813_v27 }
  0x91   : > { %v1815_v8 = vsel %vm1788_vm0, %v1813_v27, %v1814_v12  ;;  %v1867_v59 = vsel %vm1788_vm0, %v1814_v12, 0.0  ;;  %v625_v35 = vmax.f32 %v624_v53, 0.0  ;;  %v6453_v12 = vld [vmem:[%s7739_s5 + $0xb8] sm:$0xff]  }
  0x92   : > { %v1885_v52 = vpack.c.bf16 %v1815_v8, %v1857_v17  ;;  %v1886_v63 = vpack.c.bf16 %v1867_v59, %v1867_v59  ;;  %v7240_v0 = vpack.c.bf16 %v1815_v8, %v1813_v27  ;;  %v6456_v27 = vld [vmem:[%s7739_s5 + $0x1e0] sm:$0xff]   ;;  %v6458_v17 = vld [vmem:[%s7739_s5 + $0x1e8] sm:$0xff]  }
  0x93   : > { %v627_v57 = vmul.f32 0.0, %v625_v35  ;;  %v7361_v8 = vld [vmem:[%s7739_s5 + $0xc0] sm:$0xff]  }
  0x94   : > { %v2003_v3 = vshrl.u32 %v1885_v52, 16  ;;  %v2005_v13 = vshll.u32 %v1885_v52, 16  ;;  %v2010_v61 = vshll.u32 %v1886_v63, 16  ;;  %v2501_v4 = vrot.slane %v1885_v52, 1 }
  0x95   : > { %5949 = vmatmul.mubr.bf16.gmra.mrb[20].mxu0 %v7230_v49  ;;  %v2502_v26 = vrot.slane %v1886_v63, 1  ;;  %v1079_v42 = vcombine.high %v627_v57, %v627_v57  ;;  %v1086_v33 = vrot.slane %v627_v57, %v6660_v32  ;;  %v6460_v63 = vld [vmem:[%s7739_s5 + $0x1f0] sm:$0xff]  }
  0x96   : > { %v2007_v30 = vrot.slane %v2005_v13, 1  ;;  %v2012_v54 = vrot.slane %v2010_v61, 1  ;;  %5952 = vmatprep.mubr.bf16.mxu0 %v7243_v1 }
  0x97   : > { %v7260_v16 = vsel %vm2476_vm2, %v2501_v4, %v2502_v26  ;;  %v1093_v5 = vrot.slane %v1079_v42, %v6660_v32  ;;  %v1094_v59 = vcombine.high %v1086_v33, %v1086_v33  ;;  %v2477_v42 = vrot.slane %v6789_v37, 1 }
  0x98   : > { %v2008_v43 = vor.u32 %v2007_v30, %v2003_v3  ;;  %v1102_v3 = vrot.slane %v1086_v33, %v6660_v32 }
  0x99   : > { %v1095_v52 = vcombine.high %v1093_v5, %v1093_v5  ;;  %v1109_v13 = vrot.slane %v1093_v5, %v6660_v32  ;;  %v1116_v61 = vrot.slane %v1094_v59, %v6660_v32 }
  0x9a   : > { %v7256_v40 = vsel %vm1905_vm1, %v2008_v43, %v2012_v54  ;;  %v6462_v54 = vld [vmem:[%s7739_s5 + $0x1f8] sm:$0xff]   ;;  %v1124_v4 = vcombine.high %v1102_v3, %v1102_v3  ;;  %v1419_v31 = vrot.slane %v1102_v3, %v6677_v45  ;;  %v6468_v3 = vld [vmem:[%s7739_s5 + $0x210] sm:$0xff]  }
  0x9b   : > { %5717 = vmatmul.mubr.bf16.gmra.mrb[28].mxu1 %v7256_v40  ;;  %v1123_v30 = vrot.slane %v1095_v52, %v6660_v32  ;;  %v1125_v32 = vcombine.high %v1109_v13, %v1109_v13  ;;  %v1126_v26 = vcombine.high %v1116_v61, %v1116_v61  ;;  %v6459_v52 = vld [vmem:[%s7739_s5 + $0xd0] sm:$0xff]  }
  0x9c   : > { %5736 = vmatprep.mubr.msk.bf16.mxu1 %vm7250_vm5, %v4911_v25  ;;  %v6464_v25 = vld [vmem:[%s7739_s5 + $0x200] sm:$0xff]   ;;  %v1427_v21 = vrot.slane %v1124_v4, %v6677_v45  ;;  %v6473_v4 = vld [vmem:[%s7739_s5 + $0x230] sm:$0xff]  }
  0x9d   : > { %5953 = vmatmul.mubr.bf16.gmra.mrb[24].mxu0 %v7243_v1  ;;  %v1127_v43 = vcombine.high %v1123_v30, %v1123_v30  ;;  %v1431_v44 = vrot.slane %v1126_v26, %v6677_v45  ;;  %v1443_v53 = vrot.slane %v1125_v32, %v6677_v45  ;;  %v6477_v32 = vld [vmem:[%s7739_s5 + $0x100] sm:$0xff]  }
  0x9e   : > { %5956 = vmatprep.mubr.bf16.mxu0 %v7260_v16 }
  0xa3   : > { %5737 = vmatmul.mubr.msk.bf16.vlgmr.msra.gmra.mrb[0].mxu1 %vm7250_vm5, %v7271_v23 }
  0xa4   : > { %5769 = vmatpush3.bf16.msra.mxu1 %v6997_v14  ;;  %5740 = vmatprep.mubr.msk.bf16.mxu1 %vm7250_vm5, %v7271_v23  ;;  %v6445_v14 = vld [vmem:[%s7739_s5 + $0x98] sm:$0xff]  }
  0xa5   : > { %5770 = vmatprep.subr.bf16.mxu1 %v6441_v11  ;;  %5957 = vmatmul.mubr.bf16.gmra.mrb[28].mxu0 %v7260_v16 }
  0xa6   : > { %5976 = vmatprep.mubr.msk.bf16.mxu0 %vm7250_vm5, %v7271_v23 }
  0xa8   : > { %5771 = vmatpush3.bf16.msra.mxu1 %v6441_v11  ;;  %v1423_v11 = vrot.slane %v1116_v61, %v6677_v45  ;;  %v6470_v61 = vld [vmem:[%s7739_s5 + $0x218] sm:$0xff]  }
  0xa9   : > { %5772 = vmatprep.subr.bf16.mxu1 %v6443_v51 }
  0xab   : > { %5741 = vmatmul.mubr.msk.bf16.gmra.mrb[4].mxu1 %vm7250_vm5, %v7161_v7 }
  0xac   : > { %5744 = vmatprep.mubr.msk.bf16.mxu1 %vm7250_vm5, %v7161_v7  ;;  %5773 = vmatpush3.bf16.msra.mxu1 %v6443_v51  ;;  %v1435_v51 = vrot.slane %v1109_v13, %v6677_v45  ;;  %v6465_v13 = vld [vmem:[%s7739_s5 + $0xe8] sm:$0xff]  }
  0xad   : > { %5774 = vmatprep.subr.bf16.mxu1 %v6445_v14  ;;  %5977 = vmatmul.mubr.msk.bf16.vlgmr.msra.gmra.mrb[0].mxu0 %vm7250_vm5, %v7161_v7 }
  0xae   : > { %6009 = vmatpush3.bf16.msra.mxu0 %v7212_v56  ;;  %5980 = vmatprep.mubr.msk.bf16.mxu0 %vm7250_vm5, %v7161_v7  ;;  %v6454_v56 = vld [vmem:[%s7739_s5 + $0x1d8] sm:$0xff]  }
  0xaf   : > { %6010 = vmatprep.subr.bf16.mxu0 %v6450_v6 }
  0xb0   : > { %5775 = vmatpush3.bf16.msra.mxu1 %v6445_v14  ;;  %v1439_v14 = vrot.slane %v1123_v30, %v6677_v45  ;;  %v6471_v30 = vld [vmem:[%s7739_s5 + $0x220] sm:$0xff]  }
  0xb1   : > { %5776 = vmatprep.subr.bf16.mxu1 %v6447_v55 }
  0xb2   : > { %6011 = vmatpush3.bf16.msra.mxu0 %v6450_v6  ;;  %v1447_v6 = vrot.slane %v1127_v43, %v6677_v45  ;;  %v1755_v45 = vcombine.low %v1427_v21, %v1431_v44  ;;  %v1771_v35 = vcombine.low %v1435_v51, %v1439_v14 }
  0xb3   : > { %5745 = vmatmul.mubr.msk.bf16.gmra.mrb[8].mxu1 %vm7250_vm5, %v7165_v60  ;;  %6012 = vmatprep.subr.bf16.mxu0 %v6452_v34 }
  0xb4   : > { %5748 = vmatprep.mubr.msk.bf16.mxu1 %vm7250_vm5, %v7165_v60  ;;  %5777 = vmatpush3.bf16.msra.mxu1 %v6447_v55  ;;  %v1754_v55 = vcombine.low %v1419_v31, %v1423_v11  ;;  %v1769_v57 = vrot.slane %v1755_v45, %v6679_v46  ;;  %v6479_v45 = vld [vmem:[%s7739_s5 + $0x110] sm:$0xff]  }
  0xb5   : > { %5981 = vmatmul.mubr.msk.bf16.gmra.mrb[4].mxu0 %vm7250_vm5, %v7165_v60  ;;  %5778 = vmatprep.subr.bf16.mxu1 %v6449_v62 }
  0xb6   : > { %5984 = vmatprep.mubr.msk.bf16.mxu0 %vm7250_vm5, %v7165_v60  ;;  %6013 = vmatpush3.bf16.msra.mxu0 %v6452_v34  ;;  %v1772_v34 = vcombine.low %v1443_v53, %v1447_v6 }
  0xb7   : > { %6014 = vmatprep.subr.bf16.mxu0 %v6454_v56 }
  0xb8   : > { %5779 = vmatpush3.bf16.msra.mxu1 %v6449_v62  ;;  %v1762_v62 = vrot.slane %v1754_v55, %v6679_v46  ;;  %v6478_v55 = vld [vmem:[%s7739_s5 + $0x108] sm:$0xff]  }
  0xb9   : > { %5780 = vmatprep.subr.bf16.mxu1 %v6451_v10 }
  0xba   : > { %6015 = vmatpush3.bf16.msra.mxu0 %v6454_v56  ;;  %v1779_v56 = vrot.slane %v1771_v35, %v6679_v46 }
  0xbb   : > { %5749 = vmatmul.mubr.msk.bf16.gmra.mrb[12].mxu1 %vm7250_vm5, %v7179_v20  ;;  %6016 = vmatprep.subr.bf16.mxu0 %v6456_v27 }
  0xbc   : > { %5752 = vmatprep.mubr.msk.bf16.mxu1 %vm7250_vm5, %v7179_v20  ;;  %5781 = vmatpush3.bf16.msra.mxu1 %v6451_v10  ;;  %v1786_v10 = vrot.slane %v1772_v34, %v6679_v46  ;;  %v1770_v46 = vcombine.low %v1762_v62, %v1769_v57 }
  0xbd   : > { %5985 = vmatmul.mubr.msk.bf16.gmra.mrb[8].mxu0 %vm7250_vm5, %v7179_v20  ;;  %5782 = vmatprep.subr.bf16.mxu1 %v6453_v12 }
  0xbe   : > { %5988 = vmatprep.mubr.msk.bf16.mxu0 %vm7250_vm5, %v7179_v20  ;;  %6017 = vmatpush3.bf16.msra.mxu0 %v6456_v27  ;;  %v2478_v27 = vrot.slane %v6791_v38, 1  ;;  %v7433_v5 = vrot.slane %v1770_v46, 7  ;;  %v6457_v38 = vld [vmem:[%s7739_s5 + $0xc8] sm:$0xff]  }
  0xbf   : > { %6018 = vmatprep.subr.bf16.mxu0 %v6458_v17 }
  0xc0   : > { %5783 = vmatpush3.bf16.msra.mxu1 %v6453_v12  ;;  %v7430_v12 = vcombine.low %v1779_v56, %v1786_v10  ;;  %v2479_v33 = vsel %vm2476_vm2, %v2477_v42, %v2478_v27  ;;  %v1858_v26 = vsel %vm1788_vm0, 0.0, %v7433_v5 }
  0xc1   : > { %5816 = vmatprep.subr.bf16.mxu1 %v7361_v8 }
  0xc2   : > { %6019 = vmatpush3.bf16.msra.mxu0 %v6458_v17  ;;  %v1817_v17 = vrot.slane %v7430_v12, 7 }
  0xc3   : > { %5753 = vmatmul.mubr.msk.bf16.gmra.mrb[16].mxu1 %vm7250_vm5, %v7183_v50  ;;  %6020 = vmatprep.subr.bf16.mxu0 %v6460_v63 }
  0xc4   : > { %5756 = vmatprep.mubr.msk.bf16.mxu1 %vm7250_vm5, %v7183_v50  ;;  %v7449_v37 = vsel %vm1788_vm0, %v7433_v5, %v1817_v17 }
  0xc5   : > { %5989 = vmatmul.mubr.msk.bf16.gmra.mrb[12].mxu0 %vm7250_vm5, %v7183_v50  ;;  %v5219_v59 = vpack.c.bf16 %v7449_v37, %v7433_v5  ;;  %v7527_v43 = vpack.c.bf16 %v7449_v37, %v1858_v26 }
  0xc6   : > { %5992 = vmatprep.mubr.msk.bf16.mxu0 %vm7250_vm5, %v7183_v50  ;;  %6021 = vmatpush3.bf16.msra.mxu0 %v6460_v63  ;;  %v6461_v63 = vld [vmem:[%s7739_s5 + $0xd8] sm:$0xff]  }
  0xc7   : > { %6022 = vmatprep.subr.bf16.mxu0 %v6462_v54  ;;  %v3806_v11 = vshll.u32 %v7527_v43, 16  ;;  %v3804_v21 = vshrl.u32 %v7527_v43, 16 }
  0xc9   : > { %v3808_v51 = vrot.slane %v3806_v11, 1 }
  0xca   : > { %6023 = vmatpush3.bf16.msra.mxu0 %v6462_v54  ;;  %v6469_v54 = vld [vmem:[%s7739_s5 + $0xf8] sm:$0xff]  }
  0xcb   : > { %5757 = vmatmul.mubr.msk.bf16.gmra.mrb[20].mxu1 %vm7250_vm5, %v7216_v29  ;;  %6056 = vmatprep.subr.bf16.mxu0 %v6464_v25  ;;  %v3809_v14 = vor.u32 %v3808_v51, %v3804_v21 }
  0xcc   : > { %5760 = vmatprep.mubr.msk.bf16.mxu1 %vm7250_vm5, %v7216_v29 }
  0xcd   : > { %5993 = vmatmul.mubr.msk.bf16.gmra.mrb[16].mxu0 %vm7250_vm5, %v7216_v29 }
  0xce   : > { %5996 = vmatprep.mubr.msk.bf16.mxu0 %vm7250_vm5, %v7216_v29 }
  0xd3   : > { %5761 = vmatmul.mubr.msk.bf16.gmra.mrb[24].mxu1 %vm7250_vm5, %v7221_v9 }
  0xd4   : > { %5764 = vmatprep.mubr.msk.bf16.mxu1 %vm7250_vm5, %v7221_v9 }
  0xd5   : > { %5997 = vmatmul.mubr.msk.bf16.gmra.mrb[20].mxu0 %vm7250_vm5, %v7221_v9 }
  0xd6   : > { %6000 = vmatprep.mubr.msk.bf16.mxu0 %vm7250_vm5, %v7221_v9 }
  0xdb   : > { %5765 = vmatmul.mubr.msk.bf16.gmra.mrb[28].mxu1 %vm7250_vm5, %v7240_v0 }
  0xdc   : > { %5784 = vmatprep.mubr.bf16.mxu1 %v2479_v33 }
  0xdd   : > { %6001 = vmatmul.mubr.msk.bf16.gmra.mrb[24].mxu0 %vm7250_vm5, %v7240_v0 }
  0xde   : > { %6004 = vmatprep.mubr.msk.bf16.mxu0 %vm7250_vm5, %v7240_v0 }
  0xe3   : > { %5785 = vmatmul.mubr.bf16.vlgmr.msra.gmra.mrb[0].mxu1 %v6833_v19 }
  0xe4   : > { %5817 = vmatpush3.bf16.msra.mxu1 %v7361_v8  ;;  %5788 = vmatprep.mubr.bf16.mxu1 %v6833_v19  ;;  %v6466_v8 = vld [vmem:[%s7739_s5 + $0x208] sm:$0xff]  }
  0xe5   : > { %5818 = vmatprep.subr.bf16.mxu1 %v6457_v38  ;;  %6005 = vmatmul.mubr.msk.bf16.gmra.mrb[28].mxu0 %vm7250_vm5, %v5219_v59 }
  0xe6   : > { %6024 = vmatprep.mubr.bf16.mxu0 %v6797_v48  ;;  %v6463_v48 = vld [vmem:[%s7739_s5 + $0xe0] sm:$0xff]  }
  0xe8   : > { %5819 = vmatpush3.bf16.msra.mxu1 %v6457_v38 }
  0xe9   : > { %5820 = vmatprep.subr.bf16.mxu1 %v6459_v52 }
  0xeb   : > { %5789 = vmatmul.mubr.bf16.gmra.mrb[4].mxu1 %v7019_v58 }
  0xec   : > { %5792 = vmatprep.mubr.bf16.mxu1 %v7019_v58  ;;  %5821 = vmatpush3.bf16.msra.mxu1 %v6459_v52 }
  0xed   : > { %5822 = vmatprep.subr.bf16.mxu1 %v6461_v63  ;;  %6025 = vmatmul.mubr.bf16.vlgmr.msra.gmra.mrb[0].mxu0 %v6883_v39 }
  0xee   : > { %6057 = vmatpush3.bf16.msra.mxu0 %v6464_v25  ;;  %6028 = vmatprep.mubr.bf16.mxu0 %v6883_v39  ;;  %v6467_v39 = vld [vmem:[%s7739_s5 + $0xf0] sm:$0xff]   ;;  %v1868_v25 = vsel %vm1788_vm0, %v1817_v17, 0.0 }
  0xef   : > { %6058 = vmatprep.subr.bf16.mxu0 %v6466_v8  ;;  %v7536_v31 = vpack.c.bf16 %v1868_v25, %v1868_v25 }
  0xf0   : > { %5823 = vmatpush3.bf16.msra.mxu1 %v6461_v63 }
  0xf1   : > { %5824 = vmatprep.subr.bf16.mxu1 %v6463_v48  ;;  %v3811_v44 = vshll.u32 %v7536_v31, 16 }
  0xf2   : > { %6059 = vmatpush3.bf16.msra.mxu0 %v6466_v8 }
  0xf3   : > { %5793 = vmatmul.mubr.bf16.gmra.mrb[8].mxu1 %v7033_v24  ;;  %6060 = vmatprep.subr.bf16.mxu0 %v6468_v3  ;;  %v3813_v53 = vrot.slane %v3811_v44, 1 }
  0xf4   : > { %5796 = vmatprep.mubr.bf16.mxu1 %v7033_v24  ;;  %5825 = vmatpush3.bf16.msra.mxu1 %v6463_v48 }
  0xf5   : > { %6029 = vmatmul.mubr.bf16.gmra.mrb[4].mxu0 %v6963_v47  ;;  %5826 = vmatprep.subr.bf16.mxu1 %v6465_v13  ;;  %v3814_v6 = vsel %vm1905_vm1, %v3809_v14, %v3813_v53 }
  0xf6   : > { %6032 = vmatprep.mubr.bf16.mxu0 %v6963_v47  ;;  %6061 = vmatpush3.bf16.msra.mxu0 %v6468_v3  ;;  %v6472_v47 = vld [vmem:[%s7739_s5 + $0x228] sm:$0xff]  }
  0xf7   : > { %6062 = vmatprep.subr.bf16.mxu0 %v6470_v61 }
  0xf8   : > { %5827 = vmatpush3.bf16.msra.mxu1 %v6465_v13 }
  0xf9   : > { %5828 = vmatprep.subr.bf16.mxu1 %v6467_v39 }
  0xfa   : > { %6063 = vmatpush3.bf16.msra.mxu0 %v6470_v61 }
  0xfb   : > { %5797 = vmatmul.mubr.bf16.gmra.mrb[12].mxu1 %v7143_v22  ;;  %6064 = vmatprep.subr.bf16.mxu0 %v6471_v30 }
  0xfc   : > { %5800 = vmatprep.mubr.bf16.mxu1 %v7143_v22  ;;  %5829 = vmatpush3.bf16.msra.mxu1 %v6467_v39 }
  0xfd   : > { %6033 = vmatmul.mubr.bf16.gmra.mrb[8].mxu0 %v7023_v28  ;;  %5830 = vmatprep.subr.bf16.mxu1 %v6469_v54 }
  0xfe   : > { %6036 = vmatprep.mubr.bf16.mxu0 %v7023_v28  ;;  %6065 = vmatpush3.bf16.msra.mxu0 %v6471_v30  ;;  %v6474_v28 = vld [vmem:[%s7739_s5 + $0x238] sm:$0xff]  }
  0xff   : > { %6066 = vmatprep.subr.bf16.mxu0 %v6472_v47 }
 0x100   : > { %5831 = vmatpush3.bf16.msra.mxu1 %v6469_v54 }
 0x101   : > { %6104 = vmatprep.subr.bf16.mxu1 %v6477_v32 }
 0x102   : > { %6067 = vmatpush3.bf16.msra.mxu0 %v6472_v47 }
 0x103   : > { %5801 = vmatmul.mubr.bf16.gmra.mrb[16].mxu1 %v7157_v18  ;;  %6068 = vmatprep.subr.bf16.mxu0 %v6473_v4 }
 0x104   : > { %5804 = vmatprep.mubr.bf16.mxu1 %v7157_v18 }
 0x105   : > { %6037 = vmatmul.mubr.bf16.gmra.mrb[12].mxu0 %v7088_v41 }
 0x106   : > { %6040 = vmatprep.mubr.bf16.mxu0 %v7088_v41  ;;  %6069 = vmatpush3.bf16.msra.mxu0 %v6473_v4 }
 0x107   : > { %6070 = vmatprep.subr.bf16.mxu0 %v6474_v28 }
 0x10a   : > { %6071 = vmatpush3.bf16.msra.mxu0 %v6474_v28 }
 0x10b   : > { %5805 = vmatmul.mubr.bf16.gmra.mrb[20].mxu1 %v7230_v49 }
 0x10c   : > { %5808 = vmatprep.mubr.bf16.mxu1 %v7230_v49 }
 0x10d   : > { %6041 = vmatmul.mubr.bf16.gmra.mrb[16].mxu0 %v7153_v36 }
 0x10e   : > { %6044 = vmatprep.mubr.bf16.mxu0 %v7153_v36 }
 0x113   : > { %5809 = vmatmul.mubr.bf16.gmra.mrb[24].mxu1 %v7243_v1 }
 0x114   : > { %5812 = vmatprep.mubr.bf16.mxu1 %v7243_v1 }
 0x115   : > { %6045 = vmatmul.mubr.bf16.gmra.mrb[20].mxu0 %v7224_v2 }
 0x116   : > { %6048 = vmatprep.mubr.bf16.mxu0 %v7224_v2 }
 0x11b   : > { %5813 = vmatmul.mubr.bf16.gmra.mrb[28].mxu1 %v7260_v16 }
 0x11c   : > { %5832 = vmatprep.mubr.msk.bf16.mxu1 %vm7250_vm5, %v7271_v23 }
 0x11d   : > { %6049 = vmatmul.mubr.bf16.gmra.mrb[24].mxu0 %v7256_v40 }
 0x11e   : > { %6052 = vmatprep.mubr.bf16.mxu0 %v7256_v40 }
 0x123   : > { %5833 = vmatmul.mubr.msk.bf16.vlgmr.msra.gmra.mrb[0].mxu1 %vm7250_vm5, %v7271_v23  ;;  %v6480_v23 = vld [vmem:[%s7739_s5 + $0x118] sm:$0xff]  }
 0x124   : > { %6112 = vmatpush3.bf16.msra.mxu1 %v6477_v32  ;;  %5836 = vmatprep.mubr.msk.bf16.mxu1 %vm7250_vm5, %v7161_v7 }
 0x125   : > { %6105 = vmatprep.subr.bf16.mxu1 %v6478_v55  ;;  %6053 = vmatmul.mubr.bf16.gmra.mrb[28].mxu0 %v3814_v6 }
 0x126   : > { %6072 = vmatprep.mubr.bf16.mxu0 %v6833_v19  ;;  %v6481_v19 = vld [vmem:[%s7739_s5 + $0x120] sm:$0xff]  }
 0x128   : > { %6113 = vmatpush3.bf16.msra.mxu1 %v6478_v55 }
 0x129   : > { %6106 = vmatprep.subr.bf16.mxu1 %v6479_v45 }
 0x12b   : > { %5837 = vmatmul.mubr.msk.bf16.gmra.mrb[4].mxu1 %vm7250_vm5, %v7161_v7  ;;  %v6483_v7 = vld [vmem:[%s7739_s5 + $0x130] sm:$0xff]  }
 0x12c   : > { %5840 = vmatprep.mubr.msk.bf16.mxu1 %vm7250_vm5, %v7165_v60  ;;  %6114 = vmatpush3.bf16.msra.mxu1 %v6479_v45 }
 0x12d   : > { %6107 = vmatprep.subr.bf16.mxu1 %v6480_v23  ;;  %6073 = vmatmul.mubr.bf16.vlgmr.msra.gmra.mrb[0].mxu0 %v7019_v58 }
 0x12e   : > { %6076 = vmatprep.mubr.bf16.mxu0 %v7019_v58  ;;  %v6482_v58 = vld [vmem:[%s7739_s5 + $0x128] sm:$0xff]  }
 0x130   : > { %6115 = vmatpush3.bf16.msra.mxu1 %v6480_v23 }
 0x131   : > { %6108 = vmatprep.subr.bf16.mxu1 %v6481_v19 }
 0x133   : > { %5841 = vmatmul.mubr.msk.bf16.gmra.mrb[8].mxu1 %vm7250_vm5, %v7165_v60 }
 0x134   : > { %5844 = vmatprep.mubr.msk.bf16.mxu1 %vm7250_vm5, %v7179_v20  ;;  %6116 = vmatpush3.bf16.msra.mxu1 %v6481_v19 }
 0x135   : > { %6077 = vmatmul.mubr.bf16.gmra.mrb[4].mxu0 %v7033_v24  ;;  %6109 = vmatprep.subr.bf16.mxu1 %v6482_v58 }
 0x136   : > { %6080 = vmatprep.mubr.bf16.mxu0 %v7033_v24  ;;  %v6484_v24 = vld [vmem:[%s7739_s5 + $0x138] sm:$0xff]  }
 0x138   : > { %6117 = vmatpush3.bf16.msra.mxu1 %v6482_v58 }
 0x139   : > { %6110 = vmatprep.subr.bf16.mxu1 %v6483_v7 }
 0x13b   : > { %5845 = vmatmul.mubr.msk.bf16.gmra.mrb[12].mxu1 %vm7250_vm5, %v7179_v20 }
 0x13c   : > { %5848 = vmatprep.mubr.msk.bf16.mxu1 %vm7250_vm5, %v7183_v50  ;;  %6118 = vmatpush3.bf16.msra.mxu1 %v6483_v7 }
 0x13d   : > { %6081 = vmatmul.mubr.bf16.gmra.mrb[8].mxu0 %v7143_v22  ;;  %6111 = vmatprep.subr.bf16.mxu1 %v6484_v24 }
 0x13e   : > { %6084 = vmatprep.mubr.bf16.mxu0 %v7143_v22  ;;  %v4076_v22 = vrot.slane %v7527_v43, 1 }
 0x140   : > { %6119 = vmatpush3.bf16.msra.mxu1 %v6484_v24 }
 0x143   : > { %5849 = vmatmul.mubr.msk.bf16.gmra.mrb[16].mxu1 %vm7250_vm5, %v7183_v50 }
 0x144   : > { %5852 = vmatprep.mubr.msk.bf16.mxu1 %vm7250_vm5, %v7216_v29 }
 0x145   : > { %6085 = vmatmul.mubr.bf16.gmra.mrb[12].mxu0 %v7157_v18 }
 0x146   : > { %6088 = vmatprep.mubr.bf16.mxu0 %v7157_v18  ;;  %v4077_v18 = vrot.slane %v7536_v31, 1 }
 0x148   : > { %v4078_v60 = vsel %vm2476_vm2, %v4076_v22, %v4077_v18 }
 0x14b   : > { %5853 = vmatmul.mubr.msk.bf16.gmra.mrb[20].mxu1 %vm7250_vm5, %v7216_v29 }
 0x14c   : > { %5856 = vmatprep.mubr.msk.bf16.mxu1 %vm7250_vm5, %v7221_v9 }
 0x14d   : > { %6089 = vmatmul.mubr.bf16.gmra.mrb[16].mxu0 %v7230_v49 }
 0x14e   : > { %6092 = vmatprep.mubr.bf16.mxu0 %v7230_v49 }
 0x153   : > { %5857 = vmatmul.mubr.msk.bf16.gmra.mrb[24].mxu1 %vm7250_vm5, %v7221_v9 }
 0x154   : > { %5860 = vmatprep.mubr.msk.bf16.mxu1 %vm7250_vm5, %v7240_v0 }
 0x155   : > { %6093 = vmatmul.mubr.bf16.gmra.mrb[20].mxu0 %v7243_v1 }
 0x156   : > { %6096 = vmatprep.mubr.bf16.mxu0 %v7243_v1 }
 0x15b   : > { %5861 = vmatmul.mubr.msk.bf16.gmra.mrb[28].mxu1 %vm7250_vm5, %v7240_v0 }
 0x15c   : > { %5896 = vmatprep.mubr.bf16.mxu1 %v7088_v41 }
 0x15d   : > { %6097 = vmatmul.mubr.bf16.gmra.mrb[24].mxu0 %v7260_v16 }
 0x15e   : > { %6100 = vmatprep.mubr.bf16.mxu0 %v7260_v16 }
 0x163   : > { %5897 = vmatmul.mubr.bf16.vlgmr.msra.gmra.mrb[16].mxu1 %v7088_v41 }
 0x164   : > { %5900 = vmatprep.mubr.bf16.mxu1 %v7153_v36 }
 0x165   : > { %6101 = vmatmul.mubr.bf16.gmra.mrb[28].mxu0 %v4078_v60 }
 0x16b   : > { %5901 = vmatmul.mubr.bf16.gmra.mrb[20].mxu1 %v7153_v36  ;;  %v7643_v36 = vld [vmem:[%s7740_s6] ss:$0 sm:$0xff] }
 0x16c   : > { %5904 = vmatprep.mubr.bf16.mxu1 %v7224_v2 }
 0x173   : > { %5905 = vmatmul.mubr.bf16.gmra.mrb[24].mxu1 %v7224_v2 }
 0x174   : > { %5908 = vmatprep.mubr.bf16.mxu1 %v7256_v40 }
 0x17b   : > { %5909 = vmatmul.mubr.bf16.gmra.mrb[28].mxu1 %v7256_v40 }
 0x1f6   : > { %v5834_v20 = vpop.f32.mrb[0].mxu1 }
 0x1f7   : > { %v2870_v50 = vpop.f32.mrb[1].mxu1 }
 0x1f8   : > { %v5835_v29 = vpop.f32.mrb[2].mxu1 }
 0x1f9   : > { %v2873_v9 = vpop.f32.mrb[3].mxu1 }
 0x1fe   : > { %v5838_v49 = vpop.f32.mrb[4].mxu1 }
 0x1ff   : > { %v2886_v41 = vpop.f32.mrb[5].mxu1 }
 0x200   : > { %v5839_v0 = vpop.f32.mrb[6].mxu1  ;;  %v6074_v1 = vpop.f32.mrb[0].mxu0 }
 0x201   : > { %v2889_v15 = vpop.f32.mrb[7].mxu1  ;;  %v6120_v16 = vadd.f32 %v6074_v1, %v5834_v20  ;;  %v4179_v2 = vpop.f32.mrb[1].mxu0 }
 0x202   : > { %v6121_v35 = vadd.f32 %v4179_v2, %v2870_v50  ;;  %v6075_v34 = vpop.f32.mrb[2].mxu0 }
 0x203   : > { %v6122_v40 = vadd.f32 %v6075_v34, %v5835_v29  ;;  %v4182_v62 = vpop.f32.mrb[3].mxu0  ;;  %v4347_v10 = vadd.f32 %v6120_v16, %v7643_v36 }
 0x204   : > { %v4345_v57 = vadd.f32 %v6121_v35, %v7643_v36  ;;  %v6123_v56 = vadd.f32 %v4182_v62, %v2873_v9 }
 0x205   : > { %v4348_v42 = vadd.f32 %v6122_v40, %v7643_v36  ;;  %v4577_v3 = vmul.f32 %v4347_v10, %v4347_v10 }
 0x206   : > { %v5842_v27 = vpop.f32.mrb[8].mxu1  ;;  %v4346_v46 = vadd.f32 %v6123_v56, %v7643_v36  ;;  %v4575_v17 = vmul.f32 %v4345_v57, %v4345_v57 }
 0x207   : > { %v2902_v12 = vpop.f32.mrb[9].mxu1  ;;  %v5365_v33 = vpack.c.bf16 %v4348_v42, %v4347_v10  ;;  %v4578_v54 = vmul.f32 %v4348_v42, %v4348_v42 }
 0x208   : > { %v5843_v5 = vpop.f32.mrb[10].mxu1  ;;  %v5360_v37 = vpack.c.bf16 %v4346_v46, %v4345_v57  ;;  %v4537_v38 = vadd.f32 %v4346_v46, %v4345_v57  ;;  %v4576_v59 = vmul.f32 %v4346_v46, %v4346_v46  ;;  %v6078_v52 = vpop.f32.mrb[4].mxu0 }
 0x209   : > { %v2905_v63 = vpop.f32.mrb[11].mxu1  ;;  %5441 = vst [vmem:[%s7652_s21 + $0x8] sm:$0xff] %v5365_v33   ;;  %v6124_v8 = vadd.f32 %v6078_v52, %v5838_v49  ;;  %v4195_v48 = vpop.f32.mrb[5].mxu0 }
 0x20a   : > { %5361 = vst [vmem:[%s7652_s21] sm:$0xff] %v5360_v37   ;;  %v4538_v13 = vadd.f32 %v4537_v38, %v4347_v10  ;;  %v4607_v61 = vadd.f32 %v4576_v59, %v4575_v17  ;;  %v6125_v39 = vadd.f32 %v4195_v48, %v2886_v41  ;;  %v6079_v30 = vpop.f32.mrb[6].mxu0 }
 0x20b   : > { %v6126_v47 = vadd.f32 %v6079_v30, %v5839_v0  ;;  %v4198_v4 = vpop.f32.mrb[7].mxu0  ;;  %v4351_v25 = vadd.f32 %v6124_v8, %v7643_v36 }
 0x20c   : > { %v4608_v32 = vadd.f32 %v4607_v61, %v4577_v3  ;;  %v4349_v28 = vadd.f32 %v6125_v39, %v7643_v36  ;;  %v4539_v26 = vadd.f32 %v4538_v13, %v4348_v42  ;;  %v6127_v43 = vadd.f32 %v4198_v4, %v2889_v15 }
 0x20d   : > { %v4352_v31 = vadd.f32 %v6126_v47, %v7643_v36  ;;  %v4581_v60 = vmul.f32 %v4351_v25, %v4351_v25 }
 0x20e   : > { %v5846_v11 = vpop.f32.mrb[12].mxu1  ;;  %v4540_v21 = vadd.f32 %v4539_v26, %v4349_v28  ;;  %v4579_v51 = vmul.f32 %v4349_v28, %v4349_v28  ;;  %v4609_v44 = vadd.f32 %v4608_v32, %v4578_v54  ;;  %v4350_v14 = vadd.f32 %v6127_v43, %v7643_v36 }
 0x20f   : > { %v2918_v53 = vpop.f32.mrb[13].mxu1  ;;  %v5375_v6 = vpack.c.bf16 %v4352_v31, %v4351_v25  ;;  %v4582_v49 = vmul.f32 %v4352_v31, %v4352_v31 }
 0x210   : > { %v5847_v55 = vpop.f32.mrb[14].mxu1  ;;  %v4610_v45 = vadd.f32 %v4609_v44, %v4579_v51  ;;  %v5370_v23 = vpack.c.bf16 %v4350_v14, %v4349_v28  ;;  %v4541_v19 = vadd.f32 %v4540_v21, %v4350_v14  ;;  %v4580_v58 = vmul.f32 %v4350_v14, %v4350_v14  ;;  %v6082_v7 = vpop.f32.mrb[8].mxu0 }
 0x211   : > { %v2921_v24 = vpop.f32.mrb[15].mxu1  ;;  %5443 = vst [vmem:[%s7652_s21 + $0x18] sm:$0xff] %v5375_v6   ;;  %v6128_v22 = vadd.f32 %v6082_v7, %v5842_v27  ;;  %v4211_v18 = vpop.f32.mrb[9].mxu0 }
 0x212   : > { %5442 = vst [vmem:[%s7652_s21 + $0x10] sm:$0xff] %v5370_v23   ;;  %v4542_v20 = vadd.f32 %v4541_v19, %v4351_v25  ;;  %v4611_v50 = vadd.f32 %v4610_v45, %v4580_v58  ;;  %v6129_v29 = vadd.f32 %v4211_v18, %v2902_v12  ;;  %v6083_v9 = vpop.f32.mrb[10].mxu0 }
 0x213   : > { %v6130_v41 = vadd.f32 %v6083_v9, %v5843_v5  ;;  %v4214_v0 = vpop.f32.mrb[11].mxu0  ;;  %v4355_v35 = vadd.f32 %v6128_v22, %v7643_v36 }
 0x214   : > { %v4612_v1 = vadd.f32 %v4611_v50, %v4581_v60  ;;  %v4353_v15 = vadd.f32 %v6129_v29, %v7643_v36  ;;  %v4543_v16 = vadd.f32 %v4542_v20, %v4352_v31  ;;  %v6131_v2 = vadd.f32 %v4214_v0, %v2905_v63 }
 0x215   : > { %v4356_v34 = vadd.f32 %v6130_v41, %v7643_v36  ;;  %v4585_v37 = vmul.f32 %v4355_v35, %v4355_v35 }
 0x216   : > { %v4544_v40 = vadd.f32 %v4543_v16, %v4353_v15  ;;  %v4583_v62 = vmul.f32 %v4353_v15, %v4353_v15  ;;  %v4613_v57 = vadd.f32 %v4612_v1, %v4582_v49  ;;  %v4354_v56 = vadd.f32 %v6131_v2, %v7643_v36 }
 0x217   : > { %v5385_v10 = vpack.c.bf16 %v4356_v34, %v4355_v35  ;;  %v4586_v8 = vmul.f32 %v4356_v34, %v4356_v34 }
 0x218   : > { %v4614_v42 = vadd.f32 %v4613_v57, %v4583_v62  ;;  %v5380_v27 = vpack.c.bf16 %v4354_v56, %v4353_v15  ;;  %v4545_v46 = vadd.f32 %v4544_v40, %v4354_v56  ;;  %v4584_v12 = vmul.f32 %v4354_v56, %v4354_v56  ;;  %v6086_v33 = vpop.f32.mrb[12].mxu0 }
 0x219   : > { %5445 = vst [vmem:[%s7652_s21 + $0x28] sm:$0xff] %v5385_v10   ;;  %v6132_v5 = vadd.f32 %v6086_v33, %v5846_v11  ;;  %v4227_v17 = vpop.f32.mrb[13].mxu0 }
 0x21a   : > { %5444 = vst [vmem:[%s7652_s21 + $0x20] sm:$0xff] %v5380_v27   ;;  %v4546_v38 = vadd.f32 %v4545_v46, %v4355_v35  ;;  %v4615_v59 = vadd.f32 %v4614_v42, %v4584_v12  ;;  %v6133_v52 = vadd.f32 %v4227_v17, %v2918_v53  ;;  %v6087_v63 = vpop.f32.mrb[14].mxu0 }
 0x21b   : > { %v6134_v48 = vadd.f32 %v6087_v63, %v5847_v55  ;;  %v4230_v3 = vpop.f32.mrb[15].mxu0  ;;  %v4359_v54 = vadd.f32 %v6132_v5, %v7643_v36 }
 0x21c   : > { %v4616_v13 = vadd.f32 %v4615_v59, %v4585_v37  ;;  %v4357_v61 = vadd.f32 %v6133_v52, %v7643_v36  ;;  %v4547_v39 = vadd.f32 %v4546_v38, %v4356_v34  ;;  %v6135_v30 = vadd.f32 %v4230_v3, %v2921_v24 }
 0x21d   : > { %v4360_v47 = vadd.f32 %v6134_v48, %v7643_v36  ;;  %v4589_v14 = vmul.f32 %v4359_v54, %v4359_v54 }
 0x21e   : > { %v4548_v4 = vadd.f32 %v4547_v39, %v4357_v61  ;;  %v4587_v32 = vmul.f32 %v4357_v61, %v4357_v61  ;;  %v4617_v28 = vadd.f32 %v4616_v13, %v4586_v8  ;;  %v4358_v26 = vadd.f32 %v6135_v30, %v7643_v36 }
 0x21f   : > { %v5395_v43 = vpack.c.bf16 %v4360_v47, %v4359_v54  ;;  %v4590_v23 = vmul.f32 %v4360_v47, %v4360_v47 }
 0x220   : > { %v4618_v25 = vadd.f32 %v4617_v28, %v4587_v32  ;;  %v5390_v31 = vpack.c.bf16 %v4358_v26, %v4357_v61  ;;  %v4549_v11 = vadd.f32 %v4548_v4, %v4358_v26  ;;  %v4588_v21 = vmul.f32 %v4358_v26, %v4358_v26  ;;  %v6090_v51 = vpop.f32.mrb[16].mxu0 }
 0x221   : > { %5447 = vst [vmem:[%s7652_s21 + $0x38] sm:$0xff] %v5395_v43   ;;  %v4243_v44 = vpop.f32.mrb[17].mxu0 }
 0x222   : > { %5446 = vst [vmem:[%s7652_s21 + $0x30] sm:$0xff] %v5390_v31   ;;  %v4550_v53 = vadd.f32 %v4549_v11, %v4359_v54  ;;  %v4619_v6 = vadd.f32 %v4618_v25, %v4588_v21  ;;  %v6091_v55 = vpop.f32.mrb[18].mxu0 }
 0x223   : > { %v4246_v45 = vpop.f32.mrb[19].mxu0 }
 0x224   : > { %v4620_v19 = vadd.f32 %v4619_v6, %v4589_v14  ;;  %v4551_v58 = vadd.f32 %v4550_v53, %v4360_v47 }
 0x226   : > { %v4621_v7 = vadd.f32 %v4620_v19, %v4590_v23 }
 0x228   : > { %v6094_v24 = vpop.f32.mrb[20].mxu0 }
 0x229   : > { %v4259_v22 = vpop.f32.mrb[21].mxu0 }
 0x22a   : > { %v6095_v18 = vpop.f32.mrb[22].mxu0 }
 0x22b   : > { %v4262_v60 = vpop.f32.mrb[23].mxu0 }
 0x230   : > { %v6098_v20 = vpop.f32.mrb[24].mxu0 }
 0x231   : > { %v4275_v50 = vpop.f32.mrb[25].mxu0 }
 0x232   : > { %v7675_v29 = vpop.f32.mrb[26].mxu0 }
 0x233   : > { %v7677_v9 = vpop.f32.mrb[27].mxu0 }
 0x236   : > { %v5898_v49 = vpop.f32.mrb[16].mxu1 }
 0x237   : > { %v6136_v41 = vadd.f32 %v6090_v51, %v5898_v49  ;;  %v3192_v0 = vpop.f32.mrb[17].mxu1 }
 0x238   : > { %v6137_v1 = vadd.f32 %v4243_v44, %v3192_v0  ;;  %v5899_v15 = vpop.f32.mrb[18].mxu1  ;;  %v7679_v16 = vpop.f32.mrb[28].mxu0 }
 0x239   : > { %v6138_v2 = vadd.f32 %v6091_v55, %v5899_v15  ;;  %v3195_v35 = vpop.f32.mrb[19].mxu1  ;;  %v7681_v34 = vpop.f32.mrb[29].mxu0  ;;  %v4363_v56 = vadd.f32 %v6136_v41, %v7643_v36 }
 0x23a   : > { %v4361_v40 = vadd.f32 %v6137_v1, %v7643_v36  ;;  %v6139_v62 = vadd.f32 %v4246_v45, %v3195_v35  ;;  %v7684_v57 = vpop.f32.mrb[30].mxu0 }
 0x23b   : > { %v4364_v10 = vadd.f32 %v6138_v2, %v7643_v36  ;;  %v7688_v42 = vpop.f32.mrb[31].mxu0  ;;  %v4593_v8 = vmul.f32 %v4363_v56, %v4363_v56 }
 0x23c   : > { %v4552_v27 = vadd.f32 %v4551_v58, %v4361_v40  ;;  %v4591_v46 = vmul.f32 %v4361_v40, %v4361_v40  ;;  %v4362_v12 = vadd.f32 %v6139_v62, %v7643_v36 }
 0x23d   : > { %v5405_v33 = vpack.c.bf16 %v4364_v10, %v4363_v56  ;;  %v4594_v39 = vmul.f32 %v4364_v10, %v4364_v10 }
 0x23e   : > { %v4622_v5 = vadd.f32 %v4621_v7, %v4591_v46  ;;  %v5400_v17 = vpack.c.bf16 %v4362_v12, %v4361_v40  ;;  %v4553_v37 = vadd.f32 %v4552_v27, %v4362_v12  ;;  %v4592_v38 = vmul.f32 %v4362_v12, %v4362_v12  ;;  %v5902_v59 = vpop.f32.mrb[20].mxu1 }
 0x23f   : > { %5449 = vst [vmem:[%s7652_s21 + $0x48] sm:$0xff] %v5405_v33   ;;  %v6140_v52 = vadd.f32 %v6094_v24, %v5902_v59  ;;  %v3208_v63 = vpop.f32.mrb[21].mxu1 }
 0x240   : > { %5448 = vst [vmem:[%s7652_s21 + $0x40] sm:$0xff] %v5400_v17   ;;  %v4554_v48 = vadd.f32 %v4553_v37, %v4363_v56  ;;  %v4623_v3 = vadd.f32 %v4622_v5, %v4592_v38  ;;  %v6141_v13 = vadd.f32 %v4259_v22, %v3208_v63  ;;  %v5903_v61 = vpop.f32.mrb[22].mxu1 }
 0x241   : > { %v6142_v30 = vadd.f32 %v6095_v18, %v5903_v61  ;;  %v3211_v54 = vpop.f32.mrb[23].mxu1  ;;  %v4367_v26 = vadd.f32 %v6140_v52, %v7643_v36 }
 0x242   : > { %v4624_v47 = vadd.f32 %v4623_v3, %v4593_v8  ;;  %v4365_v4 = vadd.f32 %v6141_v13, %v7643_v36  ;;  %v4555_v32 = vadd.f32 %v4554_v48, %v4364_v10  ;;  %v6143_v28 = vadd.f32 %v4262_v60, %v3211_v54 }
 0x243   : > { %v4368_v43 = vadd.f32 %v6142_v30, %v7643_v36  ;;  %v4597_v19 = vmul.f32 %v4367_v26, %v4367_v26 }
 0x244   : > { %v4556_v25 = vadd.f32 %v4555_v32, %v4365_v4  ;;  %v4595_v31 = vmul.f32 %v4365_v4, %v4365_v4  ;;  %v4625_v11 = vadd.f32 %v4624_v47, %v4594_v39  ;;  %v4366_v21 = vadd.f32 %v6143_v28, %v7643_v36 }
 0x245   : > { %v5415_v51 = vpack.c.bf16 %v4368_v43, %v4367_v26  ;;  %v4598_v18 = vmul.f32 %v4368_v43, %v4368_v43 }
 0x246   : > { %v4626_v44 = vadd.f32 %v4625_v11, %v4595_v31  ;;  %v5410_v14 = vpack.c.bf16 %v4366_v21, %v4365_v4  ;;  %v4557_v53 = vadd.f32 %v4556_v25, %v4366_v21  ;;  %v4596_v6 = vmul.f32 %v4366_v21, %v4366_v21  ;;  %v5906_v55 = vpop.f32.mrb[24].mxu1 }
 0x247   : > { %5451 = vst [vmem:[%s7652_s21 + $0x58] sm:$0xff] %v5415_v51   ;;  %v6144_v45 = vadd.f32 %v6098_v20, %v5906_v55  ;;  %v3224_v23 = vpop.f32.mrb[25].mxu1 }
 0x248   : > { %5450 = vst [vmem:[%s7652_s21 + $0x50] sm:$0xff] %v5410_v14   ;;  %v4558_v58 = vadd.f32 %v4557_v53, %v4367_v26  ;;  %v4627_v7 = vadd.f32 %v4626_v44, %v4596_v6  ;;  %v6145_v24 = vadd.f32 %v4275_v50, %v3224_v23  ;;  %v5907_v22 = vpop.f32.mrb[26].mxu1 }
 0x249   : > { %v6146_v60 = vadd.f32 %v7675_v29, %v5907_v22  ;;  %v3227_v49 = vpop.f32.mrb[27].mxu1  ;;  %v4371_v20 = vadd.f32 %v6144_v45, %v7643_v36 }
 0x24a   : > { %v4628_v41 = vadd.f32 %v4627_v7, %v4597_v19  ;;  %v4369_v0 = vadd.f32 %v6145_v24, %v7643_v36  ;;  %v4559_v1 = vadd.f32 %v4558_v58, %v4368_v43  ;;  %v6147_v15 = vadd.f32 %v7677_v9, %v3227_v49 }
 0x24b   : > { %v4372_v2 = vadd.f32 %v6146_v60, %v7643_v36  ;;  %v4601_v5 = vmul.f32 %v4371_v20, %v4371_v20 }
 0x24c   : > { %v4560_v35 = vadd.f32 %v4559_v1, %v4369_v0  ;;  %v4599_v40 = vmul.f32 %v4369_v0, %v4369_v0  ;;  %v4629_v50 = vadd.f32 %v4628_v41, %v4598_v18  ;;  %v4370_v62 = vadd.f32 %v6147_v15, %v7643_v36 }
 0x24d   : > { %v5425_v56 = vpack.c.bf16 %v4372_v2, %v4371_v20  ;;  %v4602_v52 = vmul.f32 %v4372_v2, %v4372_v2 }
 0x24e   : > { %v4630_v29 = vadd.f32 %v4629_v50, %v4599_v40  ;;  %v5420_v10 = vpack.c.bf16 %v4370_v62, %v4369_v0  ;;  %v4561_v27 = vadd.f32 %v4560_v35, %v4370_v62  ;;  %v4600_v46 = vmul.f32 %v4370_v62, %v4370_v62  ;;  %v5910_v12 = vpop.f32.mrb[28].mxu1 }
 0x24f   : > { %5453 = vst [vmem:[%s7652_s21 + $0x68] sm:$0xff] %v5425_v56   ;;  %v6148_v33 = vadd.f32 %v7679_v16, %v5910_v12  ;;  %v3240_v9 = vpop.f32.mrb[29].mxu1 }
 0x250   : > { %5452 = vst [vmem:[%s7652_s21 + $0x60] sm:$0xff] %v5420_v10   ;;  %v4562_v17 = vadd.f32 %v4561_v27, %v4371_v20  ;;  %v4631_v37 = vadd.f32 %v4630_v29, %v4600_v46  ;;  %v6149_v38 = vadd.f32 %v7681_v34, %v3240_v9  ;;  %v5911_v59 = vpop.f32.mrb[30].mxu1 }
 0x251   : > { %v6150_v63 = vadd.f32 %v7684_v57, %v5911_v59  ;;  %v3243_v8 = vpop.f32.mrb[31].mxu1  ;;  %v4375_v61 = vadd.f32 %v6148_v33, %v7643_v36 }
 0x252   : > { %v4632_v48 = vadd.f32 %v4631_v37, %v4601_v5  ;;  %v4373_v3 = vadd.f32 %v6149_v38, %v7643_v36  ;;  %v4563_v13 = vadd.f32 %v4562_v17, %v4372_v2  ;;  %v6151_v16 = vadd.f32 %v7688_v42, %v3243_v8 }
 0x253   : > { %v4376_v39 = vadd.f32 %v6150_v63, %v7643_v36  ;;  %v4605_v43 = vmul.f32 %v4375_v61, %v4375_v61 }
 0x254   : > { %v4564_v30 = vadd.f32 %v4563_v13, %v4373_v3  ;;  %v4603_v54 = vmul.f32 %v4373_v3, %v4373_v3  ;;  %v4633_v34 = vadd.f32 %v4632_v48, %v4602_v52  ;;  %v4374_v47 = vadd.f32 %v6151_v16, %v7643_v36 }
 0x255   : > { %v5435_v4 = vpack.c.bf16 %v4376_v39, %v4375_v61  ;;  %v4606_v31 = vmul.f32 %v4376_v39, %v4376_v39 }
 0x256   : > { %v4634_v57 = vadd.f32 %v4633_v34, %v4603_v54  ;;  %v5430_v32 = vpack.c.bf16 %v4374_v47, %v4373_v3  ;;  %v4565_v28 = vadd.f32 %v4564_v30, %v4374_v47  ;;  %v4604_v26 = vmul.f32 %v4374_v47, %v4374_v47 }
 0x257   : > { %5455 = vst [vmem:[%s7652_s21 + $0x78] sm:$0xff] %v5435_v4  }
 0x258   : > { %5454 = vst [vmem:[%s7652_s21 + $0x70] sm:$0xff] %v5430_v32   ;;  %v4566_v25 = vadd.f32 %v4565_v28, %v4375_v61  ;;  %v4635_v42 = vadd.f32 %v4634_v57, %v4604_v26 }
 0x25a   : > { %v4567_v11 = vadd.f32 %v4566_v25, %v4376_v39  ;;  %v4636_v21 = vadd.f32 %v4635_v42, %v4605_v43 }
 0x25c   : > { %v4568_v51 = vrot.slane %v4567_v11, 4  ;;  %v4637_v44 = vadd.f32 %v4636_v21, %v4606_v31 }
 0x25e   : > { %v4569_v14 = vadd.f32 %v4568_v51, %v4567_v11  ;;  %v4638_v53 = vrot.slane %v4637_v44, 4 }
 0x260   : > { %v4570_v36 = vrot.slane %v4569_v14, 2  ;;  %v4639_v6 = vadd.f32 %v4638_v53, %v4637_v44 }
 0x262   : > { %v4571_v55 = vadd.f32 %v4570_v36, %v4569_v14  ;;  %v4640_v45 = vrot.slane %v4639_v6, 2 }
 0x264   : > { %v4572_v23 = vrot.slane %v4571_v55, 1  ;;  %v4641_v19 = vadd.f32 %v4640_v45, %v4639_v6 }
 0x266   : > { %v4573_v58 = vadd.f32 %v4572_v23, %v4571_v55  ;;  %v4642_v7 = vrot.slane %v4641_v19, 1 }
 0x268   : > { %4574 = vst [vmem:[%s546_s25] sm:$0x1] %v4573_v58  ;;  %v4643_v24 = vadd.f32 %v4642_v7, %v4641_v19 }
 0x26a   : > { %4644 = vst [vmem:[%s552_s28] sm:$0x1] %v4643_v24 }
 0x26b PF: > { %s20_s11 = sadd.s32 1, %s6507_s11   ;;  %s7746_s30 = smov %s6503_s10 }
 0x26c   : > { %p17_p5 = scmp.ge.s32.totalorder %s20_s11, 4   ;;  %s7747_s10 = smov %s7749_s12 }
 0x26e   :  { %19 = sbr.rel (!%p17_p5) target bundleno = 2 (0x2), region = 122 }

// kernel: gblock_forward.3
= control target key start
LH: loop header
LB: loop body
LE: loop exit
PB: predicated region body
PF: predicated region fallthrough
CT: control target
= control target key end

     0   :  { %s6987_s13 = smov 0   ;;  %s6989_s14 = smov 0   ;;  %s8578_s0 = inlined_call_operand.vmem [shape: bf16[2,16,16,128], index: 0, kind: input, shape index: {}, may-alias: {0,1,2}]   ;;  %s8579_s1 = inlined_call_operand.vmem [shape: bf16[2,16,16,128], index: 1, kind: input, shape index: {}, may-alias: {0,1,2}]   ;;  %s8580_s2 = inlined_call_operand.vmem [shape: bf16[2,16,16,128], index: 2, kind: input, shape index: {}, may-alias: {0,1,2}]   ;;  %s8581_s3 = inlined_call_operand.vmem [shape: f32[2,1,128], index: 3, kind: input, shape index: {}]   ;;  %s8582_s4 = inlined_call_operand.vmem [shape: f32[2,1,128], index: 4, kind: input, shape index: {}]   ;;  %s8583_s5 = inlined_call_operand.vmem [shape: bf16[3,3,128,128], index: 5, kind: input, shape index: {}]   ;;  %s8584_s6 = inlined_call_operand.vmem [shape: f32[1,128], index: 6, kind: input, shape index: {}]   ;;  %s8585_s7 = inlined_call_operand.vmem [shape: bf16[2,8,8,128], index: 7, kind: input, shape index: {}]   ;;  %s8586_s8 = inlined_call_operand.vmem [shape: bf16[128,128], index: 8, kind: input, shape index: {}]   ;;  %s8587_s9 = inlined_call_operand.vmem [shape: f32[1,128], index: 9, kind: input, shape index: {}]   ;;  %s8588_s10 = inlined_call_operand.vmem [shape: bf16[2,16,16,128], index: 10, kind: output, shape index: {}]  }
   0x1   :  { %s6991_s15 = smov 0  }
   0x2 LB: > { %s32_s16 = sadd.s32 1, %s6923_s14  ;;  %p5138_p0 = scmp.ge.s32.totalorder %s6927_s15, 1  ;;  %s6927_s15 = sphi %s6991_s15, %s20_s15   ;;  %s6923_s14 = sphi %s6989_s14, %s8674_s14   ;;  %s6919_s13 = sphi %s6987_s13, %s8673_s13  }
   0x3   : > { %p34_p1 = scmp.ge.s32.totalorder %s32_s16, 2  ;;  %p431_p2 = scmp.lt.s32.totalorder %s6927_s15, 3 }
   0x5   : > { %s8676_s16 = smov (%p34_p1, %s32_s16), 0  ;;  %p432_p3 = pnand %p5138_p0, %p431_p2 }
   0x7   : > { %435 = sbr.rel (%p432_p3) target bundleno = 648 (0x288), region = 60 }
   0xe   : > { %v6811_v0 = vld [vmem:[%s8583_s5 + $0x40] sm:$0xff]   ;;  %v6813_v2 = vld [vmem:[%s8583_s5 + $0x48] sm:$0xff]   ;;  %p524_p4 = scmp.lt.s32.totalorder %s6919_s13, 1  ;;  %v6815_v4 = vld [vmem:[%s8583_s5 + $0x50] sm:$0xff]   ;;  %vm835_vm0 = vcmask 1040384   ;;  %vm1708_vm2 = vcmask 1046528  }
   0xf   : > { %v6812_v1 = vld [vmem:[%s8583_s5 + $0x100] sm:$0xff]   ;;  %6040 = vmatprep.subr.bf16.mxu1 %v6811_v0  ;;  %v6814_v3 = vld [vmem:[%s8583_s5 + $0x108] sm:$0xff]   ;;  %v6816_v5 = vld [vmem:[%s8583_s5 + $0x110] sm:$0xff]   ;;  %vm1032_vm1 = vsmask.f32 7424  ;;  %vm6929_vm4 = vmmov 1  }
  0x10   : > { %6232 = vmatprep.subr.bf16.mxu0 %v6812_v1  ;;  %6041 = vmatpush3.bf16.msra.mxu1 %v6811_v0  ;;  %s8678_s13 = smov (!%p524_p4, %s6919_s13), 1  ;;  %v6817_v6 = vld [vmem:[%s8583_s5 + $0x58] sm:$0xff]   ;;  %v6819_v8 = vld [vmem:[%s8583_s5 + $0x60] sm:$0xff]   ;;  %v6821_v10 = vld [vmem:[%s8583_s5 + $0x68] sm:$0xff]  }
  0x11   : > { %6233 = vmatpush3.bf16.msra.mxu0 %v6812_v1  ;;  %6042 = vmatprep.subr.bf16.mxu1 %v6813_v2  ;;  %v6818_v7 = vld [vmem:[%s8583_s5 + $0x118] sm:$0xff]   ;;  %s7032_s17 = sshll.u32 %s8678_s13, 7  ;;  %v6820_v9 = vld [vmem:[%s8583_s5 + $0x120] sm:$0xff]   ;;  %s7048_s27 = scalar_lea.vmem %s8581_s3, %s8678_s13  ;;  %v6822_v11 = vld [vmem:[%s8583_s5 + $0x128] sm:$0xff]  }
  0x12   : > { %6234 = vmatprep.subr.bf16.mxu0 %v6814_v3  ;;  %s532_s24 = scalar_lea.vmem %s8578_s0, %s7032_s17  ;;  %s7054_s30 = scalar_lea.vmem %s8579_s1, %s7032_s17  ;;  %v7069_v12 = vld [vmem:[%s7048_s27] ss:$0 sm:$0xff]  ;;  %v6823_v25 = vld [vmem:[%s8583_s5 + $0x70] sm:$0xff]   ;;  %v6825_v42 = vld [vmem:[%s8583_s5 + $0x78] sm:$0xff]  }
  0x13   : > { %s7060_s18 = scalar_lea.vmem %s8582_s4, %s8678_s13  ;;  %v5630_v13 = vld [vmem:[%s532_s24] sm:$0xff]   ;;  %v5782_v20 = vld [vmem:[%s7054_s30 + $0x8] sm:$0xff]   ;;  %v5783_v28 = vld [vmem:[%s7054_s30 + $0x10] sm:$0xff]   ;;  %s5594_s11 = sadd.s32 120, %s7032_s17 }
  0x14   : > { %6043 = vmatpush3.bf16.msra.mxu1 %v6813_v2  ;;  %v7072_v14 = vld [vmem:[%s7060_s18] ss:$0 sm:$0xff]  ;;  %v5631_v15 = vunpack.c.l.bf16 %v5630_v13  ;;  %v5632_v16 = vunpack.c.h.bf16 %v5630_v13  ;;  %v5639_v23 = vunpack.c.l.bf16 %v5782_v20  ;;  %v5640_v24 = vunpack.c.h.bf16 %v5782_v20  ;;  %v6824_v29 = vld [vmem:[%s8583_s5 + $0x130] sm:$0xff]   ;;  %v6826_v43 = vld [vmem:[%s8583_s5 + $0x138] sm:$0xff]   ;;  %s560_s21 = scalar_lea.vmem %s8580_s2, %s5594_s11  ;;  %s5595_s28 = sshll.u32 %s8678_s13, 5 }
  0x15   : > { %6235 = vmatpush3.bf16.msra.mxu0 %v6814_v3  ;;  %6044 = vmatprep.subr.bf16.mxu1 %v6815_v4  ;;  %v5634_v17 = vld [vmem:[%s7054_s30] sm:$0xff]   ;;  %v5643_v36 = vunpack.c.l.bf16 %v5783_v28  ;;  %v5644_v37 = vunpack.c.h.bf16 %v5783_v28  ;;  %vm5183_vm3 = vmneg %vm835_vm0  ;;  %s7984_s12 = scalar_lea.vmem %s8585_s7, %s5595_s28 }
  0x16   : > { %6236 = vmatprep.subr.bf16.mxu0 %v6816_v5  ;;  %v5635_v18 = vunpack.c.l.bf16 %v5634_v17  ;;  %v5636_v19 = vunpack.c.h.bf16 %v5634_v17  ;;  %v645_v21 = vmul.f32 %v5631_v15, %v7069_v12  ;;  %v646_v22 = vmul.f32 %v5632_v16, %v7069_v12  ;;  %v7106_v54 = vld [vmem:[%s8583_s5] sm:$0xff]   ;;  %vm7660_vm5 = vmpackc.low %vm6929_vm4, %vm5183_vm3 }
  0x17   : > { %v694_v32 = vmul.f32 %v5639_v23, %v7069_v12  ;;  %v695_v33 = vmul.f32 %v5640_v24, %v7069_v12  ;;  %v696_v46 = vmul.f32 %v5643_v36, %v7069_v12  ;;  %v697_v47 = vmul.f32 %v5644_v37, %v7069_v12  ;;  %v7120_v0 = vld [vmem:[%s8583_s5 + $0x140] sm:$0xff]   ;;  %v5784_v24 = vld [vmem:[%s7054_s30 + $0x18] sm:$0xff]  }
  0x18   : > { %6045 = vmatpush3.bf16.msra.mxu1 %v6815_v4  ;;  %v692_v26 = vmul.f32 %v5635_v18, %v7069_v12  ;;  %v693_v27 = vmul.f32 %v5636_v19, %v7069_v12  ;;  %v653_v30 = vadd.f32 %v7072_v14, %v645_v21  ;;  %v654_v31 = vadd.f32 %v7072_v14, %v646_v22 }
  0x19   : > { %6237 = vmatpush3.bf16.msra.mxu0 %v6816_v5  ;;  %6046 = vmatprep.subr.bf16.mxu1 %v6817_v6  ;;  %v726_v40 = vadd.f32 %v7072_v14, %v694_v32  ;;  %v727_v41 = vadd.f32 %v7072_v14, %v695_v33  ;;  %v728_v55 = vadd.f32 %v7072_v14, %v696_v46  ;;  %v5785_v33 = vld [vmem:[%s7054_s30 + $0x20] sm:$0xff]  }
  0x1a   : > { %6238 = vmatprep.subr.bf16.mxu0 %v6818_v7  ;;  %v724_v34 = vadd.f32 %v7072_v14, %v692_v26  ;;  %v725_v35 = vadd.f32 %v7072_v14, %v693_v27  ;;  %v655_v38 = vmax.f32 %v653_v30, 0.0  ;;  %v656_v39 = vmax.f32 %v654_v31, 0.0 }
  0x1b   : > { %v758_v50 = vmax.f32 %v726_v40, 0.0  ;;  %v759_v51 = vmax.f32 %v727_v41, 0.0  ;;  %v729_v56 = vadd.f32 %v7072_v14, %v697_v47  ;;  %v760_v1 = vmax.f32 %v728_v55, 0.0 }
  0x1c   : > { %6047 = vmatpush3.bf16.msra.mxu1 %v6817_v6  ;;  %v756_v44 = vmax.f32 %v724_v34, 0.0  ;;  %v757_v45 = vmax.f32 %v725_v35, 0.0  ;;  %v658_v48 = vmul.f32 0.0, %v655_v38  ;;  %v659_v49 = vmul.f32 0.0, %v656_v39  ;;  %v5786_v34 = vld [vmem:[%s7054_s30 + $0x28] sm:$0xff]  }
  0x1d   : > { %6239 = vmatpush3.bf16.msra.mxu0 %v6818_v7  ;;  %6048 = vmatprep.subr.bf16.mxu1 %v6819_v8  ;;  %v7112_v59 = vrot.slane %v758_v50, 7  ;;  %v843_v60 = vrot.slane %v759_v51, 7  ;;  %v761_v23 = vmax.f32 %v729_v56, 0.0  ;;  %v7163_v32 = vrot.slane %v760_v1, 7  ;;  %v6830_v50 = vld [vmem:[%s8583_s5 + $0x8] sm:$0xff]   ;;  %v6833_v1 = vld [vmem:[%s8583_s5 + $0x10] sm:$0xff]  }
  0x1e   : > { %6240 = vmatprep.subr.bf16.mxu0 %v6820_v9  ;;  %v839_v52 = vrot.slane %v756_v44, 7  ;;  %v840_v53 = vrot.slane %v757_v45, 7  ;;  %v7110_v57 = vrot.slane %v658_v48, 7  ;;  %v837_v58 = vrot.slane %v659_v49, 7 }
  0x1f   : > { %v7144_v13 = vsel %vm835_vm0, %v7112_v59, %v843_v60  ;;  %v946_v15 = vsel %vm835_vm0, 0.0, %v7112_v59  ;;  %v964_v21 = vsel %vm835_vm0, %v843_v60, 0.0  ;;  %v846_v37 = vrot.slane %v761_v23, 7 }
  0x20   : > { %6049 = vmatpush3.bf16.msra.mxu1 %v6819_v8  ;;  %v841_v61 = vsel %vm835_vm0, %v839_v52, %v840_v53  ;;  %v945_v62 = vsel %vm835_vm0, 0.0, %v839_v52  ;;  %v963_v63 = vsel %vm835_vm0, %v840_v53, 0.0  ;;  %v7124_v2 = vsel %vm835_vm0, %v7110_v57, %v837_v58 }
  0x21   : > { %6241 = vmatpush3.bf16.msra.mxu0 %v6820_v9  ;;  %6050 = vmatprep.subr.bf16.mxu1 %v6821_v10  ;;  %v944_v3 = vsel %vm835_vm0, 0.0, %v7110_v57  ;;  %v962_v4 = vsel %vm835_vm0, %v837_v58, 0.0  ;;  %v7129_v5 = vpack.c.bf16 %v841_v61, %v945_v62  ;;  %v7136_v8 = vpack.c.bf16 %v963_v63, %v963_v63 }
  0x22   : > { %6242 = vmatprep.subr.bf16.mxu0 %v6822_v11  ;;  %v7132_v6 = vpack.c.bf16 %v7124_v2, %v944_v3  ;;  %v7134_v7 = vpack.c.bf16 %v962_v4, %v962_v4  ;;  %v7138_v9 = vpack.c.bf16 %v841_v61, %v839_v52  ;;  %v7155_v22 = vpack.c.bf16 %v7144_v13, %v946_v15  ;;  %v6829_v52 = vld [vmem:[%s8583_s5 + $0x148] sm:$0xff]   ;;  %v5787_v3 = vld [vmem:[%s7054_s30 + $0x30] sm:$0xff]  }
  0x23   : > { %v1053_v19 = vshll.u32 %v7136_v8, 16  ;;  %v7159_v28 = vpack.c.bf16 %v964_v21, %v964_v21  ;;  %v5647_v38 = vunpack.c.l.bf16 %v5784_v24  ;;  %v947_v41 = vsel %vm835_vm0, 0.0, %v7163_v32  ;;  %v6831_v21 = vld [vmem:[%s8583_s5 + $0x150] sm:$0xff]  }
  0x24   : > { %6051 = vmatpush3.bf16.msra.mxu1 %v6821_v10  ;;  %8621 = vst [vmem:[#allocation2_spill] sm:$0xff] %v7132_v6  ;;  %8622 = vst [vmem:[#allocation3_spill] sm:$0xff] %v7134_v7  ;;  %v1046_v10 = vshrl.u32 %v7129_v5, 16  ;;  %v1034_v16 = vshrl.u32 %v7132_v6, 16  ;;  %v1036_v17 = vshll.u32 %v7132_v6, 16  ;;  %v1041_v18 = vshll.u32 %v7134_v7, 16 }
  0x25   : > { %6243 = vmatpush3.bf16.msra.mxu0 %v6822_v11  ;;  %6052 = vmatprep.subr.bf16.mxu1 %v6823_v25  ;;  %v1048_v11 = vshll.u32 %v7129_v5, 16  ;;  %v1055_v27 = vrot.slane %v1053_v19, 1  ;;  %v1058_v30 = vshrl.u32 %v7155_v22, 16  ;;  %v1060_v31 = vshll.u32 %v7155_v22, 16 }
  0x26   : > { %6244 = vmatprep.subr.bf16.mxu0 %v6824_v29  ;;  %v1043_v26 = vrot.slane %v1041_v18, 1  ;;  %v1065_v36 = vshll.u32 %v7159_v28, 16  ;;  %v7174_v45 = vsel %vm835_vm0, %v7163_v32, %v846_v37  ;;  %v965_v46 = vsel %vm835_vm0, %v846_v37, 0.0 }
  0x27   : > { %v1050_v20 = vrot.slane %v1048_v11, 1  ;;  %v1062_v40 = vrot.slane %v1060_v31, 1  ;;  %v7178_v48 = vpack.c.bf16 %v7174_v45, %v947_v41  ;;  %v7180_v49 = vpack.c.bf16 %v965_v46, %v965_v46 }
  0x28   : > { %6053 = vmatpush3.bf16.msra.mxu1 %v6823_v25  ;;  %v1038_v25 = vrot.slane %v1036_v17, 1  ;;  %v1067_v44 = vrot.slane %v1065_v36, 1  ;;  %v698_v51 = vmul.f32 %v5647_v38, %v7069_v12  ;;  %v5651_v55 = vunpack.c.l.bf16 %v5785_v33  ;;  %v6832_v36 = vld [vmem:[%s8583_s5 + $0x158] sm:$0xff]  }
  0x29   : > { %6245 = vmatpush3.bf16.msra.mxu0 %v6824_v29  ;;  %6054 = vmatprep.subr.bf16.mxu1 %v6825_v42  ;;  %v1051_v29 = vor.u32 %v1050_v20, %v1046_v10  ;;  %v1063_v47 = vor.u32 %v1062_v40, %v1058_v30  ;;  %v5652_v56 = vunpack.c.h.bf16 %v5785_v33  ;;  %v5655_v58 = vunpack.c.l.bf16 %v5786_v34 }
  0x2a   : > { %6246 = vmatprep.subr.bf16.mxu0 %v6826_v43  ;;  %v1039_v35 = vor.u32 %v1038_v25, %v1034_v16  ;;  %v1070_v61 = vshrl.u32 %v7178_v48, 16  ;;  %v1072_v62 = vshll.u32 %v7178_v48, 16  ;;  %v1077_v63 = vshll.u32 %v7180_v49, 16 }
  0x2b   : > { %v1056_v39 = vsel %vm1032_vm1, %v1051_v29, %v1055_v27  ;;  %v7191_v60 = vsel %vm1032_vm1, %v1063_v47, %v1067_v44  ;;  %v730_v4 = vadd.f32 %v7072_v14, %v698_v51  ;;  %v5656_v11 = vunpack.c.h.bf16 %v5786_v34  ;;  %v6836_v34 = vld [vmem:[%s8583_s5 + $0x18] sm:$0xff]   ;;  %v6839_v44 = vld [vmem:[%s8583_s5 + $0x20] sm:$0xff]  }
  0x2c   : > { %6055 = vmatpush3.bf16.msra.mxu1 %v6825_v42  ;;  %v5648_v42 = vunpack.c.h.bf16 %v5784_v24  ;;  %6248 = vmatprep.mubr.bf16.mxu0 %v1056_v39  ;;  %8623 = vst [vmem:[#allocation4_spill] sm:$0xff] %v7191_v60  ;;  %v1074_v15 = vrot.slane %v1072_v62, 1  ;;  %v1079_v16 = vrot.slane %v1077_v63, 1  ;;  %v701_v17 = vmul.f32 %v5652_v56, %v7069_v12 }
  0x2d   : > { %6247 = vmatpush3.bf16.msra.mxu0 %v6826_v43  ;;  %6088 = vmatprep.subr.bf16.mxu1 %v7106_v54  ;;  %v1044_v43 = vsel %vm1032_vm1, %v1039_v35, %v1043_v26  ;;  %v702_v18 = vmul.f32 %v5655_v58, %v7069_v12  ;;  %v762_v19 = vmax.f32 %v730_v4, 0.0  ;;  %v703_v24 = vmul.f32 %v5656_v11, %v7069_v12  ;;  %v5788_v11 = vld [vmem:[%s7054_s30 + $0x38] sm:$0xff]  }
  0x2e   : > { %6280 = vmatprep.subr.bf16.mxu0 %v7120_v0  ;;  %6056 = vmatprep.mubr.bf16.mxu1 %v1044_v43  ;;  %v699_v53 = vmul.f32 %v5648_v42, %v7069_v12  ;;  %v1075_v25 = vor.u32 %v1074_v15, %v1070_v61  ;;  %v5659_v27 = vunpack.c.l.bf16 %v5787_v3 }
  0x2f   : > { %6057 = vmatmul.mubr.bf16.vlgmr.msra.gmra.mrb[0].mxu1 %v1056_v39  ;;  %v734_v26 = vadd.f32 %v7072_v14, %v702_v18  ;;  %v7216_v29 = vrot.slane %v762_v19, 7  ;;  %v735_v33 = vadd.f32 %v7072_v14, %v703_v24  ;;  %v5660_v39 = vunpack.c.h.bf16 %v5787_v3 }
  0x30   : > { %6089 = vmatpush3.bf16.msra.mxu1 %v7106_v54  ;;  %6249 = vmatmul.mubr.bf16.vlgmr.msra.gmra.mrb[0].mxu0 %v7191_v60  ;;  %v731_v10 = vadd.f32 %v7072_v14, %v699_v53  ;;  %v700_v54 = vmul.f32 %v5651_v55, %v7069_v12  ;;  %v7223_v35 = vsel %vm1032_vm1, %v1075_v25, %v1079_v16 }
  0x31   : > { %6060 = vmatprep.mubr.bf16.mxu1 %v7191_v60  ;;  %6281 = vmatpush3.bf16.msra.mxu0 %v7120_v0  ;;  %v733_v0 = vadd.f32 %v7072_v14, %v701_v17  ;;  %8624 = vst [vmem:[#allocation5_spill] sm:$0xff] %v7223_v35  ;;  %v766_v38 = vmax.f32 %v734_v26, 0.0  ;;  %v948_v41 = vsel %vm835_vm0, 0.0, %v7216_v29  ;;  %v767_v51 = vmax.f32 %v735_v33, 0.0 }
  0x32   : > { %6090 = vmatprep.subr.bf16.mxu1 %v6830_v50  ;;  %6282 = vmatprep.subr.bf16.mxu0 %v6829_v52  ;;  %v763_v20 = vmax.f32 %v731_v10, 0.0  ;;  %v732_v23 = vadd.f32 %v7072_v14, %v700_v54  ;;  %v704_v55 = vmul.f32 %v5659_v27, %v7069_v12  ;;  %v705_v56 = vmul.f32 %v5660_v39, %v7069_v12  ;;  %v6841_v27 = vld [vmem:[%s8583_s5 + $0x28] sm:$0xff]  }
  0x33   : > { %v765_v37 = vmax.f32 %v733_v0, 0.0  ;;  %6252 = vmatprep.mubr.bf16.mxu0 %v7223_v35  ;;  %v7249_v53 = vrot.slane %v766_v38, 7  ;;  %v855_v10 = vrot.slane %v767_v51, 7 }
  0x34   : > { %6091 = vmatpush3.bf16.msra.mxu1 %v6830_v50  ;;  %v849_v30 = vrot.slane %v763_v20, 7  ;;  %v764_v31 = vmax.f32 %v732_v23, 0.0  ;;  %v736_v18 = vadd.f32 %v7072_v14, %v704_v55  ;;  %v737_v33 = vadd.f32 %v7072_v14, %v705_v56  ;;  %v5789_v55 = vld [vmem:[%s7054_s30 + $0x40] sm:$0xff]  }
  0x35   : > { %6092 = vmatprep.subr.bf16.mxu1 %v6833_v1  ;;  %6283 = vmatpush3.bf16.msra.mxu0 %v6829_v52  ;;  %v852_v50 = vrot.slane %v765_v37, 7  ;;  %v950_v54 = vsel %vm835_vm0, 0.0, %v7249_v53  ;;  %v968_v23 = vsel %vm835_vm0, %v855_v10, 0.0 }
  0x36   : > { %v7232_v40 = vsel %vm835_vm0, %v7216_v29, %v849_v30  ;;  %v966_v42 = vsel %vm835_vm0, %v849_v30, 0.0  ;;  %v7237_v43 = vrot.slane %v764_v31, 7  ;;  %6284 = vmatprep.subr.bf16.mxu0 %v6831_v21  ;;  %v7284_v26 = vpack.c.bf16 %v968_v23, %v968_v23  ;;  %v6835_v31 = vld [vmem:[%s8583_s5 + $0x168] sm:$0xff]   ;;  %v6838_v23 = vld [vmem:[%s8583_s5 + $0x178] sm:$0xff]  }
  0x37   : > { %6061 = vmatmul.mubr.bf16.gmra.mrb[4].mxu1 %v7223_v35  ;;  %v7243_v46 = vpack.c.bf16 %v7232_v40, %v948_v41  ;;  %v7245_v47 = vpack.c.bf16 %v966_v42, %v966_v42  ;;  %v967_v3 = vsel %vm835_vm0, %v852_v50, 0.0  ;;  %v769_v51 = vmax.f32 %v737_v33, 0.0 }
  0x38   : > { %6093 = vmatpush3.bf16.msra.mxu1 %v6833_v1  ;;  %v949_v52 = vsel %vm835_vm0, 0.0, %v7237_v43  ;;  %v7258_v63 = vsel %vm835_vm0, %v7237_v43, %v852_v50  ;;  %v6834_v1 = vld [vmem:[%s8583_s5 + $0x160] sm:$0xff]   ;;  %v7270_v17 = vpack.c.bf16 %v967_v3, %v967_v3  ;;  %v1113_v50 = vshll.u32 %v7284_v26, 16 }
  0x39   : > { %6094 = vmatprep.subr.bf16.mxu1 %v6836_v34  ;;  %v1082_v58 = vshrl.u32 %v7243_v46, 16  ;;  %v1084_v61 = vshll.u32 %v7243_v46, 16  ;;  %v1089_v62 = vshll.u32 %v7245_v47, 16  ;;  %6285 = vmatpush3.bf16.msra.mxu0 %v6831_v21  ;;  %v7265_v4 = vpack.c.bf16 %v7258_v63, %v949_v52 }
  0x3a   : > { %6286 = vmatprep.subr.bf16.mxu0 %v6832_v36  ;;  %v7277_v21 = vsel %vm835_vm0, %v7249_v53, %v855_v10  ;;  %v1101_v25 = vshll.u32 %v7270_v17, 16  ;;  %v1115_v3 = vrot.slane %v1113_v50, 1  ;;  %v858_v10 = vrot.slane %v769_v51, 7 }
  0x3b   : > { %v1086_v15 = vrot.slane %v1084_v61, 1  ;;  %v1091_v16 = vrot.slane %v1089_v62, 1  ;;  %v1094_v19 = vshrl.u32 %v7265_v4, 16  ;;  %v1096_v20 = vshll.u32 %v7265_v4, 16 }
  0x3c   : > { %6095 = vmatpush3.bf16.msra.mxu1 %v6836_v34  ;;  %v7282_v0 = vpack.c.bf16 %v7277_v21, %v950_v54  ;;  %v768_v34 = vmax.f32 %v736_v18, 0.0  ;;  %v1103_v38 = vrot.slane %v1101_v25, 1  ;;  %v1712_v62 = vrot.slane %v7129_v5, 1  ;;  %v6843_v18 = vld [vmem:[%s8583_s5 + $0x30] sm:$0xff]  }
  0x3d   : > { %6096 = vmatprep.subr.bf16.mxu1 %v6839_v44  ;;  %v1087_v24 = vor.u32 %v1086_v15, %v1082_v58  ;;  %6287 = vmatpush3.bf16.msra.mxu0 %v6832_v36  ;;  %v1098_v30 = vrot.slane %v1096_v20, 1  ;;  %v5663_v36 = vunpack.c.l.bf16 %v5788_v11  ;;  %v5664_v58 = vunpack.c.h.bf16 %v5788_v11  ;;  %v6837_v15 = vld [vmem:[%s8583_s5 + $0x170] sm:$0xff]  }
  0x3e   : > { %6288 = vmatprep.subr.bf16.mxu0 %v6834_v1  ;;  %v1106_v39 = vshrl.u32 %v7282_v0, 16  ;;  %v1108_v41 = vshll.u32 %v7282_v0, 16  ;;  %v7301_v52 = vrot.slane %v768_v34, 7  ;;  %v969_v20 = vsel %vm835_vm0, %v858_v10, 0.0 }
  0x3f   : > { %v7294_v37 = vsel %vm1032_vm1, %v1087_v24, %v1091_v16  ;;  %v1099_v42 = vor.u32 %v1098_v30, %v1094_v19  ;;  %v706_v61 = vmul.f32 %v5663_v36, %v7069_v12  ;;  %v707_v5 = vmul.f32 %v5664_v58, %v7069_v12 }
  0x40   : > { %8625 = vst [vmem:[#allocation6_spill] sm:$0xff] %v7294_v37  ;;  %6097 = vmatpush3.bf16.msra.mxu1 %v6839_v44  ;;  %6253 = vmatmul.mubr.bf16.gmra.mrb[4].mxu0 %v7294_v37  ;;  %v1110_v56 = vrot.slane %v1108_v41, 1  ;;  %v951_v54 = vsel %vm835_vm0, 0.0, %v7301_v52  ;;  %v1713_v16 = vrot.slane %v7136_v8, 1  ;;  %v7324_v19 = vsel %vm835_vm0, %v7301_v52, %v858_v10  ;;  %v6845_v8 = vld [vmem:[%s8583_s5 + $0x38] sm:$0xff]  }
  0x41   : > { %6064 = vmatprep.mubr.bf16.mxu1 %v7294_v37  ;;  %6289 = vmatpush3.bf16.msra.mxu0 %v6834_v1  ;;  %v7307_v44 = vsel %vm1032_vm1, %v1099_v42, %v1103_v38  ;;  %v738_v11 = vadd.f32 %v7072_v14, %v706_v61  ;;  %v5667_v24 = vunpack.c.l.bf16 %v5789_v55  ;;  %v5668_v25 = vunpack.c.h.bf16 %v5789_v55  ;;  %v5790_v42 = vld [vmem:[%s7054_s30 + $0x48] sm:$0xff]  }
  0x42   : > { %6098 = vmatprep.subr.bf16.mxu1 %v6841_v27  ;;  %8626 = vst [vmem:[#allocation7_spill] sm:$0xff] %v7307_v44  ;;  %6290 = vmatprep.subr.bf16.mxu0 %v6835_v31  ;;  %v1111_v1 = vor.u32 %v1110_v56, %v1106_v39  ;;  %v7337_v33 = vpack.c.bf16 %v7324_v19, %v951_v54 }
  0x43   : > { %6256 = vmatprep.mubr.bf16.mxu0 %v7307_v44  ;;  %6065 = vmatmul.mubr.bf16.gmra.mrb[8].mxu1 %v7307_v44  ;;  %v7339_v34 = vpack.c.bf16 %v969_v20, %v969_v20  ;;  %v739_v36 = vadd.f32 %v7072_v14, %v707_v5  ;;  %v770_v38 = vmax.f32 %v738_v11, 0.0  ;;  %v708_v39 = vmul.f32 %v5667_v24, %v7069_v12 }
  0x44   : > { %6099 = vmatpush3.bf16.msra.mxu1 %v6841_v27  ;;  %v7334_v30 = vsel %vm1032_vm1, %v1111_v1, %v1115_v3  ;;  %v7344_v27 = vsel %vm1708_vm2, %v1712_v62, %v1713_v16  ;;  %v709_v41 = vmul.f32 %v5668_v25, %v7069_v12  ;;  %v1120_v50 = vshll.u32 %v7337_v33, 16  ;;  %v7361_v3 = vld [vmem:[%s8583_s5 + $0x80] sm:$0xff]  }
  0x45   : > { %8627 = vst [vmem:[#allocation8_spill] sm:$0xff] %v7334_v30  ;;  %6291 = vmatpush3.bf16.msra.mxu0 %v6835_v31  ;;  %6068 = vmatprep.mubr.bf16.mxu1 %v7334_v30  ;;  %8628 = vst [vmem:[#allocation9_spill] sm:$0xff] %v7344_v27  ;;  %v1118_v31 = vshrl.u32 %v7337_v33, 16  ;;  %v1125_v51 = vshll.u32 %v7339_v34, 16  ;;  %v771_v55 = vmax.f32 %v739_v36, 0.0  ;;  %v7353_v56 = vrot.slane %v770_v38, 7 }
  0x46   : > { %6292 = vmatprep.subr.bf16.mxu0 %v6837_v15  ;;  %6100 = vmatprep.subr.bf16.mxu1 %v6843_v18  ;;  %v740_v58 = vadd.f32 %v7072_v14, %v708_v39  ;;  %v741_v61 = vadd.f32 %v7072_v14, %v709_v41  ;;  %v1715_v62 = vrot.slane %v7155_v22, 1  ;;  %v1122_v10 = vrot.slane %v1120_v50, 1 }
  0x47   : > { %v1127_v54 = vrot.slane %v1125_v51, 1  ;;  %v861_v1 = vrot.slane %v771_v55, 7  ;;  %v1716_v5 = vrot.slane %v7159_v28, 1  ;;  %v952_v11 = vsel %vm835_vm0, 0.0, %v7353_v56  ;;  %v7377_v28 = vld [vmem:[%s8583_s5 + $0x180] sm:$0xff]  }
  0x48   : > { %6257 = vmatmul.mubr.bf16.gmra.mrb[8].mxu0 %v7334_v30  ;;  %6101 = vmatpush3.bf16.msra.mxu1 %v6843_v18  ;;  %v772_v16 = vmax.f32 %v740_v58, 0.0  ;;  %v773_v20 = vmax.f32 %v741_v61, 0.0  ;;  %v5671_v22 = vunpack.c.l.bf16 %v5790_v42  ;;  %v1123_v18 = vor.u32 %v1122_v10, %v1118_v31 }
  0x49   : > { %6293 = vmatpush3.bf16.msra.mxu0 %v6837_v15  ;;  %6102 = vmatprep.subr.bf16.mxu1 %v6845_v8  ;;  %v7368_v24 = vsel %vm835_vm0, %v7353_v56, %v861_v1  ;;  %v970_v25 = vsel %vm835_vm0, %v861_v1, 0.0  ;;  %v7372_v36 = vsel %vm1708_vm2, %v1715_v62, %v1716_v5  ;;  %v5672_v50 = vunpack.c.h.bf16 %v5790_v42  ;;  %v5791_v42 = vld [vmem:[%s7054_s30 + $0x50] sm:$0xff]  }
  0x4a   : > { %6294 = vmatprep.subr.bf16.mxu0 %v6838_v23  ;;  %8629 = vst [vmem:[#allocation10_spill] sm:$0xff] %v7372_v36  ;;  %v7380_v15 = vpack.c.bf16 %v7368_v24, %v952_v11  ;;  %v7382_v38 = vpack.c.bf16 %v970_v25, %v970_v25  ;;  %v7384_v39 = vrot.slane %v772_v16, 7  ;;  %v864_v41 = vrot.slane %v773_v20, 7 }
  0x4b   : > { %v7387_v31 = vsel %vm1032_vm1, %v1123_v18, %v1127_v54  ;;  %v710_v51 = vmul.f32 %v5671_v22, %v7069_v12  ;;  %v1718_v55 = vrot.slane %v7178_v48, 1  ;;  %v711_v10 = vmul.f32 %v5672_v50, %v7069_v12 }
  0x4c   : > { %6103 = vmatpush3.bf16.msra.mxu1 %v6845_v8  ;;  %8630 = vst [vmem:[#allocation11_spill] sm:$0xff] %v7387_v31  ;;  %6260 = vmatprep.mubr.bf16.mxu0 %v7387_v31  ;;  %v1130_v58 = vshrl.u32 %v7380_v15, 16  ;;  %v1132_v61 = vshll.u32 %v7380_v15, 16  ;;  %v1137_v8 = vshll.u32 %v7382_v38, 16  ;;  %v953_v48 = vsel %vm835_vm0, 0.0, %v7384_v39 }
  0x4d   : > { %6295 = vmatpush3.bf16.msra.mxu0 %v6838_v23  ;;  %6136 = vmatprep.subr.bf16.mxu1 %v7361_v3  ;;  %v7399_v23 = vsel %vm835_vm0, %v7384_v39, %v864_v41  ;;  %v971_v62 = vsel %vm835_vm0, %v864_v41, 0.0  ;;  %v742_v54 = vadd.f32 %v7072_v14, %v710_v51  ;;  %v743_v20 = vadd.f32 %v7072_v14, %v711_v10 }
  0x4e   : > { %6069 = vmatmul.mubr.bf16.gmra.mrb[12].mxu1 %v7387_v31  ;;  %6328 = vmatprep.subr.bf16.mxu0 %v7377_v28  ;;  %v1134_v1 = vrot.slane %v1132_v61, 1  ;;  %v1139_v5 = vrot.slane %v1137_v8, 1  ;;  %v7409_v11 = vpack.c.bf16 %v7399_v23, %v953_v48  ;;  %v7411_v16 = vpack.c.bf16 %v971_v62, %v971_v62  ;;  %v5792_v61 = vld [vmem:[%s7054_s30 + $0x58] sm:$0xff]  }
  0x4f   : > { %v774_v22 = vmax.f32 %v742_v54, 0.0  ;;  %v1719_v18 = vrot.slane %v7180_v49, 1  ;;  %v5675_v25 = vunpack.c.l.bf16 %v5791_v42  ;;  %v775_v8 = vmax.f32 %v743_v20, 0.0 }
  0x50   : > { %v1135_v41 = vor.u32 %v1134_v1, %v1130_v58  ;;  %v1142_v31 = vshrl.u32 %v7409_v11, 16  ;;  %v1144_v50 = vshll.u32 %v7409_v11, 16  ;;  %v1149_v51 = vshll.u32 %v7411_v16, 16 }
  0x51   : > { %v7419_v30 = vrot.slane %v774_v22, 7  ;;  %v7422_v48 = vsel %vm1708_vm2, %v1718_v55, %v1719_v18  ;;  %v5676_v62 = vunpack.c.h.bf16 %v5791_v42  ;;  %v712_v58 = vmul.f32 %v5675_v25, %v7069_v12 }
  0x52   : > { %8631 = vst [vmem:[#allocation12_spill] sm:$0xff] %v7422_v48  ;;  %v7425_v10 = vsel %vm1032_vm1, %v1135_v41, %v1139_v5  ;;  %v1146_v49 = vrot.slane %v1144_v50, 1  ;;  %v1151_v54 = vrot.slane %v1149_v51, 1  ;;  %v867_v1 = vrot.slane %v775_v8, 7 }
  0x53   : > { %8632 = vst [vmem:[#allocation13_spill] sm:$0xff] %v7425_v10  ;;  %6261 = vmatmul.mubr.bf16.gmra.mrb[12].mxu0 %v7425_v10  ;;  %6072 = vmatprep.mubr.bf16.mxu1 %v7425_v10  ;;  %v954_v20 = vsel %vm835_vm0, 0.0, %v7419_v30  ;;  %v713_v22 = vmul.f32 %v5676_v62, %v7069_v12  ;;  %v1721_v55 = vrot.slane %v7243_v46, 1  ;;  %v744_v5 = vadd.f32 %v7072_v14, %v712_v58 }
  0x54   : > { %6296 = vmatprep.mubr.bf16.mxu0 %v7344_v27  ;;  %v1147_v42 = vor.u32 %v1146_v49, %v1142_v31  ;;  %v1722_v18 = vrot.slane %v7245_v47, 1  ;;  %v5679_v25 = vunpack.c.l.bf16 %v5792_v61  ;;  %v7439_v41 = vsel %vm835_vm0, %v7419_v30, %v867_v1 }
  0x55   : > { %v972_v50 = vsel %vm835_vm0, %v867_v1, 0.0  ;;  %v745_v51 = vadd.f32 %v7072_v14, %v713_v22  ;;  %v5680_v8 = vunpack.c.h.bf16 %v5792_v61  ;;  %v7447_v31 = vpack.c.bf16 %v7439_v41, %v954_v20  ;;  %v6842_v1 = vld [vmem:[%s8583_s5 + $0x188] sm:$0xff]   ;;  %v5793_v22 = vld [vmem:[%s7054_s30 + $0x60] sm:$0xff]  }
  0x56   : > { %v7444_v46 = vsel %vm1032_vm1, %v1147_v42, %v1151_v54  ;;  %v7449_v62 = vpack.c.bf16 %v972_v50, %v972_v50  ;;  %v776_v47 = vmax.f32 %v744_v5, 0.0  ;;  %v7453_v58 = vsel %vm1708_vm2, %v1721_v55, %v1722_v18 }
  0x57   : > { %8633 = vst [vmem:[#allocation14_spill] sm:$0xff] %v7444_v46  ;;  %6073 = vmatmul.mubr.bf16.gmra.mrb[16].mxu1 %v7444_v46  ;;  %v777_v49 = vmax.f32 %v745_v51, 0.0  ;;  %8634 = vst [vmem:[#allocation15_spill] sm:$0xff] %v7453_v58  ;;  %v714_v61 = vmul.f32 %v5679_v25, %v7069_v12  ;;  %v715_v54 = vmul.f32 %v5680_v8, %v7069_v12  ;;  %v1154_v20 = vshrl.u32 %v7447_v31, 16 }
  0x58   : > { %v1156_v42 = vshll.u32 %v7447_v31, 16  ;;  %v1161_v5 = vshll.u32 %v7449_v62, 16  ;;  %v7464_v50 = vrot.slane %v776_v47, 7  ;;  %v1724_v46 = vrot.slane %v7265_v4, 1 }
  0x59   : > { %v870_v51 = vrot.slane %v777_v49, 7  ;;  %v746_v55 = vadd.f32 %v7072_v14, %v714_v61  ;;  %v747_v18 = vadd.f32 %v7072_v14, %v715_v54  ;;  %v1725_v8 = vrot.slane %v7270_v17, 1 }
  0x5a   : > { %v1158_v10 = vrot.slane %v1156_v42, 1  ;;  %v1163_v25 = vrot.slane %v1161_v5, 1  ;;  %v955_v12 = vsel %vm835_vm0, 0.0, %v7464_v50  ;;  %v5683_v54 = vunpack.c.l.bf16 %v5793_v22  ;;  %v6844_v42 = vld [vmem:[%s8583_s5 + $0x190] sm:$0xff]  }
  0x5b   : > { %6297 = vmatmul.mubr.bf16.vlgmr.msra.gmra.mrb[0].mxu0 %v7372_v36  ;;  %v7475_v47 = vsel %vm835_vm0, %v7464_v50, %v870_v51  ;;  %v973_v49 = vsel %vm835_vm0, %v870_v51, 0.0  ;;  %v778_v61 = vmax.f32 %v746_v55, 0.0  ;;  %v779_v44 = vmax.f32 %v747_v18, 0.0 }
  0x5c   : > { %6329 = vmatpush3.bf16.msra.mxu0 %v7377_v28  ;;  %v1159_v14 = vor.u32 %v1158_v10, %v1154_v20  ;;  %6300 = vmatprep.mubr.bf16.mxu0 %v7422_v48  ;;  %v7481_v4 = vpack.c.bf16 %v7475_v47, %v955_v12  ;;  %v7483_v17 = vpack.c.bf16 %v973_v49, %v973_v49  ;;  %v5684_v10 = vunpack.c.h.bf16 %v5793_v22  ;;  %v5794_v49 = vld [vmem:[%s7054_s30 + $0x68] sm:$0xff]  }
  0x5d   : > { %6330 = vmatprep.subr.bf16.mxu0 %v6842_v1  ;;  %v7488_v5 = vrot.slane %v778_v61, 7  ;;  %v873_v51 = vrot.slane %v779_v44, 7  ;;  %v7491_v28 = vsel %vm1708_vm2, %v1724_v46, %v1725_v8  ;;  %v6846_v61 = vld [vmem:[%s8583_s5 + $0x198] sm:$0xff]   ;;  %v1728_v36 = vrot.slane %v7284_v26, 1 }
  0x5e   : > { %v7494_v20 = vsel %vm1032_vm1, %v1159_v14, %v1163_v25  ;;  %v1166_v55 = vshrl.u32 %v7481_v4, 16  ;;  %v1168_v18 = vshll.u32 %v7481_v4, 16  ;;  %v1173_v12 = vshll.u32 %v7483_v17, 16  ;;  %v7509_v25 = vld [vmem:[%s7048_s27] ss:$0 sm:$0xff] }
  0x5f   : > { %8635 = vst [vmem:[#allocation16_spill] sm:$0xff] %v7494_v20  ;;  %6076 = vmatprep.mubr.bf16.mxu1 %v7494_v20  ;;  %v7503_v44 = vsel %vm835_vm0, %v7488_v5, %v873_v51  ;;  %v956_v46 = vsel %vm835_vm0, 0.0, %v7488_v5  ;;  %v974_v22 = vsel %vm835_vm0, %v873_v51, 0.0  ;;  %v716_v8 = vmul.f32 %v7509_v25, %v5683_v54  ;;  %v7522_v51 = vld [vmem:[%s7060_s18] ss:$0 sm:$0xff] }
  0x60   : > { %v1170_v14 = vrot.slane %v1168_v18, 1  ;;  %v1175_v37 = vrot.slane %v1173_v12, 1  ;;  %6331 = vmatpush3.bf16.msra.mxu0 %v6842_v1  ;;  %v7516_v20 = vpack.c.bf16 %v7503_v44, %v956_v46  ;;  %v7518_v35 = vpack.c.bf16 %v974_v22, %v974_v22 }
  0x61   : > { %v717_v60 = vmul.f32 %v7509_v25, %v5684_v10  ;;  %v748_v48 = vadd.f32 %v7522_v51, %v716_v8  ;;  %v1727_v54 = vrot.slane %v7282_v0, 1  ;;  %6332 = vmatprep.subr.bf16.mxu0 %v6844_v42  ;;  %v5687_v8 = vunpack.c.l.bf16 %v5794_v49  ;;  %v5795_v0 = vld [vmem:[%s7054_s30 + $0x70] sm:$0xff]  }
  0x62   : > { %v1171_v18 = vor.u32 %v1170_v14, %v1166_v55  ;;  %v1178_v1 = vshrl.u32 %v7516_v20, 16  ;;  %v1180_v12 = vshll.u32 %v7516_v20, 16  ;;  %v1185_v46 = vshll.u32 %v7518_v35, 16 }
  0x63   : > { %6301 = vmatmul.mubr.bf16.gmra.mrb[4].mxu0 %v7453_v58  ;;  %v749_v10 = vadd.f32 %v7522_v51, %v717_v60  ;;  %v780_v22 = vmax.f32 %v748_v48, 0.0  ;;  %v7533_v27 = vsel %vm1708_vm2, %v1727_v54, %v1728_v36  ;;  %v5688_v7 = vunpack.c.h.bf16 %v5794_v49 }
  0x64   : > { %8636 = vst [vmem:[#allocation17_spill] sm:$0xff] %v7533_v27  ;;  %v7537_v26 = vsel %vm1032_vm1, %v1171_v18, %v1175_v37  ;;  %v1182_v55 = vrot.slane %v1180_v12, 1  ;;  %v1187_v14 = vrot.slane %v1185_v46, 1  ;;  %6304 = vmatprep.mubr.bf16.mxu0 %v7491_v28  ;;  %6333 = vmatpush3.bf16.msra.mxu0 %v6844_v42  ;;  %v718_v60 = vmul.f32 %v7509_v25, %v5687_v8  ;;  %v6848_v37 = vld [vmem:[%s8583_s5 + $0x1a0] sm:$0xff]  }
  0x65   : > { %8637 = vst [vmem:[#allocation18_spill] sm:$0xff] %v7537_v26  ;;  %6077 = vmatmul.mubr.bf16.gmra.mrb[20].mxu1 %v7537_v26  ;;  %v781_v58 = vmax.f32 %v749_v10, 0.0  ;;  %v7541_v6 = vrot.slane %v780_v22, 7  ;;  %v1730_v36 = vrot.slane %v7337_v33, 1  ;;  %6334 = vmatprep.subr.bf16.mxu0 %v6846_v61  ;;  %v719_v54 = vmul.f32 %v7509_v25, %v5688_v7  ;;  %v6850_v33 = vld [vmem:[%s8583_s5 + $0x1a8] sm:$0xff]  }
  0x66   : > { %v1183_v48 = vor.u32 %v1182_v55, %v1178_v1  ;;  %v1731_v42 = vrot.slane %v7339_v34, 1  ;;  %v5691_v49 = vunpack.c.l.bf16 %v5795_v0  ;;  %v750_v46 = vadd.f32 %v7522_v51, %v718_v60 }
  0x67   : > { %v876_v18 = vrot.slane %v781_v58, 7  ;;  %v957_v12 = vsel %vm835_vm0, 0.0, %v7541_v6  ;;  %v5692_v10 = vunpack.c.h.bf16 %v5795_v0  ;;  %v751_v1 = vadd.f32 %v7522_v51, %v719_v54 }
  0x68   : > { %v7557_v22 = vsel %vm1032_vm1, %v1183_v48, %v1187_v14  ;;  %v7561_v7 = vsel %vm1708_vm2, %v1730_v36, %v1731_v42  ;;  %v720_v34 = vmul.f32 %v7509_v25, %v5691_v49  ;;  %6335 = vmatpush3.bf16.msra.mxu0 %v6846_v61  ;;  %v782_v0 = vmax.f32 %v750_v46, 0.0 }
  0x69   : > { %8638 = vst [vmem:[#allocation19_spill] sm:$0xff] %v7557_v22  ;;  %8639 = vst [vmem:[#allocation20_spill] sm:$0xff] %v7561_v7  ;;  %6080 = vmatprep.mubr.bf16.mxu1 %v7557_v22  ;;  %v7567_v58 = vsel %vm835_vm0, %v7541_v6, %v876_v18  ;;  %v975_v8 = vsel %vm835_vm0, %v876_v18, 0.0  ;;  %v721_v55 = vmul.f32 %v7509_v25, %v5692_v10  ;;  %6336 = vmatprep.subr.bf16.mxu0 %v6848_v37 }
  0x6a   : > { %v7572_v14 = vpack.c.bf16 %v7567_v58, %v957_v12  ;;  %v7574_v60 = vpack.c.bf16 %v975_v8, %v975_v8  ;;  %v783_v36 = vmax.f32 %v751_v1, 0.0  ;;  %v752_v61 = vadd.f32 %v7522_v51, %v720_v34 }
  0x6b   : > { %6305 = vmatmul.mubr.bf16.gmra.mrb[8].mxu0 %v7533_v27  ;;  %v7578_v48 = vrot.slane %v782_v0, 7  ;;  %v753_v54 = vadd.f32 %v7522_v51, %v721_v55  ;;  %v1733_v42 = vrot.slane %v7380_v15, 1  ;;  %v1734_v49 = vrot.slane %v7382_v38, 1  ;;  %v6852_v15 = vld [vmem:[%s8583_s5 + $0x1b0] sm:$0xff]  }
  0x6c   : > { %v1190_v18 = vshrl.u32 %v7572_v14, 16  ;;  %v1192_v12 = vshll.u32 %v7572_v14, 16  ;;  %v1197_v46 = vshll.u32 %v7574_v60, 16  ;;  %v879_v10 = vrot.slane %v783_v36, 7  ;;  %6308 = vmatprep.mubr.bf16.mxu0 %v7561_v7  ;;  %6337 = vmatpush3.bf16.msra.mxu0 %v6848_v37 }
  0x6d   : > { %v958_v1 = vsel %vm835_vm0, 0.0, %v7578_v48  ;;  %v784_v34 = vmax.f32 %v752_v61, 0.0  ;;  %v785_v8 = vmax.f32 %v753_v54, 0.0  ;;  %6338 = vmatprep.subr.bf16.mxu0 %v6850_v33  ;;  %v7605_v7 = vsel %vm1708_vm2, %v1733_v42, %v1734_v49  ;;  %v6854_v42 = vld [vmem:[%s8583_s5 + $0x1b8] sm:$0xff]  }
  0x6e   : > { %v1194_v38 = vrot.slane %v1192_v12, 1  ;;  %v1199_v0 = vrot.slane %v1197_v46, 1  ;;  %v7594_v55 = vsel %vm835_vm0, %v7578_v48, %v879_v10  ;;  %v976_v36 = vsel %vm835_vm0, %v879_v10, 0.0 }
  0x6f   : > { %v7598_v37 = vpack.c.bf16 %v7594_v55, %v958_v1  ;;  %v7600_v22 = vpack.c.bf16 %v976_v36, %v976_v36  ;;  %v7602_v61 = vrot.slane %v784_v34, 7  ;;  %v882_v54 = vrot.slane %v785_v8, 7 }
  0x70   : > { %v1195_v26 = vor.u32 %v1194_v38, %v1190_v18  ;;  %v1736_v12 = vrot.slane %v7409_v11, 1  ;;  %v1737_v46 = vrot.slane %v7411_v16, 1  ;;  %6339 = vmatpush3.bf16.msra.mxu0 %v6850_v33 }
  0x71   : > { %v1202_v27 = vshrl.u32 %v7598_v37, 16  ;;  %v1204_v10 = vshll.u32 %v7598_v37, 16  ;;  %v1209_v1 = vshll.u32 %v7600_v22, 16  ;;  %v883_v34 = vsel %vm835_vm0, %v7602_v61, %v882_v54  ;;  %6340 = vmatprep.subr.bf16.mxu0 %v6852_v15 }
  0x72   : > { %v7618_v49 = vsel %vm1032_vm1, %v1195_v26, %v1199_v0  ;;  %v959_v11 = vsel %vm835_vm0, 0.0, %v7602_v61  ;;  %v977_v16 = vsel %vm835_vm0, %v882_v54, 0.0  ;;  %v7624_v33 = vsel %vm1708_vm2, %v1736_v12, %v1737_v46 }
  0x73   : > { %8640 = vst [vmem:[#allocation21_spill] sm:$0xff] %v7618_v49  ;;  %6081 = vmatmul.mubr.bf16.gmra.mrb[24].mxu1 %v7618_v49  ;;  %v1206_v18 = vrot.slane %v1204_v10, 1  ;;  %v1211_v8 = vrot.slane %v1209_v1, 1  ;;  %v7627_v38 = vpack.c.bf16 %v883_v34, %v959_v11  ;;  %v7629_v36 = vpack.c.bf16 %v977_v16, %v977_v16  ;;  %6309 = vmatmul.mubr.bf16.gmra.mrb[12].mxu0 %v7605_v7  ;;  %v7642_v11 = vld [vmem:[%s8583_s5 + $0x1c0] sm:$0xff]   ;;  %v5796_v16 = vld [vmem:[%s7054_s30 + $0x78] sm:$0xff]   ;;  %s8393_s30 = scalar_lea.vmem %s8588_s10, %s7032_s17 }
  0x74   : > { %6312 = vmatprep.mubr.bf16.mxu0 %v7624_v33  ;;  %v1739_v26 = vrot.slane %v7447_v31, 1  ;;  %v1740_v0 = vrot.slane %v7449_v62, 1  ;;  %v1742_v54 = vrot.slane %v7481_v4, 1  ;;  %6341 = vmatpush3.bf16.msra.mxu0 %v6852_v15  ;;  %v1743_v31 = vrot.slane %v7483_v17, 1 }
  0x75   : > { %v1207_v12 = vor.u32 %v1206_v18, %v1202_v27  ;;  %v1214_v46 = vshrl.u32 %v7627_v38, 16  ;;  %v1216_v10 = vshll.u32 %v7627_v38, 16  ;;  %v1221_v1 = vshll.u32 %v7629_v36, 16  ;;  %6342 = vmatprep.subr.bf16.mxu0 %v6854_v42 }
  0x76   : > { %v7651_v27 = vsel %vm1708_vm2, %v1739_v26, %v1740_v0  ;;  %v5185_v49 = vpack.c.bf16 %v7124_v2, %v7110_v57  ;;  %v7657_v17 = vsel %vm1708_vm2, %v1742_v54, %v1743_v31  ;;  %v7672_v57 = vpack.c.bf16 %v7324_v19, %v7301_v52 }
  0x77   : > { %v7646_v62 = vsel %vm1032_vm1, %v1207_v12, %v1211_v8  ;;  %v1218_v4 = vrot.slane %v1216_v10, 1  ;;  %v1223_v15 = vrot.slane %v1221_v1, 1  ;;  %v1745_v12 = vrot.slane %v7516_v20, 1  ;;  %v6893_v8 = vld [vmem:[%s7984_s12 + $0x8] sm:$0xff]  }
  0x78   : > { %6084 = vmatprep.mubr.bf16.mxu1 %v7646_v62  ;;  %6343 = vmatpush3.bf16.msra.mxu0 %v6854_v42  ;;  %v1746_v42 = vrot.slane %v7518_v35, 1  ;;  %v5695_v2 = vunpack.c.l.bf16 %v5796_v16  ;;  %v1748_v0 = vrot.slane %v7572_v14, 1  ;;  %v5696_v54 = vunpack.c.h.bf16 %v5796_v16 }
  0x79   : > { %v1219_v18 = vor.u32 %v1218_v4, %v1214_v46  ;;  %6376 = vmatprep.subr.bf16.mxu0 %v7642_v11  ;;  %v7679_v20 = vpack.c.bf16 %v7368_v24, %v7353_v56  ;;  %v7683_v46 = vpack.c.bf16 %v7399_v23, %v7384_v39  ;;  %v1749_v35 = vrot.slane %v7574_v60, 1 }
  0x7a   : > { %v722_v52 = vmul.f32 %v7509_v25, %v5695_v2  ;;  %v7691_v19 = vpack.c.bf16 %v7439_v41, %v7419_v30  ;;  %v7695_v14 = vpack.c.bf16 %v7475_v47, %v7464_v50  ;;  %v723_v56 = vmul.f32 %v7509_v25, %v5696_v54  ;;  %v6858_v54 = vld [vmem:[%s8583_s5 + $0x1c8] sm:$0xff]  }
  0x7b   : > { %v7666_v26 = vsel %vm1032_vm1, %v1219_v18, %v1223_v15  ;;  %6313 = vmatmul.mubr.bf16.gmra.mrb[16].mxu0 %v7651_v27  ;;  %v7700_v24 = vpack.c.bf16 %v7503_v44, %v7488_v5  ;;  %v7704_v39 = vpack.c.bf16 %v7567_v58, %v7541_v6  ;;  %v7708_v23 = vpack.c.bf16 %v7594_v55, %v7578_v48  ;;  %v6849_v58 = vld [vmem:[%s8583_s5 + $0x88] sm:$0xff]  }
  0x7c   : > { %6085 = vmatmul.mubr.bf16.gmra.mrb[28].mxu1 %v7666_v26  ;;  %6316 = vmatprep.mubr.bf16.mxu0 %v7657_v17  ;;  %v754_v30 = vadd.f32 %v7522_v51, %v722_v52  ;;  %v7712_v41 = vpack.c.bf16 %v883_v34, %v7602_v61  ;;  %v7715_v50 = vsel %vm1708_vm2, %v1745_v12, %v1746_v42  ;;  %v1754_v61 = vrot.slane %v7627_v38, 1  ;;  %v6857_v12 = vld [vmem:[%s8583_s5 + $0xa8] sm:$0xff]   ;;  %v6861_v52 = vld [vmem:[%s8583_s5 + $0xb8] sm:$0xff]  }
  0x7d   : > { %6104 = vmatprep.mubr.msk.bf16.mxu1 %vm7660_vm5, %v5185_v49  ;;  %v755_v47 = vadd.f32 %v7522_v51, %v723_v56  ;;  %v7720_v5 = vpack.c.bf16 %v7144_v13, %v7112_v59  ;;  %v7723_v6 = vsel %vm1708_vm2, %v1748_v0, %v1749_v35  ;;  %v1751_v59 = vrot.slane %v7598_v37, 1  ;;  %v6851_v37 = vld [vmem:[%s8583_s5 + $0x90] sm:$0xff]  }
  0x7e   : > { %v786_v44 = vmax.f32 %v754_v30, 0.0  ;;  %v1752_v13 = vrot.slane %v7600_v22, 1  ;;  %v1755_v34 = vrot.slane %v7629_v36, 1  ;;  %v7755_v10 = vpack.c.bf16 %v7174_v45, %v7163_v32  ;;  %v6853_v32 = vld [vmem:[%s8583_s5 + $0x98] sm:$0xff]   ;;  %v6860_v56 = vld [vmem:[%s8583_s5 + $0x1d0] sm:$0xff]   ;;  %v6863_v30 = vld [vmem:[%s8583_s5 + $0xc0] sm:$0xff]  }
  0x7f   : > { %v787_v60 = vmax.f32 %v755_v47, 0.0  ;;  %v7763_v31 = vpack.c.bf16 %v7232_v40, %v7216_v29  ;;  %v6855_v29 = vld [vmem:[%s8583_s5 + $0xa0] sm:$0xff]   ;;  %v7784_v40 = vpack.c.bf16 %v7258_v63, %v7237_v43  ;;  %v7791_v18 = vpack.c.bf16 %v7277_v21, %v7249_v53  ;;  %v6859_v21 = vld [vmem:[%s8583_s5 + $0xb0] sm:$0xff]  }
  0x80   : > { %v7729_v48 = vrot.slane %v786_v44, 7  ;;  %v7758_v38 = vsel %vm1708_vm2, %v1751_v59, %v1752_v13  ;;  %v7766_v4 = vsel %vm1708_vm2, %v1754_v61, %v1755_v34  ;;  %v6864_v47 = vld [vmem:[%s8583_s5 + $0x1e0] sm:$0xff]   ;;  %v6866_v44 = vld [vmem:[%s8583_s5 + $0x1e8] sm:$0xff]   ;;  %v6870_v59 = vld [vmem:[%s8583_s5 + $0x1f8] sm:$0xff]  }
  0x81   : > { %v885_v55 = vrot.slane %v787_v60, 7  ;;  %v5698_v60 = vld [vmem:[%s560_s21] sm:$0xff]  }
  0x82   : > { %v960_v49 = vsel %vm835_vm0, 0.0, %v7729_v48  ;;  %v5699_v13 = vunpack.c.l.bf16 %v5698_v60  ;;  %v8643_v61 = vld [vmem:[#allocation2_spill] sm:$0xff] }
  0x83   : > { %6317 = vmatmul.mubr.bf16.gmra.mrb[20].mxu0 %v7715_v50  ;;  %v7750_v22 = vsel %vm835_vm0, %v7729_v48, %v885_v55  ;;  %v1709_v34 = vrot.slane %v8643_v61, 1  ;;  %v8653_v61 = vld [vmem:[#allocation6_spill] sm:$0xff] }
  0x84   : > { %6105 = vmatmul.mubr.msk.bf16.vlgmr.msra.gmra.mrb[0].mxu1 %vm7660_vm5, %v7138_v9  ;;  %6320 = vmatprep.mubr.bf16.mxu0 %v7723_v6  ;;  %v1012_v36 = vpack.c.bf16 %v7750_v22, %v960_v49  ;;  %v8644_v49 = vld [vmem:[#allocation3_spill] sm:$0xff] }
  0x85   : > { %6137 = vmatpush3.bf16.msra.mxu1 %v7361_v3  ;;  %6108 = vmatprep.mubr.msk.bf16.mxu1 %vm7660_vm5, %v7720_v5  ;;  %v978_v3 = vsel %vm835_vm0, %v885_v55, 0.0  ;;  %v5700_v55 = vunpack.c.h.bf16 %v5698_v60  ;;  %v6874_v60 = vld [vmem:[%s8583_s5 + $0x208] sm:$0xff]  }
  0x86   : > { %6138 = vmatprep.subr.bf16.mxu1 %v6849_v58  ;;  %v1013_v1 = vpack.c.bf16 %v978_v3, %v978_v3  ;;  %v2562_v45 = vrot.slane %v1012_v36, 1  ;;  %v2292_v43 = vshll.u32 %v1012_v36, 16  ;;  %v2290_v53 = vshrl.u32 %v1012_v36, 16  ;;  %v6872_v3 = vld [vmem:[%s8583_s5 + $0x200] sm:$0xff]  }
  0x87   : > { %v790_v36 = vmul.f32 %v7509_v25, %v5699_v13  ;;  %v6877_v13 = vld [vmem:[%s8583_s5 + $0xf8] sm:$0xff]  }
  0x88   : > { %v2563_v15 = vrot.slane %v1013_v1, 1  ;;  %v2297_v63 = vshll.u32 %v1013_v1, 16  ;;  %v2294_v42 = vrot.slane %v2292_v43, 1  ;;  %v791_v1 = vmul.f32 %v7509_v25, %v5700_v55  ;;  %v8645_v43 = vld [vmem:[#allocation9_spill] sm:$0xff]  ;;  %v8652_v55 = vld [vmem:[#allocation20_spill] sm:$0xff] }
  0x89   : > { %6139 = vmatpush3.bf16.msra.mxu1 %v6849_v58  ;;  %v6868_v58 = vld [vmem:[%s8583_s5 + $0x1f0] sm:$0xff]  }
  0x8a   : > { %6140 = vmatprep.subr.bf16.mxu1 %v6851_v37  ;;  %v7787_v16 = vsel %vm1708_vm2, %v2562_v45, %v2563_v15  ;;  %v2299_v2 = vrot.slane %v2297_v63, 1  ;;  %v2295_v0 = vor.u32 %v2294_v42, %v2290_v53  ;;  %v792_v45 = vadd.f32 %v7522_v51, %v790_v36  ;;  %v8655_v36 = vld [vmem:[#allocation8_spill] sm:$0xff] }
  0x8b   : > { %6321 = vmatmul.mubr.bf16.gmra.mrb[24].mxu0 %v7758_v38  ;;  %v793_v25 = vadd.f32 %v7522_v51, %v791_v1  ;;  %v8646_v51 = vld [vmem:[#allocation10_spill] sm:$0xff]  ;;  %v7929_v42 = vpack.c.bf16 %v7750_v22, %v7729_v48  ;;  %v8648_v22 = vld [vmem:[#allocation15_spill] sm:$0xff] }
  0x8c   : > { %6109 = vmatmul.mubr.msk.bf16.gmra.mrb[4].mxu1 %vm7660_vm5, %v7755_v10  ;;  %6324 = vmatprep.mubr.bf16.mxu0 %v7766_v4  ;;  %v7813_v35 = vsel %vm1032_vm1, %v2295_v0, %v2299_v2  ;;  %v794_v15 = vmax.f32 %v792_v45, 0.0  ;;  %v6879_v1 = vld [vmem:[%s8583_s5 + $0x220] sm:$0xff]   ;;  %v8656_v45 = vld [vmem:[#allocation11_spill] sm:$0xff] }
  0x8d   : > { %6112 = vmatprep.mubr.msk.bf16.mxu1 %vm7660_vm5, %v7763_v31  ;;  %6141 = vmatpush3.bf16.msra.mxu1 %v6851_v37  ;;  %v1710_v37 = vrot.slane %v8644_v49, 1  ;;  %v6878_v49 = vld [vmem:[%s8583_s5 + $0x218] sm:$0xff]  }
  0x8e   : > { %6142 = vmatprep.subr.bf16.mxu1 %v6853_v32  ;;  %v797_v53 = vmul.f32 0.0, %v794_v15  ;;  %v6881_v15 = vld [vmem:[%s8583_s5 + $0x230] sm:$0xff]  }
  0x90   : > { %v7931_v2 = vrot.slane %v797_v53, 7  ;;  %v8019_v53 = vld [vmem:[%s8586_s8] sm:$0xff]  }
  0x91   : > { %6143 = vmatpush3.bf16.msra.mxu1 %v6853_v32  ;;  %v1711_v32 = vsel %vm1708_vm2, %v1709_v34, %v1710_v37  ;;  %v6876_v34 = vld [vmem:[%s8583_s5 + $0x210] sm:$0xff]   ;;  %v8654_v37 = vld [vmem:[#allocation7_spill] sm:$0xff] }
  0x92   : > { %6144 = vmatprep.subr.bf16.mxu1 %v6855_v29 }
  0x93   : > { %6325 = vmatmul.mubr.bf16.gmra.mrb[28].mxu0 %v7787_v16 }
  0x94   : > { %6113 = vmatmul.mubr.msk.bf16.gmra.mrb[8].mxu1 %vm7660_vm5, %v7784_v40  ;;  %6344 = vmatprep.mubr.msk.bf16.mxu0 %vm7660_vm5, %v7720_v5 }
  0x95   : > { %6116 = vmatprep.mubr.msk.bf16.mxu1 %vm7660_vm5, %v7791_v18  ;;  %6145 = vmatpush3.bf16.msra.mxu1 %v6855_v29  ;;  %v795_v29 = vmax.f32 %v793_v25, 0.0  ;;  %v8657_v25 = vld [vmem:[#allocation13_spill] sm:$0xff] }
  0x96   : > { %6146 = vmatprep.subr.bf16.mxu1 %v6857_v12 }
  0x97   : > { %v7921_v63 = vmul.f32 0.0, %v795_v29  ;;  %v6882_v29 = vld [vmem:[%s8583_s5 + $0x238] sm:$0xff]  }
  0x99   : > { %6147 = vmatpush3.bf16.msra.mxu1 %v6857_v12  ;;  %v6865_v12 = vld [vmem:[%s8583_s5 + $0xc8] sm:$0xff]   ;;  %v888_v0 = vrot.slane %v7921_v63, 7 }
  0x9a   : > { %6148 = vmatprep.subr.bf16.mxu1 %v6859_v21 }
  0x9b   : > { %6345 = vmatmul.mubr.msk.bf16.vlgmr.msra.gmra.mrb[0].mxu0 %vm7660_vm5, %v7755_v10  ;;  %v7948_v48 = vsel %vm835_vm0, %v7931_v2, %v888_v0 }
  0x9c   : > { %6117 = vmatmul.mubr.msk.bf16.gmra.mrb[12].mxu1 %vm7660_vm5, %v7672_v57  ;;  %6377 = vmatpush3.bf16.msra.mxu0 %v7642_v11  ;;  %v6862_v11 = vld [vmem:[%s8583_s5 + $0x1d8] sm:$0xff]  }
  0x9d   : > { %6120 = vmatprep.mubr.msk.bf16.mxu1 %vm7660_vm5, %v7679_v20  ;;  %6348 = vmatprep.mubr.msk.bf16.mxu0 %vm7660_vm5, %v7763_v31 }
  0x9e   : > { %6378 = vmatprep.subr.bf16.mxu0 %v6858_v54  ;;  %6149 = vmatpush3.bf16.msra.mxu1 %v6859_v21  ;;  %v6867_v21 = vld [vmem:[%s8583_s5 + $0xd0] sm:$0xff]  }
  0x9f   : > { %6150 = vmatprep.subr.bf16.mxu1 %v6861_v52 }
  0xa0   : > { %6379 = vmatpush3.bf16.msra.mxu0 %v6858_v54  ;;  %v6869_v54 = vld [vmem:[%s8583_s5 + $0xd8] sm:$0xff]  }
  0xa1   : > { %6380 = vmatprep.subr.bf16.mxu0 %v6860_v56 }
  0xa2   : > { %6151 = vmatpush3.bf16.msra.mxu1 %v6861_v52  ;;  %v8647_v52 = vld [vmem:[#allocation12_spill] sm:$0xff] }
  0xa3   : > { %6349 = vmatmul.mubr.msk.bf16.gmra.mrb[4].mxu0 %vm7660_vm5, %v7784_v40  ;;  %6184 = vmatprep.subr.bf16.mxu1 %v6863_v30 }
  0xa4   : > { %6121 = vmatmul.mubr.msk.bf16.gmra.mrb[16].mxu1 %vm7660_vm5, %v7683_v46  ;;  %6352 = vmatprep.mubr.msk.bf16.mxu0 %vm7660_vm5, %v7791_v18 }
  0xa5   : > { %6124 = vmatprep.mubr.msk.bf16.mxu1 %vm7660_vm5, %v7691_v19  ;;  %6381 = vmatpush3.bf16.msra.mxu0 %v6860_v56  ;;  %v6871_v56 = vld [vmem:[%s8583_s5 + $0xe0] sm:$0xff]  }
  0xa6   : > { %6382 = vmatprep.subr.bf16.mxu0 %v6862_v11 }
  0xa9   : > { %6383 = vmatpush3.bf16.msra.mxu0 %v6862_v11  ;;  %v6873_v11 = vld [vmem:[%s8583_s5 + $0xe8] sm:$0xff]  }
  0xaa   : > { %6384 = vmatprep.subr.bf16.mxu0 %v6864_v47 }
  0xab   : > { %6353 = vmatmul.mubr.msk.bf16.gmra.mrb[8].mxu0 %vm7660_vm5, %v7672_v57 }
  0xac   : > { %6125 = vmatmul.mubr.msk.bf16.gmra.mrb[20].mxu1 %vm7660_vm5, %v7695_v14  ;;  %6356 = vmatprep.mubr.msk.bf16.mxu0 %vm7660_vm5, %v7679_v20 }
  0xad   : > { %6128 = vmatprep.mubr.msk.bf16.mxu1 %vm7660_vm5, %v7700_v24  ;;  %6385 = vmatpush3.bf16.msra.mxu0 %v6864_v47  ;;  %v8649_v47 = vld [vmem:[#allocation4_spill] sm:$0xff] }
  0xae   : > { %6386 = vmatprep.subr.bf16.mxu0 %v6866_v44 }
  0xb1   : > { %6387 = vmatpush3.bf16.msra.mxu0 %v6866_v44  ;;  %v8650_v44 = vld [vmem:[#allocation17_spill] sm:$0xff] }
  0xb2   : > { %6388 = vmatprep.subr.bf16.mxu0 %v6868_v58 }
  0xb3   : > { %6357 = vmatmul.mubr.msk.bf16.gmra.mrb[12].mxu0 %vm7660_vm5, %v7683_v46 }
  0xb4   : > { %6129 = vmatmul.mubr.msk.bf16.gmra.mrb[24].mxu1 %vm7660_vm5, %v7704_v39  ;;  %6360 = vmatprep.mubr.msk.bf16.mxu0 %vm7660_vm5, %v7691_v19 }
  0xb5   : > { %6132 = vmatprep.mubr.msk.bf16.mxu1 %vm7660_vm5, %v7708_v23  ;;  %6389 = vmatpush3.bf16.msra.mxu0 %v6868_v58  ;;  %v6875_v58 = vld [vmem:[%s8583_s5 + $0xf0] sm:$0xff]  }
  0xb6   : > { %6390 = vmatprep.subr.bf16.mxu0 %v6870_v59 }
  0xb9   : > { %6391 = vmatpush3.bf16.msra.mxu0 %v6870_v59  ;;  %v8651_v59 = vld [vmem:[#allocation5_spill] sm:$0xff] }
  0xba   : > { %6424 = vmatprep.subr.bf16.mxu0 %v6872_v3 }
  0xbb   : > { %6361 = vmatmul.mubr.msk.bf16.gmra.mrb[16].mxu0 %vm7660_vm5, %v7695_v14 }
  0xbc   : > { %6133 = vmatmul.mubr.msk.bf16.gmra.mrb[28].mxu1 %vm7660_vm5, %v7712_v41  ;;  %6364 = vmatprep.mubr.msk.bf16.mxu0 %vm7660_vm5, %v7700_v24 }
  0xbd   : > { %6152 = vmatprep.mubr.bf16.mxu1 %v1711_v32  ;;  %v6880_v32 = vld [vmem:[%s8583_s5 + $0x228] sm:$0xff]  }
  0xc3   : > { %6365 = vmatmul.mubr.msk.bf16.gmra.mrb[20].mxu0 %vm7660_vm5, %v7704_v39 }
  0xc4   : > { %6153 = vmatmul.mubr.bf16.vlgmr.msra.gmra.mrb[0].mxu1 %v8645_v43  ;;  %6368 = vmatprep.mubr.msk.bf16.mxu0 %vm7660_vm5, %v7708_v23  ;;  %v8659_v43 = vld [vmem:[#allocation16_spill] sm:$0xff] }
  0xc5   : > { %6185 = vmatpush3.bf16.msra.mxu1 %v6863_v30  ;;  %6156 = vmatprep.mubr.bf16.mxu1 %v8646_v51  ;;  %v5493_v30 = vpack.c.bf16 %v7948_v48, %v7931_v2 }
  0xc6   : > { %6186 = vmatprep.subr.bf16.mxu1 %v6865_v12 }
  0xc9   : > { %6187 = vmatpush3.bf16.msra.mxu1 %v6865_v12  ;;  %v8658_v12 = vld [vmem:[#allocation14_spill] sm:$0xff] }
  0xca   : > { %6188 = vmatprep.subr.bf16.mxu1 %v6867_v21 }
  0xcb   : > { %6369 = vmatmul.mubr.msk.bf16.gmra.mrb[24].mxu0 %vm7660_vm5, %v7712_v41 }
  0xcc   : > { %6157 = vmatmul.mubr.bf16.gmra.mrb[4].mxu1 %v8647_v52  ;;  %6372 = vmatprep.mubr.msk.bf16.mxu0 %vm7660_vm5, %v7929_v42 }
  0xcd   : > { %6160 = vmatprep.mubr.bf16.mxu1 %v8648_v22  ;;  %6189 = vmatpush3.bf16.msra.mxu1 %v6867_v21  ;;  %v8660_v21 = vld [vmem:[#allocation18_spill] sm:$0xff] }
  0xce   : > { %6190 = vmatprep.subr.bf16.mxu1 %v6869_v54 }
  0xd1   : > { %6191 = vmatpush3.bf16.msra.mxu1 %v6869_v54  ;;  %v8661_v54 = vld [vmem:[#allocation19_spill] sm:$0xff] }
  0xd2   : > { %6192 = vmatprep.subr.bf16.mxu1 %v6871_v56 }
  0xd3   : > { %6373 = vmatmul.mubr.msk.bf16.gmra.mrb[28].mxu0 %vm7660_vm5, %v5493_v30 }
  0xd4   : > { %6161 = vmatmul.mubr.bf16.gmra.mrb[8].mxu1 %v7491_v28  ;;  %6392 = vmatprep.mubr.bf16.mxu0 %v8649_v47  ;;  %v8662_v47 = vld [vmem:[#allocation21_spill] sm:$0xff] }
  0xd5   : > { %6164 = vmatprep.mubr.bf16.mxu1 %v8650_v44  ;;  %6193 = vmatpush3.bf16.msra.mxu1 %v6871_v56  ;;  %v961_v56 = vsel %vm835_vm0, 0.0, %v7931_v2 }
  0xd6   : > { %6194 = vmatprep.subr.bf16.mxu1 %v6873_v11  ;;  %v8031_v30 = vpack.c.bf16 %v7948_v48, %v961_v56  ;;  %v6899_v48 = vld [vmem:[%s8583_s5 + $0x110] sm:$0xff]  }
  0xd8   : > { %v3083_v63 = vshrl.u32 %v8031_v30, 16 }
  0xd9   : > { %6195 = vmatpush3.bf16.msra.mxu1 %v6873_v11  ;;  %v979_v11 = vsel %vm835_vm0, %v888_v0, 0.0 }
  0xda   : > { %6196 = vmatprep.subr.bf16.mxu1 %v6875_v58  ;;  %v8041_v2 = vpack.c.bf16 %v979_v11, %v979_v11 }
  0xdb   : > { %6393 = vmatmul.mubr.bf16.vlgmr.msra.gmra.mrb[0].mxu0 %v8651_v59  ;;  %v6900_v59 = vld [vmem:[%s8583_s5 + $0x118] sm:$0xff]  }
  0xdc   : > { %6165 = vmatmul.mubr.bf16.gmra.mrb[12].mxu1 %v8652_v55  ;;  %6425 = vmatpush3.bf16.msra.mxu0 %v6872_v3  ;;  %v6897_v3 = vld [vmem:[%s8583_s5 + $0x100] sm:$0xff]  }
  0xdd   : > { %6168 = vmatprep.mubr.bf16.mxu1 %v7605_v7  ;;  %6396 = vmatprep.mubr.bf16.mxu0 %v8653_v61  ;;  %v6884_v61 = vld [vmem:[%s8586_s8 + $0x8] sm:$0xff]  }
  0xde   : > { %6426 = vmatprep.subr.bf16.mxu0 %v6874_v60  ;;  %6197 = vmatpush3.bf16.msra.mxu1 %v6875_v58  ;;  %v3085_v58 = vshll.u32 %v8031_v30, 16 }
  0xdf   : > { %6198 = vmatprep.subr.bf16.mxu1 %v6877_v13 }
  0xe0   : > { %6427 = vmatpush3.bf16.msra.mxu0 %v6874_v60  ;;  %v3087_v0 = vrot.slane %v3085_v58, 1 }
  0xe1   : > { %6428 = vmatprep.subr.bf16.mxu0 %v6876_v34 }
  0xe2   : > { %6199 = vmatpush3.bf16.msra.mxu1 %v6877_v13 }
  0xe3   : > { %6397 = vmatmul.mubr.bf16.gmra.mrb[4].mxu0 %v8654_v37  ;;  %6496 = vmatprep.subr.bf16.mxu1 %v6897_v3 }
  0xe4   : > { %6169 = vmatmul.mubr.bf16.gmra.mrb[16].mxu1 %v7624_v33  ;;  %6400 = vmatprep.mubr.bf16.mxu0 %v8655_v36 }
  0xe5   : > { %6172 = vmatprep.mubr.bf16.mxu1 %v7651_v27  ;;  %6429 = vmatpush3.bf16.msra.mxu0 %v6876_v34 }
  0xe6   : > { %6430 = vmatprep.subr.bf16.mxu0 %v6878_v49 }
  0xe9   : > { %6431 = vmatpush3.bf16.msra.mxu0 %v6878_v49 }
  0xea   : > { %6432 = vmatprep.subr.bf16.mxu0 %v6879_v1 }
  0xeb   : > { %6401 = vmatmul.mubr.bf16.gmra.mrb[8].mxu0 %v8656_v45 }
  0xec   : > { %6173 = vmatmul.mubr.bf16.gmra.mrb[20].mxu1 %v7657_v17  ;;  %6404 = vmatprep.mubr.bf16.mxu0 %v8657_v25 }
  0xed   : > { %6176 = vmatprep.mubr.bf16.mxu1 %v7715_v50  ;;  %6433 = vmatpush3.bf16.msra.mxu0 %v6879_v1 }
  0xee   : > { %6434 = vmatprep.subr.bf16.mxu0 %v6880_v32 }
  0xf1   : > { %6435 = vmatpush3.bf16.msra.mxu0 %v6880_v32 }
  0xf2   : > { %6436 = vmatprep.subr.bf16.mxu0 %v6881_v15 }
  0xf3   : > { %6405 = vmatmul.mubr.bf16.gmra.mrb[12].mxu0 %v8658_v12 }
  0xf4   : > { %6177 = vmatmul.mubr.bf16.gmra.mrb[24].mxu1 %v7723_v6  ;;  %6408 = vmatprep.mubr.bf16.mxu0 %v8659_v43 }
  0xf5   : > { %6180 = vmatprep.mubr.bf16.mxu1 %v7758_v38  ;;  %6437 = vmatpush3.bf16.msra.mxu0 %v6881_v15 }
  0xf6   : > { %6438 = vmatprep.subr.bf16.mxu0 %v6882_v29 }
  0xf9   : > { %6439 = vmatpush3.bf16.msra.mxu0 %v6882_v29 }
  0xfa   : > { %6472 = vmatprep.subr.bf16.mxu0 %v8019_v53 }
  0xfb   : > { %6409 = vmatmul.mubr.bf16.gmra.mrb[16].mxu0 %v8660_v21 }
  0xfc   : > { %6181 = vmatmul.mubr.bf16.gmra.mrb[28].mxu1 %v7766_v4  ;;  %6412 = vmatprep.mubr.bf16.mxu0 %v8661_v54 }
  0xfd   : > { %6200 = vmatprep.mubr.msk.bf16.mxu1 %vm7660_vm5, %v7138_v9  ;;  %v6898_v9 = vld [vmem:[%s8583_s5 + $0x108] sm:$0xff]  }
 0x103   : > { %6413 = vmatmul.mubr.bf16.gmra.mrb[20].mxu0 %v8662_v47 }
 0x104   : > { %6201 = vmatmul.mubr.msk.bf16.vlgmr.msra.gmra.mrb[0].mxu1 %vm7660_vm5, %v7720_v5  ;;  %6416 = vmatprep.mubr.bf16.mxu0 %v7646_v62  ;;  %v3090_v5 = vshll.u32 %v8041_v2, 16 }
 0x105   : > { %6504 = vmatpush3.bf16.msra.mxu1 %v6897_v3  ;;  %6204 = vmatprep.mubr.msk.bf16.mxu1 %vm7660_vm5, %v7755_v10  ;;  %v3088_v10 = vor.u32 %v3087_v0, %v3083_v63 }
 0x106   : > { %6497 = vmatprep.subr.bf16.mxu1 %v6898_v9  ;;  %v3092_v60 = vrot.slane %v3090_v5, 1 }
 0x108   : > { %v3093_v13 = vsel %vm1032_vm1, %v3088_v10, %v3092_v60 }
 0x109   : > { %6505 = vmatpush3.bf16.msra.mxu1 %v6898_v9 }
 0x10a   : > { %6498 = vmatprep.subr.bf16.mxu1 %v6899_v48 }
 0x10b   : > { %6417 = vmatmul.mubr.bf16.gmra.mrb[24].mxu0 %v7666_v26 }
 0x10c   : > { %6205 = vmatmul.mubr.msk.bf16.gmra.mrb[4].mxu1 %vm7660_vm5, %v7763_v31  ;;  %6420 = vmatprep.mubr.bf16.mxu0 %v7813_v35  ;;  %v6901_v31 = vld [vmem:[%s8583_s5 + $0x120] sm:$0xff]  }
 0x10d   : > { %6208 = vmatprep.mubr.msk.bf16.mxu1 %vm7660_vm5, %v7784_v40  ;;  %6506 = vmatpush3.bf16.msra.mxu1 %v6899_v48  ;;  %v6902_v40 = vld [vmem:[%s8583_s5 + $0x128] sm:$0xff]  }
 0x10e   : > { %6499 = vmatprep.subr.bf16.mxu1 %v6900_v59 }
 0x111   : > { %6507 = vmatpush3.bf16.msra.mxu1 %v6900_v59 }
 0x112   : > { %6500 = vmatprep.subr.bf16.mxu1 %v6901_v31 }
 0x113   : > { %6421 = vmatmul.mubr.bf16.gmra.mrb[28].mxu0 %v3093_v13 }
 0x114   : > { %6209 = vmatmul.mubr.msk.bf16.gmra.mrb[8].mxu1 %vm7660_vm5, %v7791_v18  ;;  %6440 = vmatprep.mubr.bf16.mxu0 %v8646_v51  ;;  %v6903_v18 = vld [vmem:[%s8583_s5 + $0x130] sm:$0xff]   ;;  %v6904_v51 = vld [vmem:[%s8583_s5 + $0x138] sm:$0xff]  }
 0x115   : > { %6212 = vmatprep.mubr.msk.bf16.mxu1 %vm7660_vm5, %v7672_v57  ;;  %6508 = vmatpush3.bf16.msra.mxu1 %v6901_v31  ;;  %v6885_v57 = vld [vmem:[%s8586_s8 + $0x10] sm:$0xff]  }
 0x116   : > { %6501 = vmatprep.subr.bf16.mxu1 %v6902_v40 }
 0x119   : > { %6509 = vmatpush3.bf16.msra.mxu1 %v6902_v40 }
 0x11a   : > { %6502 = vmatprep.subr.bf16.mxu1 %v6903_v18 }
 0x11b   : > { %6441 = vmatmul.mubr.bf16.vlgmr.msra.gmra.mrb[0].mxu0 %v8647_v52 }
 0x11c   : > { %6213 = vmatmul.mubr.msk.bf16.gmra.mrb[12].mxu1 %vm7660_vm5, %v7679_v20  ;;  %6473 = vmatpush3.bf16.msra.mxu0 %v8019_v53  ;;  %v6886_v20 = vld [vmem:[%s8586_s8 + $0x18] sm:$0xff]  }
 0x11d   : > { %6216 = vmatprep.mubr.msk.bf16.mxu1 %vm7660_vm5, %v7683_v46  ;;  %6444 = vmatprep.mubr.bf16.mxu0 %v8648_v22  ;;  %v6887_v46 = vld [vmem:[%s8586_s8 + $0x20] sm:$0xff]  }
 0x11e   : > { %6474 = vmatprep.subr.bf16.mxu0 %v6884_v61  ;;  %6510 = vmatpush3.bf16.msra.mxu1 %v6903_v18 }
 0x11f   : > { %6503 = vmatprep.subr.bf16.mxu1 %v6904_v51 }
 0x120   : > { %6475 = vmatpush3.bf16.msra.mxu0 %v6884_v61 }
 0x121   : > { %6476 = vmatprep.subr.bf16.mxu0 %v6885_v57 }
 0x122   : > { %6511 = vmatpush3.bf16.msra.mxu1 %v6904_v51 }
 0x123   : > { %6445 = vmatmul.mubr.bf16.gmra.mrb[4].mxu0 %v7491_v28  ;;  %6512 = vmatprep.subr.bf16.mxu1 %v8019_v53  ;;  %v6888_v28 = vld [vmem:[%s8586_s8 + $0x28] sm:$0xff]  }
 0x124   : > { %6217 = vmatmul.mubr.msk.bf16.gmra.mrb[16].mxu1 %vm7660_vm5, %v7691_v19  ;;  %6448 = vmatprep.mubr.bf16.mxu0 %v8650_v44  ;;  %v6889_v19 = vld [vmem:[%s8586_s8 + $0x30] sm:$0xff]  }
 0x125   : > { %6220 = vmatprep.mubr.msk.bf16.mxu1 %vm7660_vm5, %v7695_v14  ;;  %6477 = vmatpush3.bf16.msra.mxu0 %v6885_v57  ;;  %v6890_v14 = vld [vmem:[%s8586_s8 + $0x38] sm:$0xff]  }
 0x126   : > { %6478 = vmatprep.subr.bf16.mxu0 %v6886_v20 }
 0x129   : > { %6479 = vmatpush3.bf16.msra.mxu0 %v6886_v20 }
 0x12a   : > { %6480 = vmatprep.subr.bf16.mxu0 %v6887_v46 }
 0x12b   : > { %6449 = vmatmul.mubr.bf16.gmra.mrb[8].mxu0 %v8652_v55 }
 0x12c   : > { %6221 = vmatmul.mubr.msk.bf16.gmra.mrb[20].mxu1 %vm7660_vm5, %v7700_v24  ;;  %6452 = vmatprep.mubr.bf16.mxu0 %v7605_v7  ;;  %v3355_v7 = vrot.slane %v8031_v30, 1  ;;  %v6892_v24 = vld [vmem:[%s7984_s12 + $0x10] sm:$0xff]  }
 0x12d   : > { %6224 = vmatprep.mubr.msk.bf16.mxu1 %vm7660_vm5, %v7704_v39  ;;  %6481 = vmatpush3.bf16.msra.mxu0 %v6887_v46  ;;  %v6894_v39 = vld [vmem:[%s7984_s12 + $0x18] sm:$0xff]  }
 0x12e   : > { %6482 = vmatprep.subr.bf16.mxu0 %v6888_v28 }
 0x131   : > { %6483 = vmatpush3.bf16.msra.mxu0 %v6888_v28 }
 0x132   : > { %6484 = vmatprep.subr.bf16.mxu0 %v6889_v19 }
 0x133   : > { %6453 = vmatmul.mubr.bf16.gmra.mrb[12].mxu0 %v7624_v33  ;;  %v3356_v33 = vrot.slane %v8041_v2, 1 }
 0x134   : > { %6225 = vmatmul.mubr.msk.bf16.gmra.mrb[24].mxu1 %vm7660_vm5, %v7708_v23  ;;  %6456 = vmatprep.mubr.bf16.mxu0 %v7651_v27 }
 0x135   : > { %6228 = vmatprep.mubr.msk.bf16.mxu1 %vm7660_vm5, %v7712_v41  ;;  %6485 = vmatpush3.bf16.msra.mxu0 %v6889_v19  ;;  %v3357_v27 = vsel %vm1708_vm2, %v3355_v7, %v3356_v33 }
 0x136   : > { %6486 = vmatprep.subr.bf16.mxu0 %v6890_v14 }
 0x139   : > { %6487 = vmatpush3.bf16.msra.mxu0 %v6890_v14 }
 0x13b   : > { %6457 = vmatmul.mubr.bf16.gmra.mrb[16].mxu0 %v7657_v17  ;;  %v6891_v17 = vld [vmem:[%s7984_s12] sm:$0xff]  }
 0x13c   : > { %6229 = vmatmul.mubr.msk.bf16.gmra.mrb[28].mxu1 %vm7660_vm5, %v7929_v42  ;;  %6460 = vmatprep.mubr.bf16.mxu0 %v7715_v50 }
 0x13d   : > { %6264 = vmatprep.mubr.bf16.mxu1 %v8658_v12 }
 0x143   : > { %6461 = vmatmul.mubr.bf16.gmra.mrb[20].mxu0 %v7723_v6 }
 0x144   : > { %6265 = vmatmul.mubr.bf16.vlgmr.msra.gmra.mrb[16].mxu1 %v8659_v43  ;;  %6464 = vmatprep.mubr.bf16.mxu0 %v7758_v38 }
 0x145   : > { %6520 = vmatpush3.bf16.msra.mxu1 %v8019_v53  ;;  %6268 = vmatprep.mubr.bf16.mxu1 %v8660_v21 }
 0x146   : > { %6513 = vmatprep.subr.bf16.mxu1 %v6884_v61 }
 0x149   : > { %6521 = vmatpush3.bf16.msra.mxu1 %v6884_v61 }
 0x14a   : > { %6514 = vmatprep.subr.bf16.mxu1 %v6885_v57 }
 0x14b   : > { %6465 = vmatmul.mubr.bf16.gmra.mrb[24].mxu0 %v7766_v4 }
 0x14c   : > { %6269 = vmatmul.mubr.bf16.gmra.mrb[20].mxu1 %v8661_v54  ;;  %6468 = vmatprep.mubr.bf16.mxu0 %v7787_v16 }
 0x14d   : > { %6522 = vmatpush3.bf16.msra.mxu1 %v6885_v57  ;;  %6272 = vmatprep.mubr.bf16.mxu1 %v8662_v47 }
 0x14e   : > { %6515 = vmatprep.subr.bf16.mxu1 %v6886_v20 }
 0x151   : > { %6523 = vmatpush3.bf16.msra.mxu1 %v6886_v20 }
 0x152   : > { %6516 = vmatprep.subr.bf16.mxu1 %v6887_v46 }
 0x153   : > { %6469 = vmatmul.mubr.bf16.gmra.mrb[28].mxu0 %v3357_v27 }
 0x154   : > { %6273 = vmatmul.mubr.bf16.gmra.mrb[24].mxu1 %v7646_v62  ;;  %6488 = vmatprep.mubr.bf16.mxu0 %v6891_v17 }
 0x155   : > { %6524 = vmatpush3.bf16.msra.mxu1 %v6887_v46  ;;  %6276 = vmatprep.mubr.bf16.mxu1 %v7666_v26 }
 0x156   : > { %6517 = vmatprep.subr.bf16.mxu1 %v6888_v28 }
 0x159   : > { %6525 = vmatpush3.bf16.msra.mxu1 %v6888_v28 }
 0x15a   : > { %6518 = vmatprep.subr.bf16.mxu1 %v6889_v19 }
 0x15b   : > { %6489 = vmatmul.mubr.bf16.vlgmr.msra.gmra.mrb[32].mxu0 %v6893_v8 }
 0x15c   : > { %6277 = vmatmul.mubr.bf16.gmra.mrb[28].mxu1 %v7813_v35 }
 0x15d   : > { %6526 = vmatpush3.bf16.msra.mxu1 %v6889_v19  ;;  %6492 = vmatprep.mubr.bf16.mxu1 %v6892_v24 }
 0x15e   : > { %6519 = vmatprep.subr.bf16.mxu1 %v6890_v14 }
 0x161   : > { %6527 = vmatpush3.bf16.msra.mxu1 %v6890_v14 }
 0x164   : > { %6493 = vmatmul.mubr.bf16.vlgmr.msra.gmra.mrb[32].mxu1 %v6894_v39 }
 0x1d7   : > { %v6202_v23 = vpop.f32.mrb[0].mxu1 }
 0x1d8   : > { %v2130_v62 = vpop.f32.mrb[1].mxu1 }
 0x1d9   : > { %v6203_v41 = vpop.f32.mrb[2].mxu1 }
 0x1da   : > { %v2133_v50 = vpop.f32.mrb[3].mxu1 }
 0x1df   : > { %v6206_v6 = vpop.f32.mrb[4].mxu1 }
 0x1e0   : > { %v2146_v26 = vpop.f32.mrb[5].mxu1 }
 0x1e1   : > { %v6207_v38 = vpop.f32.mrb[6].mxu1 }
 0x1e2   : > { %v2149_v4 = vpop.f32.mrb[7].mxu1 }
 0x1e7   : > { %v6210_v16 = vpop.f32.mrb[8].mxu1 }
 0x1e8   : > { %v2162_v42 = vpop.f32.mrb[9].mxu1 }
 0x1e9   : > { %v6211_v52 = vpop.f32.mrb[10].mxu1 }
 0x1ea   : > { %v2165_v22 = vpop.f32.mrb[11].mxu1 }
 0x1ee   : > { %v6442_v44 = vpop.f32.mrb[0].mxu0 }
 0x1ef   : > { %v6214_v35 = vpop.f32.mrb[12].mxu1  ;;  %v8166_v55 = vadd.f32 %v6442_v44, %v6202_v23  ;;  %v3458_v34 = vpop.f32.mrb[1].mxu0  ;;  %v6931_v44 = vmov 1983009808  }
 0x1f0   : > { %v2178_v49 = vpop.f32.mrb[13].mxu1  ;;  %v8168_v37 = vadd.f32 %v3458_v34, %v2130_v62  ;;  %v6443_v3 = vpop.f32.mrb[2].mxu0 }
 0x1f1   : > { %v6215_v36 = vpop.f32.mrb[14].mxu1  ;;  %v8170_v1 = vadd.f32 %v6443_v3, %v6203_v41  ;;  %v3461_v32 = vpop.f32.mrb[3].mxu0 }
 0x1f2   : > { %v2181_v45 = vpop.f32.mrb[15].mxu1  ;;  %v8172_v25 = vadd.f32 %v3461_v32, %v2133_v50 }
 0x1f6   : > { %v6446_v15 = vpop.f32.mrb[4].mxu0 }
 0x1f7   : > { %v8174_v29 = vadd.f32 %v6446_v15, %v6206_v6  ;;  %v3474_v12 = vpop.f32.mrb[5].mxu0  ;;  %v8209_v15 = vld [vmem:[%s8584_s6] ss:$0 sm:$0xff] }
 0x1f8   : > { %v8176_v43 = vadd.f32 %v3474_v12, %v2146_v26  ;;  %v6447_v53 = vpop.f32.mrb[6].mxu0  ;;  %8667 = vst [vmem:[#allocation12_spill] sm:$0xff] %v8209_v15 }
 0x1f9   : > { %v8178_v21 = vadd.f32 %v6447_v53, %v6207_v38  ;;  %v3477_v54 = vpop.f32.mrb[7].mxu0  ;;  %v6930_v38 = vmov 1966171168  }
 0x1fa   : > { %v8180_v56 = vadd.f32 %v3477_v54, %v2149_v4  ;;  %v3834_v4 = vunpack.c.l.s4 %v6930_v38 }
 0x1fe   : > { %v6450_v30 = vpop.f32.mrb[8].mxu0 }
 0x1ff   : > { %v8182_v11 = vadd.f32 %v6450_v30, %v6210_v16  ;;  %v3490_v47 = vpop.f32.mrb[9].mxu0  ;;  %v3836_v16 = vlaneseq }
 0x200   : > { %v8184_v2 = vadd.f32 %v3490_v47, %v2162_v42  ;;  %v6451_v58 = vpop.f32.mrb[10].mxu0 }
 0x201   : > { %v8186_v9 = vadd.f32 %v6451_v58, %v6211_v52  ;;  %v3493_v63 = vpop.f32.mrb[11].mxu0  ;;  %v3837_v32 = vshrl.u32 %v3836_v16, 7 }
 0x202   : > { %v8188_v0 = vadd.f32 %v3493_v63, %v2165_v22 }
 0x206   : > { %v6454_v5 = vpop.f32.mrb[12].mxu0 }
 0x207   : > { %v8190_v48 = vadd.f32 %v6454_v5, %v6214_v35  ;;  %v3506_v10 = vpop.f32.mrb[13].mxu0  ;;  %v4483_v35 = vunpack.c.l.s4 %v6931_v44  ;;  %v8215_v5 = vadd.f32 %v8166_v55, %v8209_v15 }
 0x208   : > { %v8192_v60 = vadd.f32 %v3506_v10, %v2178_v49  ;;  %v6455_v59 = vpop.f32.mrb[14].mxu0 }
 0x209   : > { %v8194_v13 = vadd.f32 %v6455_v59, %v6215_v36  ;;  %v3509_v31 = vpop.f32.mrb[15].mxu0  ;;  %v3835_v36 = vunpack.c.0.s8 %v3834_v4 }
 0x20a   : > { %v8196_v40 = vadd.f32 %v3509_v31, %v2181_v45  ;;  %v4484_v45 = vunpack.c.0.s8 %v4483_v35 }
 0x20b   : > { %v8211_v63 = vsub.s32 %v3835_v36, %v3837_v32 }
 0x20e   : > { %v6458_v61 = vpop.f32.mrb[16].mxu0 }
 0x20f   : > { %v3522_v18 = vpop.f32.mrb[17].mxu0 }
 0x210   : > { %v6459_v57 = vpop.f32.mrb[18].mxu0 }
 0x211   : > { %v3525_v51 = vpop.f32.mrb[19].mxu0 }
 0x216   : > { %v6462_v20 = vpop.f32.mrb[20].mxu0 }
 0x217   : > { %v6266_v46 = vpop.f32.mrb[16].mxu1  ;;  %v3538_v28 = vpop.f32.mrb[21].mxu0 }
 0x218   : > { %v6544_v19 = vadd.f32 %v6458_v61, %v6266_v46  ;;  %v2465_v14 = vpop.f32.mrb[17].mxu1  ;;  %v6463_v7 = vpop.f32.mrb[22].mxu0  ;;  %v8217_v61 = vsub.s32 0, %v3837_v32 }
 0x219   : > { %v6545_v33 = vadd.f32 %v3522_v18, %v2465_v14  ;;  %v6267_v27 = vpop.f32.mrb[18].mxu1  ;;  %v3541_v17 = vpop.f32.mrb[23].mxu0  ;;  %v8219_v18 = vsub.s32 %v4484_v45, %v3837_v32  ;;  %v8239_v14 = vadd.f32 %v8176_v43, %v8209_v15  ;;  %v8259_v43 = vadd.f32 %v8186_v9, %v8209_v15 }
 0x21a   : > { %v6546_v8 = vadd.f32 %v6459_v57, %v6267_v27  ;;  %v2468_v24 = vpop.f32.mrb[19].mxu1  ;;  %v8223_v57 = vadd.f32 %v8168_v37, %v8209_v15  ;;  %v8243_v37 = vadd.f32 %v8178_v21, %v8209_v15  ;;  %v8264_v21 = vld [vmem:[%s8587_s9] ss:$0 sm:$0xff]  ;;  %v8280_v9 = vadd.f32 %v8194_v13, %v8209_v15 }
 0x21b   : > { %v6547_v39 = vadd.f32 %v3525_v51, %v2468_v24  ;;  %v8227_v51 = vadd.f32 %v8170_v1, %v8209_v15  ;;  %v8284_v27 = vadd.f32 %v8196_v40, %v8209_v15 }
 0x21e   : > { %v6466_v23 = vpop.f32.mrb[24].mxu0 }
 0x21f   : > { %v6270_v62 = vpop.f32.mrb[20].mxu1  ;;  %v3554_v41 = vpop.f32.mrb[25].mxu0 }
 0x220   : > { %v8198_v50 = vadd.f32 %v6462_v20, %v6270_v62  ;;  %v2481_v6 = vpop.f32.mrb[21].mxu1  ;;  %v6467_v26 = vpop.f32.mrb[26].mxu0  ;;  %v8231_v20 = vadd.f32 %v8172_v25, %v8209_v15  ;;  %v8251_v25 = vadd.f32 %v8182_v11, %v8209_v15  ;;  %v8272_v11 = vadd.f32 %v8190_v48, %v8209_v15 }
 0x221   : > { %v8200_v42 = vadd.f32 %v3538_v28, %v2481_v6  ;;  %v6271_v52 = vpop.f32.mrb[22].mxu1  ;;  %v3557_v22 = vpop.f32.mrb[27].mxu0  ;;  %v8235_v28 = vadd.f32 %v8174_v29, %v8209_v15  ;;  %v8255_v29 = vadd.f32 %v8184_v2, %v8209_v15  ;;  %v8276_v2 = vadd.f32 %v8192_v60, %v8209_v15 }
 0x222   : > { %8663 = vst [vmem:[#allocation2_spill] sm:$0xff] %v8198_v50  ;;  %v8202_v34 = vadd.f32 %v6463_v7, %v6271_v52  ;;  %v2484_v49 = vpop.f32.mrb[23].mxu1  ;;  %v8247_v7 = vadd.f32 %v8180_v56, %v8209_v15  ;;  %v8268_v56 = vadd.f32 %v8188_v0, %v8209_v15  ;;  %v8290_v0 = vadd.f32 %v6545_v33, %v8209_v15 }
 0x223   : > { %8664 = vst [vmem:[#allocation3_spill] sm:$0xff] %v8200_v42  ;;  %v8204_v3 = vadd.f32 %v3541_v17, %v2484_v49  ;;  %v8287_v17 = vadd.f32 %v6544_v19, %v8209_v15  ;;  %v8293_v48 = vadd.f32 %v6546_v8, %v8209_v15  ;;  %v8296_v60 = vadd.f32 %v6547_v39, %v8209_v15 }
 0x224   : > { %8665 = vst [vmem:[#allocation9_spill] sm:$0xff] %v8202_v34 }
 0x225   : > { %8666 = vst [vmem:[#allocation10_spill] sm:$0xff] %v8204_v3 }
 0x226   : > { %v6470_v12 = vpop.f32.mrb[28].mxu0 }
 0x227   : > { %v6274_v53 = vpop.f32.mrb[24].mxu1  ;;  %v3570_v54 = vpop.f32.mrb[29].mxu0 }
 0x228   : > { %v6552_v30 = vadd.f32 %v6466_v23, %v6274_v53  ;;  %v2497_v47 = vpop.f32.mrb[25].mxu1  ;;  %v6471_v58 = vpop.f32.mrb[30].mxu0 }
 0x229   : > { %v6553_v10 = vadd.f32 %v3554_v41, %v2497_v47  ;;  %v6275_v59 = vpop.f32.mrb[26].mxu1  ;;  %v3573_v31 = vpop.f32.mrb[31].mxu0 }
 0x22a   : > { %v6554_v55 = vadd.f32 %v6467_v26, %v6275_v59  ;;  %v2500_v46 = vpop.f32.mrb[27].mxu1  ;;  %v8299_v13 = vadd.f32 %v6552_v30, %v8209_v15 }
 0x22b   : > { %v6555_v1 = vadd.f32 %v3557_v22, %v2500_v46  ;;  %v8302_v23 = vadd.f32 %v6553_v10, %v8209_v15 }
 0x22c   : > { %v8306_v33 = vadd.f32 %v6554_v55, %v8209_v15 }
 0x22d   : > { %v8309_v8 = vadd.f32 %v6555_v1, %v8209_v15 }
 0x22e   : > { %v6490_v24 = vpop.f32.mrb[32].mxu0 }
 0x22f   : > { %v6278_v40 = vpop.f32.mrb[28].mxu1  ;;  %v3802_v19 = vadd.f32 %v6490_v24, %v8264_v21  ;;  %v3793_v62 = vpop.f32.mrb[33].mxu0 }
 0x230   : > { %v6556_v41 = vadd.f32 %v6470_v12, %v6278_v40  ;;  %v2513_v6 = vpop.f32.mrb[29].mxu1  ;;  %v3794_v39 = vadd.f32 %v8264_v21, %v3793_v62  ;;  %v6491_v26 = vpop.f32.mrb[34].mxu0 }
 0x231   : > { %v6557_v38 = vadd.f32 %v3570_v54, %v2513_v6  ;;  %v6279_v4 = vpop.f32.mrb[30].mxu1  ;;  %v3930_v16 = vcombine.high %v3802_v19, %v3802_v19  ;;  %v3937_v52 = vrot.slane %v3802_v19, %v8211_v63  ;;  %v8314_v22 = vadd.f32 %v6491_v26, %v8264_v21  ;;  %v8316_v44 = vpop.f32.mrb[35].mxu0 }
 0x232   : > { %v8319_v35 = vadd.f32 %v6556_v41, %v8209_v15  ;;  %v6558_v49 = vadd.f32 %v6471_v58, %v6279_v4  ;;  %v2516_v36 = vpop.f32.mrb[31].mxu1  ;;  %v3832_v32 = vcombine.high %v3794_v39, %v3794_v39  ;;  %v3839_v45 = vrot.slane %v3794_v39, %v8211_v63 }
 0x233   : > { %v8323_v12 = vadd.f32 %v6557_v38, %v8209_v15  ;;  %v6559_v53 = vadd.f32 %v3573_v31, %v2516_v36  ;;  %v3944_v54 = vrot.slane %v3930_v16, %v8211_v63  ;;  %v3945_v30 = vcombine.high %v3937_v52, %v3937_v52 }
 0x234   : > { %v8327_v47 = vadd.f32 %v6558_v49, %v8209_v15  ;;  %v3953_v10 = vrot.slane %v3937_v52, %v8211_v63  ;;  %v3846_v59 = vrot.slane %v3832_v32, %v8211_v63  ;;  %v3847_v55 = vcombine.high %v3839_v45, %v3839_v45 }
 0x235   : > { %v8332_v58 = vadd.f32 %v6559_v53, %v8209_v15  ;;  %v3946_v46 = vcombine.high %v3944_v54, %v3944_v54  ;;  %v3960_v1 = vrot.slane %v3944_v54, %v8211_v63  ;;  %v3967_v24 = vrot.slane %v3945_v30, %v8211_v63 }
 0x236   : > { %v3975_v31 = vcombine.high %v3953_v10, %v3953_v10  ;;  %v4291_v40 = vrot.slane %v3953_v10, %v8217_v61  ;;  %v3848_v19 = vcombine.high %v3846_v59, %v3846_v59  ;;  %v8338_v62 = vrot.slane %v3839_v45, %v8211_v63 }
 0x237   : > { %v3974_v41 = vrot.slane %v3946_v46, %v8211_v63  ;;  %v3976_v6 = vcombine.high %v3960_v1, %v3960_v1  ;;  %v3977_v39 = vcombine.high %v3967_v24, %v3967_v24  ;;  %v4295_v26 = vrot.slane %v3967_v24, %v8217_v61  ;;  %v6494_v38 = vpop.f32.mrb[32].mxu1 }
 0x238   : > { %v4299_v4 = vrot.slane %v3975_v31, %v8217_v61  ;;  %v4307_v16 = vrot.slane %v3960_v1, %v8217_v61  ;;  %v3818_v52 = vadd.f32 %v6494_v38, %v8264_v21  ;;  %v8346_v49 = vrot.slane %v3846_v59, %v8211_v63  ;;  %v8348_v36 = vpop.f32.mrb[33].mxu1 }
 0x239   : > { %v3978_v32 = vcombine.high %v3974_v41, %v3974_v41  ;;  %v4303_v45 = vrot.slane %v3977_v39, %v8217_v61  ;;  %v4311_v53 = vrot.slane %v3974_v41, %v8217_v61  ;;  %v4315_v54 = vrot.slane %v3976_v6, %v8217_v61  ;;  %v8353_v30 = vpop.f32.mrb[34].mxu1 }
 0x23a   : > { %v4548_v10 = vcombine.low %v4291_v40, %v4295_v26  ;;  %v4126_v46 = vcombine.high %v3818_v52, %v3818_v52  ;;  %v4133_v1 = vrot.slane %v3818_v52, %v8211_v63  ;;  %v8357_v24 = vrot.slane %v3847_v55, %v8211_v63  ;;  %v8359_v59 = vpop.f32.mrb[35].mxu1 }
 0x23b   : > { %v4319_v31 = vrot.slane %v3978_v32, %v8217_v61  ;;  %v4549_v38 = vcombine.low %v4299_v4, %v4303_v45  ;;  %v4565_v3 = vcombine.low %v4307_v16, %v4311_v53  ;;  %v8363_v39 = vrot.slane %v3848_v19, %v8211_v63 }
 0x23c   : > { %v4556_v41 = vrot.slane %v4548_v10, %v8219_v18  ;;  %v4140_v6 = vrot.slane %v4126_v46, %v8211_v63  ;;  %v4141_v40 = vcombine.high %v4133_v1, %v4133_v1  ;;  %v4149_v26 = vrot.slane %v4133_v1, %v8211_v63 }
 0x23d   : > { %v4563_v52 = vrot.slane %v4549_v38, %v8219_v18  ;;  %v4566_v55 = vcombine.low %v4315_v54, %v4319_v31  ;;  %v4573_v34 = vrot.slane %v4565_v3, %v8219_v18  ;;  %v3877_v32 = vcombine.high %v8338_v62, %v8338_v62 }
 0x23e   : > { %v4142_v4 = vcombine.high %v4140_v6, %v4140_v6  ;;  %v4156_v16 = vrot.slane %v4140_v6, %v8211_v63  ;;  %v4163_v19 = vrot.slane %v4141_v40, %v8211_v63  ;;  %v4171_v45 = vcombine.high %v4149_v26, %v4149_v26 }
 0x23f   : > { %v4564_v53 = vcombine.low %v4556_v41, %v4563_v52  ;;  %v4580_v10 = vrot.slane %v4566_v55, %v8219_v18  ;;  %v4419_v46 = vrot.slane %v4149_v26, %v8217_v61  ;;  %v3878_v1 = vcombine.high %v8346_v49, %v8346_v49 }
 0x240   : > { %v4170_v54 = vrot.slane %v4142_v4, %v8211_v63  ;;  %v4172_v3 = vcombine.high %v4156_v16, %v4156_v16  ;;  %v4173_v31 = vcombine.high %v4163_v19, %v4163_v19  ;;  %v4423_v38 = vrot.slane %v4163_v19, %v8217_v61 }
 0x241   : > { %v4581_v42 = vcombine.low %v4573_v34, %v4580_v10  ;;  %v4776_v6 = vadd.f32 %v4564_v53, %v8255_v29  ;;  %v4778_v40 = vadd.f32 %v4564_v53, %v8251_v25  ;;  %v4427_v41 = vrot.slane %v4171_v45, %v8217_v61 }
 0x242   : > { %v4174_v52 = vcombine.high %v4170_v54, %v4170_v54  ;;  %v4431_v26 = vrot.slane %v4173_v31, %v8217_v61  ;;  %v4435_v55 = vrot.slane %v4156_v16, %v8217_v61  ;;  %v4439_v50 = vrot.slane %v4170_v54, %v8217_v61 }
 0x243   : > { %v4777_v4 = vadd.f32 %v4581_v42, %v8268_v56  ;;  %v4779_v15 = vadd.f32 %v4581_v42, %v8259_v43  ;;  %v4443_v19 = vrot.slane %v4172_v3, %v8217_v61  ;;  %v4684_v34 = vcombine.low %v4419_v46, %v4423_v38 }
 0x244   : > { %v4447_v25 = vrot.slane %v4174_v52, %v8217_v61  ;;  %v4685_v29 = vcombine.low %v4427_v41, %v4431_v26  ;;  %v4701_v16 = vcombine.low %v4435_v55, %v4439_v50  ;;  %v3879_v45 = vcombine.high %v8357_v24, %v8357_v24 }
 0x245   : > { %v5724_v56 = vpack.c.bf16 %v4777_v4, %v4776_v6  ;;  %v5729_v53 = vpack.c.bf16 %v4779_v15, %v4778_v40  ;;  %v4692_v42 = vrot.slane %v4684_v34, %v8219_v18  ;;  %v3880_v43 = vcombine.high %v8363_v39, %v8363_v39 }
 0x246   : > { %v4699_v10 = vrot.slane %v4685_v29, %v8219_v18  ;;  %v4702_v46 = vcombine.low %v4443_v19, %v4447_v25  ;;  %v4709_v54 = vrot.slane %v4701_v16, %v8219_v18  ;;  %v4227_v3 = vrot.slane %v8338_v62, %v8217_v61 }
 0x247   : > { %5800 = vst [vmem:[%s8393_s30 + $0x20] sm:$0xff] %v5724_v56   ;;  %5801 = vst [vmem:[%s8393_s30 + $0x28] sm:$0xff] %v5729_v53   ;;  %v4231_v50 = vrot.slane %v8357_v24, %v8217_v61  ;;  %v4235_v15 = vrot.slane %v3877_v32, %v8217_v61  ;;  %v4239_v31 = vrot.slane %v3879_v45, %v8217_v61 }
 0x248   : > { %v4243_v38 = vrot.slane %v8346_v49, %v8217_v61  ;;  %v4700_v6 = vcombine.low %v4692_v42, %v4699_v10  ;;  %v4716_v40 = vrot.slane %v4702_v46, %v8219_v18  ;;  %v4247_v41 = vrot.slane %v8363_v39, %v8217_v61 }
 0x249   : > { %v4251_v62 = vrot.slane %v3878_v1, %v8217_v61  ;;  %v4255_v52 = vrot.slane %v3880_v43, %v8217_v61  ;;  %v4480_v26 = vcombine.low %v4227_v3, %v4231_v50  ;;  %v4481_v55 = vcombine.low %v4235_v15, %v4239_v31 }
 0x24a   : > { %v3810_v24 = vadd.f32 %v8264_v21, %v8348_v36  ;;  %v4717_v32 = vcombine.low %v4709_v54, %v4716_v40  ;;  %v4792_v4 = vadd.f32 %v4700_v6, %v8302_v23  ;;  %v4794_v49 = vadd.f32 %v4700_v6, %v8299_v13 }
 0x24b   : > { %v4497_v19 = vcombine.low %v4243_v38, %v4247_v41  ;;  %v4488_v34 = vrot.slane %v4480_v26, %v8219_v18  ;;  %v4495_v25 = vrot.slane %v4481_v55, %v8219_v18  ;;  %v4498_v39 = vcombine.low %v4251_v62, %v4255_v52 }
 0x24c   : > { %v4028_v29 = vcombine.high %v3810_v24, %v3810_v24  ;;  %v4793_v1 = vadd.f32 %v4717_v32, %v8309_v8  ;;  %v4795_v16 = vadd.f32 %v4717_v32, %v8306_v33  ;;  %v4035_v45 = vrot.slane %v3810_v24, %v8211_v63 }
 0x24d   : > { %v4505_v36 = vrot.slane %v4497_v19, %v8219_v18  ;;  %v4496_v23 = vcombine.low %v4488_v34, %v4495_v25  ;;  %v4512_v13 = vrot.slane %v4498_v39, %v8219_v18  ;;  %v3979_v53 = vcombine.high %v8314_v22, %v8314_v22 }
 0x24e   : > { %v4042_v56 = vrot.slane %v4028_v29, %v8211_v63  ;;  %v5764_v42 = vpack.c.bf16 %v4793_v1, %v4792_v4  ;;  %v5769_v43 = vpack.c.bf16 %v4795_v16, %v4794_v49  ;;  %v4043_v10 = vcombine.high %v4035_v45, %v4035_v45 }
 0x24f   : > { %v4051_v8 = vrot.slane %v4035_v45, %v8211_v63  ;;  %v4513_v46 = vcombine.low %v4505_v36, %v4512_v13  ;;  %v4768_v33 = vadd.f32 %v4496_v23, %v8223_v57  ;;  %v4770_v54 = vadd.f32 %v4496_v23, %v8215_v5 }
 0x250   : > { %v4044_v3 = vcombine.high %v4042_v56, %v4042_v56  ;;  %5808 = vst [vmem:[%s8393_s30 + $0x60] sm:$0xff] %v5764_v42   ;;  %5809 = vst [vmem:[%s8393_s30 + $0x68] sm:$0xff] %v5769_v43   ;;  %v4058_v50 = vrot.slane %v4042_v56, %v8211_v63  ;;  %v4065_v15 = vrot.slane %v4043_v10, %v8211_v63 }
 0x251   : > { %v4073_v31 = vcombine.high %v4051_v8, %v4051_v8  ;;  %v4355_v38 = vrot.slane %v4051_v8, %v8217_v61  ;;  %v4769_v6 = vadd.f32 %v4513_v46, %v8231_v20  ;;  %v4771_v40 = vadd.f32 %v4513_v46, %v8227_v51 }
 0x252   : > { %v4072_v57 = vrot.slane %v4044_v3, %v8211_v63  ;;  %v3986_v5 = vrot.slane %v8314_v22, %v8211_v63  ;;  %v4074_v41 = vcombine.high %v4058_v50, %v4058_v50  ;;  %v4075_v62 = vcombine.high %v4065_v15, %v4065_v15 }
 0x253   : > { %v4359_v52 = vrot.slane %v4065_v15, %v8217_v61  ;;  %v4363_v26 = vrot.slane %v4073_v31, %v8217_v61  ;;  %v5704_v55 = vpack.c.bf16 %v4769_v6, %v4768_v33  ;;  %v5709_v24 = vpack.c.bf16 %v4771_v40, %v4770_v54 }
 0x254   : > { %v4076_v32 = vcombine.high %v4072_v57, %v4072_v57  ;;  %v4371_v20 = vrot.slane %v4058_v50, %v8217_v61  ;;  %v4367_v4 = vrot.slane %v4075_v62, %v8217_v61  ;;  %v4375_v51 = vrot.slane %v4072_v57, %v8217_v61 }
 0x255   : > { %v4379_v49 = vrot.slane %v4074_v41, %v8217_v61  ;;  %v4616_v19 = vcombine.low %v4355_v38, %v4359_v52  ;;  %5705 = vst [vmem:[%s8393_s30] sm:$0xff] %v5704_v55   ;;  %5797 = vst [vmem:[%s8393_s30 + $0x8] sm:$0xff] %v5709_v24   ;;  %v3993_v34 = vrot.slane %v3979_v53, %v8211_v63 }
 0x256   : > { %v4383_v22 = vrot.slane %v4076_v32, %v8217_v61  ;;  %v3994_v25 = vcombine.high %v3986_v5, %v3986_v5  ;;  %v4002_v39 = vrot.slane %v3986_v5, %v8211_v63  ;;  %v4617_v29 = vcombine.low %v4363_v26, %v4367_v4 }
 0x257   : > { %v4624_v1 = vrot.slane %v4616_v19, %v8219_v18  ;;  %v4633_v16 = vcombine.low %v4371_v20, %v4375_v51  ;;  %v3821_v36 = vadd.f32 %v8353_v30, %v8264_v21  ;;  %v3995_v23 = vcombine.high %v3993_v34, %v3993_v34 }
 0x258   : > { %v4634_v45 = vcombine.low %v4379_v49, %v4383_v22  ;;  %v4009_v13 = vrot.slane %v3993_v34, %v8211_v63  ;;  %v4016_v56 = vrot.slane %v3994_v25, %v8211_v63  ;;  %v4631_v42 = vrot.slane %v4617_v29, %v8219_v18 }
 0x259   : > { %v4641_v53 = vrot.slane %v4633_v16, %v8219_v18  ;;  %v4024_v43 = vcombine.high %v4002_v39, %v4002_v39  ;;  %v4323_v10 = vrot.slane %v4002_v39, %v8217_v61  ;;  %v4023_v46 = vrot.slane %v3995_v23, %v8211_v63 }
 0x25a   : > { %v4648_v8 = vrot.slane %v4634_v45, %v8219_v18  ;;  %v4025_v33 = vcombine.high %v4009_v13, %v4009_v13  ;;  %v4026_v54 = vcombine.high %v4016_v56, %v4016_v56  ;;  %v4632_v30 = vcombine.low %v4624_v1, %v4631_v42 }
 0x25b   : > { %v4327_v3 = vrot.slane %v4016_v56, %v8217_v61  ;;  %v4331_v50 = vrot.slane %v4024_v43, %v8217_v61  ;;  %v4339_v15 = vrot.slane %v4009_v13, %v8217_v61  ;;  %v4027_v38 = vcombine.high %v4023_v46, %v4023_v46 }
 0x25c   : > { %v4649_v31 = vcombine.low %v4641_v53, %v4648_v8  ;;  %v4335_v6 = vrot.slane %v4026_v54, %v8217_v61  ;;  %v4343_v40 = vrot.slane %v4023_v46, %v8217_v61  ;;  %v4784_v57 = vadd.f32 %v4632_v30, %v8290_v0 }
 0x25d   : > { %v4786_v5 = vadd.f32 %v4632_v30, %v8287_v17  ;;  %v4347_v41 = vrot.slane %v4025_v33, %v8217_v61  ;;  %v4582_v62 = vcombine.low %v4323_v10, %v4327_v3  ;;  %v4351_v55 = vrot.slane %v4027_v38, %v8217_v61 }
 0x25e   : > { %v4785_v52 = vadd.f32 %v4649_v31, %v8296_v60  ;;  %v4787_v26 = vadd.f32 %v4649_v31, %v8293_v48  ;;  %v4583_v24 = vcombine.low %v4331_v50, %v4335_v6  ;;  %v4599_v20 = vcombine.low %v4339_v15, %v4343_v40 }
 0x25f   : > { %v4590_v32 = vrot.slane %v4582_v62, %v8219_v18  ;;  %v4175_v4 = vcombine.high %v3821_v36, %v3821_v36  ;;  %v4182_v0 = vrot.slane %v3821_v36, %v8211_v63  ;;  %v4600_v19 = vcombine.low %v4347_v41, %v4351_v55 }
 0x260   : > { %v5744_v51 = vpack.c.bf16 %v4785_v52, %v4784_v57  ;;  %v5749_v17 = vpack.c.bf16 %v4787_v26, %v4786_v5  ;;  %v4597_v49 = vrot.slane %v4583_v24, %v8219_v18  ;;  %v4607_v60 = vrot.slane %v4599_v20, %v8219_v18 }
 0x261   : > { %v4189_v22 = vrot.slane %v4175_v4, %v8211_v63  ;;  %v4190_v48 = vcombine.high %v4182_v0, %v4182_v0  ;;  %v4198_v34 = vrot.slane %v4182_v0, %v8211_v63  ;;  %v4614_v39 = vrot.slane %v4600_v19, %v8219_v18 }
 0x262   : > { %5804 = vst [vmem:[%s8393_s30 + $0x40] sm:$0xff] %v5744_v51   ;;  %5805 = vst [vmem:[%s8393_s30 + $0x48] sm:$0xff] %v5749_v17   ;;  %v4598_v25 = vcombine.low %v4590_v32, %v4597_v49  ;;  %v3797_v29 = vadd.f32 %v8264_v21, %v8316_v44  ;;  %v3813_v1 = vadd.f32 %v8264_v21, %v8359_v59 }
 0x263   : > { %v4191_v16 = vcombine.high %v4189_v22, %v4189_v22  ;;  %v4205_v36 = vrot.slane %v4189_v22, %v8211_v63  ;;  %v4212_v45 = vrot.slane %v4190_v48, %v8211_v63  ;;  %v4220_v23 = vcombine.high %v4198_v34, %v4198_v34 }
 0x264   : > { %v4615_v13 = vcombine.low %v4607_v60, %v4614_v39  ;;  %v4780_v56 = vadd.f32 %v4598_v25, %v8276_v2  ;;  %v4782_v42 = vadd.f32 %v4598_v25, %v8272_v11  ;;  %v4451_v53 = vrot.slane %v4198_v34, %v8217_v61 }
 0x265   : > { %v4219_v43 = vrot.slane %v4191_v16, %v8211_v63  ;;  %v4221_v10 = vcombine.high %v4205_v36, %v4205_v36  ;;  %v4222_v44 = vcombine.high %v4212_v45, %v4212_v45  ;;  %v4455_v8 = vrot.slane %v4212_v45, %v8217_v61 }
 0x266   : > { %v4781_v21 = vadd.f32 %v4615_v13, %v8284_v27  ;;  %v4783_v59 = vadd.f32 %v4615_v13, %v8280_v9  ;;  %v4459_v46 = vrot.slane %v4220_v23, %v8217_v61  ;;  %v4467_v2 = vrot.slane %v4205_v36, %v8217_v61 }
 0x267   : > { %v4223_v33 = vcombine.high %v4219_v43, %v4219_v43  ;;  %v4463_v11 = vrot.slane %v4222_v44, %v8217_v61  ;;  %v4471_v54 = vrot.slane %v4219_v43, %v8217_v61  ;;  %v4475_v30 = vrot.slane %v4221_v10, %v8217_v61 }
 0x268   : > { %v5734_v3 = vpack.c.bf16 %v4781_v21, %v4780_v56  ;;  %v5739_v50 = vpack.c.bf16 %v4783_v59, %v4782_v42  ;;  %v4718_v15 = vcombine.low %v4451_v53, %v4455_v8  ;;  %v3881_v31 = vcombine.high %v3797_v29, %v3797_v29 }
 0x269   : > { %v4479_v27 = vrot.slane %v4223_v33, %v8217_v61  ;;  %v4719_v38 = vcombine.low %v4459_v46, %v4463_v11  ;;  %v4735_v9 = vcombine.low %v4467_v2, %v4471_v54  ;;  %v3888_v6 = vrot.slane %v3797_v29, %v8211_v63 }
 0x26a   : > { %5802 = vst [vmem:[%s8393_s30 + $0x30] sm:$0xff] %v5734_v3   ;;  %5803 = vst [vmem:[%s8393_s30 + $0x38] sm:$0xff] %v5739_v50   ;;  %v4726_v40 = vrot.slane %v4718_v15, %v8219_v18  ;;  %v3895_v57 = vrot.slane %v3881_v31, %v8211_v63  ;;  %v4077_v5 = vcombine.high %v3813_v1, %v3813_v1 }
 0x26b   : > { %v4084_v41 = vrot.slane %v3813_v1, %v8211_v63  ;;  %v4733_v62 = vrot.slane %v4719_v38, %v8219_v18  ;;  %v4736_v52 = vcombine.low %v4475_v30, %v4479_v27  ;;  %v4743_v26 = vrot.slane %v4735_v9, %v8219_v18 }
 0x26c   : > { %v3896_v55 = vcombine.high %v3888_v6, %v3888_v6  ;;  %v3897_v24 = vcombine.high %v3895_v57, %v3895_v57  ;;  %v3904_v32 = vrot.slane %v3888_v6, %v8211_v63  ;;  %v3911_v20 = vrot.slane %v3895_v57, %v8211_v63 }
 0x26d   : > { %v4091_v4 = vrot.slane %v4077_v5, %v8211_v63  ;;  %v4734_v0 = vcombine.low %v4726_v40, %v4733_v62  ;;  %v4750_v51 = vrot.slane %v4736_v52, %v8219_v18  ;;  %v4092_v49 = vcombine.high %v4084_v41, %v4084_v41 }
 0x26e   : > { %v3918_v17 = vrot.slane %v3896_v55, %v8211_v63  ;;  %v3925_v19 = vrot.slane %v3897_v24, %v8211_v63  ;;  %v3926_v60 = vcombine.high %v3904_v32, %v3904_v32  ;;  %v3927_v22 = vcombine.high %v3911_v20, %v3911_v20 }
 0x26f   : > { %v4259_v48 = vrot.slane %v3904_v32, %v8217_v61  ;;  %v4751_v34 = vcombine.low %v4743_v26, %v4750_v51  ;;  %v4796_v25 = vadd.f32 %v4734_v0, %v8323_v12  ;;  %v4798_v39 = vadd.f32 %v4734_v0, %v8319_v35 }
 0x270   : > { %v3928_v29 = vcombine.high %v3918_v17, %v3918_v17  ;;  %v3929_v1 = vcombine.high %v3925_v19, %v3925_v19  ;;  %v4263_v16 = vrot.slane %v3918_v17, %v8217_v61  ;;  %v4267_v36 = vrot.slane %v3926_v60, %v8217_v61  ;;  %v8670_v60 = vld [vmem:[#allocation3_spill] sm:$0xff] }
 0x271   : > { %v4275_v45 = vrot.slane %v3911_v20, %v8217_v61  ;;  %v4797_v23 = vadd.f32 %v4751_v34, %v8332_v58  ;;  %v4799_v13 = vadd.f32 %v4751_v34, %v8327_v47  ;;  %v4279_v12 = vrot.slane %v3925_v19, %v8217_v61  ;;  %v8671_v34 = vld [vmem:[#allocation9_spill] sm:$0xff] }
 0x272   : > { %v4271_v56 = vrot.slane %v3928_v29, %v8217_v61  ;;  %v4283_v35 = vrot.slane %v3927_v22, %v8217_v61  ;;  %v4287_v42 = vrot.slane %v3929_v1, %v8217_v61  ;;  %v4514_v53 = vcombine.low %v4259_v48, %v4263_v16 }
 0x273   : > { %v4093_v43 = vcombine.high %v4091_v4, %v4091_v4  ;;  %v5774_v10 = vpack.c.bf16 %v4797_v23, %v4796_v25  ;;  %v5779_v44 = vpack.c.bf16 %v4799_v13, %v4798_v39  ;;  %v4531_v21 = vcombine.low %v4275_v45, %v4279_v12  ;;  %v8672_v39 = vld [vmem:[#allocation10_spill] sm:$0xff] }
 0x274   : > { %v4515_v8 = vcombine.low %v4267_v36, %v4271_v56  ;;  %v4522_v58 = vrot.slane %v4514_v53, %v8219_v18  ;;  %v4532_v59 = vcombine.low %v4283_v35, %v4287_v42  ;;  %v4100_v47 = vrot.slane %v4084_v41, %v8211_v63 }
 0x275   : > { %v4107_v46 = vrot.slane %v4091_v4, %v8211_v63  ;;  %5810 = vst [vmem:[%s8393_s30 + $0x70] sm:$0xff] %v5774_v10   ;;  %5811 = vst [vmem:[%s8393_s30 + $0x78] sm:$0xff] %v5779_v44   ;;  %v4539_v33 = vrot.slane %v4531_v21, %v8219_v18  ;;  %v4114_v11 = vrot.slane %v4092_v49, %v8211_v63  ;;  %v8668_v49 = vld [vmem:[#allocation12_spill] sm:$0xff] }
 0x276   : > { %v4529_v2 = vrot.slane %v4515_v8, %v8219_v18  ;;  %v4121_v54 = vrot.slane %v4093_v43, %v8211_v63  ;;  %v4546_v30 = vrot.slane %v4532_v59, %v8219_v18  ;;  %v4122_v3 = vcombine.high %v4100_v47, %v4100_v47 }
 0x277   : > { %v4123_v50 = vcombine.high %v4107_v46, %v4107_v46  ;;  %v4387_v15 = vrot.slane %v4100_v47, %v8217_v61  ;;  %v4124_v27 = vcombine.high %v4114_v11, %v4114_v11  ;;  %v4391_v9 = vrot.slane %v4114_v11, %v8217_v61 }
 0x278   : > { %v4530_v31 = vcombine.low %v4522_v58, %v4529_v2  ;;  %v4125_v38 = vcombine.high %v4121_v54, %v4121_v54  ;;  %v4547_v6 = vcombine.low %v4539_v33, %v4546_v30  ;;  %v4395_v40 = vrot.slane %v4122_v3, %v8217_v61 }
 0x279   : > { %v4403_v57 = vrot.slane %v4107_v46, %v8217_v61  ;;  %v4407_v5 = vrot.slane %v4121_v54, %v8217_v61  ;;  %v4399_v62 = vrot.slane %v4124_v27, %v8217_v61  ;;  %v4411_v52 = vrot.slane %v4123_v50, %v8217_v61 }
 0x27a   : > { %v4772_v63 = vadd.f32 %v4530_v31, %v8239_v14  ;;  %v4774_v41 = vadd.f32 %v4530_v31, %v8235_v28  ;;  %v4773_v26 = vadd.f32 %v4547_v6, %v8247_v7  ;;  %v4775_v55 = vadd.f32 %v4547_v6, %v8243_v37 }
 0x27b   : > { %v4415_v24 = vrot.slane %v4125_v38, %v8217_v61  ;;  %v4650_v32 = vcombine.low %v4387_v15, %v4391_v9  ;;  %v4651_v20 = vcombine.low %v4395_v40, %v4399_v62  ;;  %v4667_v4 = vcombine.low %v4403_v57, %v4407_v5  ;;  %v8669_v61 = vld [vmem:[#allocation2_spill] sm:$0xff] }
 0x27c   : > { %v5714_v0 = vpack.c.bf16 %v4773_v26, %v4772_v63  ;;  %v5719_v51 = vpack.c.bf16 %v4775_v55, %v4774_v41  ;;  %v3646_v19 = vadd.f32 %v8669_v61, %v8668_v49  ;;  %v3644_v22 = vadd.f32 %v8670_v60, %v8668_v49 }
 0x27d   : > { %v4668_v17 = vcombine.low %v4411_v52, %v4415_v24  ;;  %v4658_v14 = vrot.slane %v4650_v32, %v8219_v18  ;;  %v4665_v28 = vrot.slane %v4651_v20, %v8219_v18  ;;  %v4675_v7 = vrot.slane %v4667_v4, %v8219_v18 }
 0x27e   : > { %5798 = vst [vmem:[%s8393_s30 + $0x10] sm:$0xff] %v5714_v0   ;;  %5799 = vst [vmem:[%s8393_s30 + $0x18] sm:$0xff] %v5719_v51   ;;  %v3647_v25 = vadd.f32 %v8671_v34, %v8668_v49  ;;  %v3645_v29 = vadd.f32 %v8672_v39, %v8668_v49 }
 0x27f   : > { %v4682_v37 = vrot.slane %v4668_v17, %v8219_v18  ;;  %v4666_v48 = vcombine.low %v4658_v14, %v4665_v28 }
 0x281   : > { %v4683_v1 = vcombine.low %v4675_v7, %v4682_v37  ;;  %v4788_v16 = vadd.f32 %v4666_v48, %v3644_v22  ;;  %v4790_v36 = vadd.f32 %v4666_v48, %v3646_v19 }
 0x283   : > { %v4789_v45 = vadd.f32 %v4683_v1, %v3645_v29  ;;  %v4791_v23 = vadd.f32 %v4683_v1, %v3647_v25 }
 0x285   : > { %v5754_v13 = vpack.c.bf16 %v4789_v45, %v4788_v16  ;;  %v5759_v18 = vpack.c.bf16 %v4791_v23, %v4790_v36 }
 0x287   : > { %5806 = vst [vmem:[%s8393_s30 + $0x50] sm:$0xff] %v5754_v13   ;;  %5807 = vst [vmem:[%s8393_s30 + $0x58] sm:$0xff] %v5759_v18  }
 0x288 PF: > { %s20_s15 = sadd.s32 1, %s6927_s15   ;;  %s8673_s13 = smov %s6923_s14 }
 0x289   : > { %p17_p5 = scmp.ge.s32.totalorder %s20_s15, 4   ;;  %s8674_s14 = smov %s8676_s16 }
 0x28b   :  { %19 = sbr.rel (!%p17_p5) target bundleno = 2 (0x2), region = 113 }

</bundles_post_ra>
